<compile_context>
chip_gen: v7x
topology: tpu7x:2x2x1
jax: 0.10.0
libtpu: 0.0.40
codegen_flags: <defaults>
</compile_context>

<pallas_src>
import functools
import math

import jax
import jax.numpy as jnp
from jax.experimental import pallas as pl
from jax.experimental.pallas import tpu as pltpu

# ----------------------------- hyper-parameters (small demo shapes) -----------------------------
B = 2            # batch
L = 8            # time steps  (inputs.shape[1])
NODES = 16       # num graph nodes (inputs.shape[2])
COND_LEN = 24    # cond_length
C = 8            # residual_channels
HID = 64         # residual_hidden
TIME_DIM = 16    # time_emb_dim  (embedding table width = 2*TIME_DIM)
MAX_STEPS = 500
N_LAYERS = 8     # residual_layers
K_CHEB = 2       # SpecConv K
DIL_CYCLE = 2    # dilation_cycle_length
LEAKY_SLOPE = 0.4

NC = NODES * C   # flattened (node, channel) width = 128  (lane-dense)


def _leaky(v):
    return jnp.where(v >= 0.0, v, LEAKY_SLOPE * v)


# =====================================================================================
# Kernel 1: fused "pre" projections (single invocation, whole arrays in VMEM)
#   dproj_all  = diff_proj_all( silu( silu(emb @ p1 + b1) @ p2 + b2 ) )        (B, NL*C)
#   cond_all   = cond_proj_all( leaky( leaky(cond @ c1 + b1) @ c2 + b2 ) )     (M*N, NL*2C)
# =====================================================================================
def _pre_kernel(emb_ref, p1w_ref, p1b_ref, p2w_ref, p2b_ref, dw_ref, db_ref,
                cond_ref, c1w_ref, c1b_ref, c2w_ref, c2b_ref, cw_ref, cb_ref,
                dproj_ref, cond_all_ref):
    e = jnp.dot(emb_ref[...], p1w_ref[...], preferred_element_type=jnp.float32) + p1b_ref[...]
    e = e * jax.nn.sigmoid(e)
    e = jnp.dot(e, p2w_ref[...], preferred_element_type=jnp.float32) + p2b_ref[...]
    e = e * jax.nn.sigmoid(e)
    dproj_ref[...] = jnp.dot(e, dw_ref[...], preferred_element_type=jnp.float32) + db_ref[...]

    c = _leaky(jnp.dot(cond_ref[...], c1w_ref[...], preferred_element_type=jnp.float32)
               + c1b_ref[...])
    c = _leaky(jnp.dot(c, c2w_ref[...], preferred_element_type=jnp.float32) + c2b_ref[...])
    cond_all_ref[...] = (jnp.dot(c, cw_ref[...], preferred_element_type=jnp.float32)
                         + cb_ref[...])


def pre_projections(kp, emb, cond_flat):
    Bb = emb.shape[0]
    Mn = cond_flat.shape[0]
    return pl.pallas_call(
        _pre_kernel,
        out_shape=(jax.ShapeDtypeStruct((Bb, N_LAYERS * C), jnp.float32),
                   jax.ShapeDtypeStruct((Mn, N_LAYERS * 2 * C), jnp.float32)),
    )(emb, kp["p1_w"], kp["p1_b"], kp["p2_w"], kp["p2_b"],
      kp["diff_w_all"], kp["diff_b_all"],
      cond_flat, kp["c1_w"], kp["c1_b"], kp["c2_w"], kp["c2_b"],
      kp["cond_w_all"], kp["cond_b_all"])


# =====================================================================================
# Kernel 2: fused input projection + residual stack + output head.
#   grid = (B,)  ("parallel" -> both v7x TensorCores used); layer loop unrolled in-kernel,
#   x and skip live in vregs/VMEM for the whole stack (no HBM round-trips per layer).
#   Activation layout: (rows=L, lanes=N*C=128).  Per layer:
#     y  = x @ conv_full[l] + cproj[l]          (conv_full: block-circulant, cols=[gate|filt])
#     z  = sigmoid(y[:, :128]) * tanh(y[:, 128:])
#     w  = leaky(z @ out_full[l] + out_bias[l])  (cols=[residual|skip])
#     x  = (x + w[:, :128]) / sqrt(2) ;  skip += w[:, 128:]
# =====================================================================================
def _stack_kernel(inp_ref, scale_ref, cproj_ref, expand_ref, specb_ref,
                  convw_ref, outw_ref, outb_ref,
                  skipw_ref, skipb_ref, outpw_ref, outpb_ref, o_ref):
    nc = expand_ref.shape[1]

    # SpecConv input projection (leaky( (theta-poly * x) @ spec_w + spec_b )) in flat layout.
    xs = inp_ref[0] * scale_ref[0]                                            # (L, N)
    x = jnp.dot(xs, expand_ref[...], preferred_element_type=jnp.float32) + specb_ref[...]
    x = _leaky(x)                                                             # (L, NC)
    skip = jnp.zeros_like(x)

    for l in range(N_LAYERS):
        y = jnp.dot(x, convw_ref[l], preferred_element_type=jnp.float32) + cproj_ref[l]
        z = jax.nn.sigmoid(y[:, :nc]) * jnp.tanh(y[:, nc:])                   # GLU
        w = _leaky(jnp.dot(z, outw_ref[l], preferred_element_type=jnp.float32) + outb_ref[l])
        x = (x + w[:, :nc]) * (1.0 / math.sqrt(2.0))
        skip = skip + w[:, nc:]

    h = skip * (1.0 / math.sqrt(N_LAYERS))
    h = _leaky(jnp.dot(h, skipw_ref[...], preferred_element_type=jnp.float32) + skipb_ref[...])
    o_ref[0] = jnp.dot(h, outpw_ref[...], preferred_element_type=jnp.float32) + outpb_ref[...]


def residual_stack(kp, inputs, scale3, cproj_full):
    Bb, Ll, Nn = inputs.shape
    NL = N_LAYERS
    return pl.pallas_call(
        _stack_kernel,
        out_shape=jax.ShapeDtypeStruct((Bb, Ll, Nn), jnp.float32),
        grid=(Bb,),
        in_specs=[
            pl.BlockSpec((1, Ll, Nn), lambda b: (b, 0, 0)),            # inputs
            pl.BlockSpec((1, 1, Nn), lambda b: (b, 0, 0)),             # theta-poly scale
            pl.BlockSpec((NL, Ll, 2 * NC), lambda b: (0, b, 0)),       # per-layer conditioner+bias
            pl.BlockSpec((Nn, NC), lambda b: (0, 0)),                  # spec expand
            pl.BlockSpec((1, NC), lambda b: (0, 0)),                   # spec bias
            pl.BlockSpec((NL, NC, 2 * NC), lambda b: (0, 0, 0)),       # conv_full (block-circulant)
            pl.BlockSpec((NL, NC, 2 * NC), lambda b: (0, 0, 0)),       # out_full (block-diag)
            pl.BlockSpec((NL, 1, 2 * NC), lambda b: (0, 0, 0)),        # out bias
            pl.BlockSpec((NC, NC), lambda b: (0, 0)),                  # skip_full
            pl.BlockSpec((1, NC), lambda b: (0, 0)),                   # skip bias
            pl.BlockSpec((NC, Nn), lambda b: (0, 0)),                  # output head
            pl.BlockSpec((1, Nn), lambda b: (0, 0)),                   # output head bias
        ],
        out_specs=pl.BlockSpec((1, Ll, Nn), lambda b: (b, 0, 0)),
        compiler_params=pltpu.CompilerParams(dimension_semantics=("parallel",)),
    )(inputs, scale3, cproj_full,
      kp["expand_w"], kp["spec_bias"],
      kp["conv_full"], kp["out_full"], kp["out_bias"],
      kp["skip_full"], kp["skip_bias"], kp["outp_full"], kp["outp_bias"])


# =====================================================================================
# full SpecSTGEpsilonTheta forward (Pallas path)
# =====================================================================================
def forward_pallas(kp, inputs, time, cond, Lambda):
    Bb, Ll, Nn = inputs.shape
    M = Bb * Ll
    NL = N_LAYERS

    # SpecConv polynomial scale  (theta0 + sum_k theta_k * Lambda^k)  — tiny glue
    lam = Lambda.reshape(Bb, Nn)
    scale = jnp.full_like(lam, kp["theta"][0])
    p = jnp.ones_like(lam)
    for it in range(1, K_CHEB):
        p = p * lam
        scale = scale + kp["theta"][it] * p
    scale3 = scale.reshape(Bb, 1, Nn)

    emb = kp["emb_table"][time[:, 0]]                        # glue gather (B, 2*TIME_DIM)
    cond_flat = cond.reshape(M * Nn, COND_LEN)

    dproj_all, cond_all = pre_projections(kp, emb, cond_flat)

    # conditioner -> per-layer flat [gate-nodes | filt-nodes] layout (layout plumbing)
    Y = cond_all.reshape(M, Nn, NL, 2, C)
    cproj = jnp.transpose(Y, (2, 0, 3, 1, 4)).reshape(NL, M, 2 * NC)
    # fold conv bias + node-constant diffusion projection (through the linear conv)
    bias2c = jnp.einsum("bli,lij->blj", dproj_all.reshape(Bb, NL, C),
                        kp["conv_wsum"]) + kp["conv_b"][None]              # (B, NL, 2C)
    bias_flat = jnp.broadcast_to(bias2c.reshape(Bb, NL, 2, 1, C),
                                 (Bb, NL, 2, Nn, C)).reshape(Bb, NL, 2 * NC)
    cproj_full = cproj + jnp.repeat(jnp.transpose(bias_flat, (1, 0, 2)), Ll, axis=1)

    return residual_stack(kp, inputs, scale3, cproj_full)    # (B, L, N)


# =====================================================================================
# deterministic parameter construction (torch layout tp  +  fused kernel layout kp)
# =====================================================================================
def build_embedding_table(dim, max_steps):
    steps = jnp.arange(max_steps, dtype=jnp.float32)[:, None]
    dims = jnp.arange(dim, dtype=jnp.float32)[None, :]
    table = steps * 10.0 ** (dims * 4.0 / dim)
    return jnp.concatenate([jnp.sin(table), jnp.cos(table)], axis=1)


def init_params(key):
    def nrm(k, shape, scale=0.1):
        return scale * jax.random.normal(k, shape, jnp.float32)

    keys = iter(jax.random.split(key, 128))
    tp = {
        "theta": nrm(next(keys), (K_CHEB,), 0.5),
        "spec_w": nrm(next(keys), (C, 1), 0.5),
        "spec_b": nrm(next(keys), (C,), 0.1),
        "emb_table": build_embedding_table(TIME_DIM, MAX_STEPS),
        "p1_w": nrm(next(keys), (HID, 2 * TIME_DIM)), "p1_b": nrm(next(keys), (HID,)),
        "p2_w": nrm(next(keys), (HID, HID)),          "p2_b": nrm(next(keys), (HID,)),
        "c1_w": nrm(next(keys), (HID // 2, COND_LEN)), "c1_b": nrm(next(keys), (HID // 2,)),
        "c2_w": nrm(next(keys), (HID, HID // 2)),      "c2_b": nrm(next(keys), (HID,)),
        "skip_w": nrm(next(keys), (C, C), 0.3), "skip_b": nrm(next(keys), (C,), 0.1),
        "outp_w": nrm(next(keys), (1, C), 0.3), "outp_b": nrm(next(keys), (1,), 0.1),
        "layers": [],
    }
    for _ in range(N_LAYERS):
        tp["layers"].append({
            "conv_w": nrm(next(keys), (2 * C, C, 3), 0.2),
            "conv_b": nrm(next(keys), (2 * C,), 0.1),
            "diff_w": nrm(next(keys), (C, HID)),      "diff_b": nrm(next(keys), (C,)),
            "cond_w": nrm(next(keys), (2 * C, HID)),  "cond_b": nrm(next(keys), (2 * C,)),
            "out_w": nrm(next(keys), (2 * C, C), 0.3), "out_b": nrm(next(keys), (2 * C,), 0.1),
        })

    eyeN = jnp.eye(NODES, dtype=jnp.float32)

    def tile_nodes(v):          # (D,) -> (1, NODES*D), node-major tiling
        return jnp.tile(v, NODES).reshape(1, -1)

    kp = {
        "theta": tp["theta"],
        "emb_table": tp["emb_table"],
        "expand_w": jnp.kron(eyeN, tp["spec_w"].T),           # (N, N*C)
        "spec_bias": tile_nodes(tp["spec_b"]),                # (1, N*C)
        "p1_w": tp["p1_w"].T, "p1_b": tp["p1_b"].reshape(1, -1),
        "p2_w": tp["p2_w"].T, "p2_b": tp["p2_b"].reshape(1, -1),
        "c1_w": tp["c1_w"].T, "c1_b": tp["c1_b"].reshape(1, -1),
        "c2_w": tp["c2_w"].T, "c2_b": tp["c2_b"].reshape(1, -1),
        "diff_w_all": jnp.concatenate([lp["diff_w"].T for lp in tp["layers"]], axis=1),
        "diff_b_all": jnp.concatenate([lp["diff_b"] for lp in tp["layers"]]).reshape(1, -1),
        "cond_w_all": jnp.concatenate([lp["cond_w"].T for lp in tp["layers"]], axis=1),
        "cond_b_all": jnp.concatenate([lp["cond_b"] for lp in tp["layers"]]).reshape(1, -1),
        "skip_full": jnp.kron(eyeN, tp["skip_w"].T),          # (NC, NC) block-diag
        "skip_bias": tile_nodes(tp["skip_b"]),
        "outp_full": jnp.kron(eyeN, tp["outp_w"].T),          # (NC, N)
        "outp_bias": jnp.full((1, NODES), tp["outp_b"][0], jnp.float32),
    }

    conv_fulls, out_fulls, out_biases, conv_wsums, conv_bs = [], [], [], [], []
    for i, lp in enumerate(tp["layers"]):
        d = 2 ** (i % DIL_CYCLE)
        w_t = jnp.transpose(lp["conv_w"], (2, 1, 0))          # (3, Cin, Cout=2C)
        gate = jnp.zeros((NC, NC), jnp.float32)
        filt = jnp.zeros((NC, NC), jnp.float32)
        for k in range(3):
            # out[n] pulls from source node (n + (k-1)*d) % N  -> block-circulant matrix
            P = jnp.roll(eyeN, (k - 1) * d, axis=0)
            gate = gate + jnp.kron(P, w_t[k, :, :C])
            filt = filt + jnp.kron(P, w_t[k, :, C:])
        conv_fulls.append(jnp.concatenate([gate, filt], axis=1))       # (NC, 2NC) [gate|filt]
        ow_t = lp["out_w"].T                                           # (C, 2C)
        out_fulls.append(jnp.concatenate([jnp.kron(eyeN, ow_t[:, :C]),
                                          jnp.kron(eyeN, ow_t[:, C:])], axis=1))
        out_biases.append(jnp.concatenate([tile_nodes(lp["out_b"][:C]),
                                           tile_nodes(lp["out_b"][C:])], axis=1))
        conv_wsums.append(w_t.sum(axis=0))                             # (C, 2C)
        conv_bs.append(lp["conv_b"])
    kp["conv_full"] = jnp.stack(conv_fulls)                            # (NL, NC, 2NC)
    kp["out_full"] = jnp.stack(out_fulls)                              # (NL, NC, 2NC)
    kp["out_bias"] = jnp.stack(out_biases)                             # (NL, 1, 2NC)
    kp["conv_wsum"] = jnp.stack(conv_wsums)                            # (NL, C, 2C)
    kp["conv_b"] = jnp.stack(conv_bs)                                  # (NL, 2C)
    return tp, kp


# =====================================================================================
# pure-JAX reference (mirrors the PyTorch forward semantics exactly)
# =====================================================================================
def reference_forward(tp, inputs, time, cond, Lambda):
    Bb, Ll, Nn = inputs.shape

    def leaky(v): return jnp.where(v >= 0, v, LEAKY_SLOPE * v)
    def silu(v): return v * jax.nn.sigmoid(v)

    lam = Lambda.reshape(-1, 1)
    ys = []
    for i in range(Ll):
        xi = inputs[:, i, :].reshape(Bb * Nn, 1)
        out = tp["theta"][0] * xi
        for it in range(1, K_CHEB):
            out = out + tp["theta"][it] * (lam ** it) * xi
        out = out @ tp["spec_w"].T + tp["spec_b"]
        ys.append(out.reshape(Bb, Nn, C))
    x = leaky(jnp.stack(ys, axis=1))                                 # (B, L, N, C)

    e = tp["emb_table"][time]                                        # (B, 1, 2*TIME_DIM)
    e = silu(e @ tp["p1_w"].T + tp["p1_b"])
    demb = silu(e @ tp["p2_w"].T + tp["p2_b"])                       # (B, 1, HID)

    cu = leaky(cond @ tp["c1_w"].T + tp["c1_b"])
    cu = leaky(cu @ tp["c2_w"].T + tp["c2_b"])                       # (B, L, N, HID)

    skips = []
    for i in range(N_LAYERS):
        lp = tp["layers"][i]
        d = 2 ** (i % DIL_CYCLE)
        dstep = (demb @ lp["diff_w"].T + lp["diff_b"])[:, :, None, :]
        conditioner = cu @ lp["cond_w"].T + lp["cond_b"]
        y = x + dstep
        y = jnp.transpose(y, (0, 1, 3, 2)).reshape(Bb * Ll, C, Nn)
        yp = jnp.concatenate([y[..., Nn - d:], y, y[..., :d]], axis=-1)   # circular pad
        conv = jax.lax.conv_general_dilated(
            yp, lp["conv_w"], window_strides=(1,), padding="VALID",
            rhs_dilation=(d,), dimension_numbers=("NCH", "OIH", "NCH"))
        conv = conv + lp["conv_b"][None, :, None]
        y = jnp.transpose(conv, (0, 2, 1)).reshape(Bb, Ll, Nn, 2 * C) + conditioner
        gate, filt = y[..., :C], y[..., C:]
        y = jax.nn.sigmoid(gate) * jnp.tanh(filt)
        y = leaky(y @ lp["out_w"].T + lp["out_b"])
        residual, skip = y[..., :C], y[..., C:]
        x = (x + residual) / math.sqrt(2.0)
        skips.append(skip)

    s = sum(skips) / math.sqrt(N_LAYERS)
    s = leaky(s @ tp["skip_w"].T + tp["skip_b"])
    out = s @ tp["outp_w"].T + tp["outp_b"]
    return out[..., 0]


if __name__ == "__main__":
    key = jax.random.PRNGKey(0)
    pkey, dkey = jax.random.split(key)
    tp, kp = init_params(pkey)

    k1, k2, k3, k4 = jax.random.split(dkey, 4)
    inputs = jax.random.normal(k1, (B, L, NODES), jnp.float32)
    time = jax.random.randint(k2, (B, 1), 0, MAX_STEPS, dtype=jnp.int32)
    cond = jax.random.normal(k3, (B, L, NODES, COND_LEN), jnp.float32)
    Lambda = jax.random.uniform(k4, (B * NODES,), jnp.float32, minval=0.0, maxval=2.0)
    # edge_index / edge_weight are accepted by the PyTorch forward but never used
    # (only the SpecConv branch of GraphBatchInputProjection is evaluated), so they are omitted.

    fwd = jax.jit(forward_pallas)
    out = jax.block_until_ready(fwd(kp, inputs, time, cond, Lambda))

    ref = reference_forward(tp, inputs, time, cond, Lambda)
    assert out.shape == (B, L, NODES), out.shape
    err = float(jnp.max(jnp.abs(out - ref)))
    assert err < 2e-2, f"max abs err {err}"
    print("KERNEL_OK")
</pallas_src>

<mosaic_0001>
module attributes {stable_mosaic.version = 11 : i64} {
  func.func @_pre_kernel(%arg0: memref<2x32xf32, #tpu.memory_space<vmem>>, %arg1: memref<32x64xf32, #tpu.memory_space<vmem>>, %arg2: memref<1x64xf32, #tpu.memory_space<vmem>>, %arg3: memref<64x64xf32, #tpu.memory_space<vmem>>, %arg4: memref<1x64xf32, #tpu.memory_space<vmem>>, %arg5: memref<64x64xf32, #tpu.memory_space<vmem>>, %arg6: memref<1x64xf32, #tpu.memory_space<vmem>>, %arg7: memref<256x24xf32, #tpu.memory_space<vmem>>, %arg8: memref<24x32xf32, #tpu.memory_space<vmem>>, %arg9: memref<1x32xf32, #tpu.memory_space<vmem>>, %arg10: memref<32x64xf32, #tpu.memory_space<vmem>>, %arg11: memref<1x64xf32, #tpu.memory_space<vmem>>, %arg12: memref<64x128xf32, #tpu.memory_space<vmem>>, %arg13: memref<1x128xf32, #tpu.memory_space<vmem>>, %arg14: memref<2x64xf32, #tpu.memory_space<vmem>>, %arg15: memref<256x128xf32, #tpu.memory_space<vmem>>) attributes {dimension_semantics = [], scalar_prefetch = 0 : i64, scratch_operands = 0 : i64, tpu.core_type = #tpu.core_type<tc>} {
    %c0 = arith.constant 0 : index
    %c0_0 = arith.constant 0 : index
    %0 = vector.load %arg0[%c0, %c0_0] : memref<2x32xf32, #tpu.memory_space<vmem>>, vector<2x32xf32>
    %c0_1 = arith.constant 0 : index
    %c0_2 = arith.constant 0 : index
    %1 = vector.load %arg1[%c0_1, %c0_2] : memref<32x64xf32, #tpu.memory_space<vmem>>, vector<32x64xf32>
    %cst = arith.constant dense<0.000000e+00> : vector<2x64xf32>
    %2 = tpu.matmul %0, %1, %cst {dimension_numbers = #tpu.dot_dimension_numbers<[1], [0], [0], [1], [0, 0, 1, 1], [], []>} : vector<2x32xf32>, vector<32x64xf32>, vector<2x64xf32> -> vector<2x64xf32>
    %c0_3 = arith.constant 0 : index
    %c0_4 = arith.constant 0 : index
    %3 = vector.load %arg2[%c0_3, %c0_4] : memref<1x64xf32, #tpu.memory_space<vmem>>, vector<1x64xf32>
    %4 = vector.broadcast %3 : vector<1x64xf32> to vector<2x64xf32>
    %5 = arith.addf %2, %4 : vector<2x64xf32>
    %6 = arith.negf %5 : vector<2x64xf32>
    %7 = math.exp %6 : vector<2x64xf32>
    %cst_5 = arith.constant 1.000000e+00 : f32
    %8 = vector.broadcast %cst_5 : f32 to vector<2x64xf32>
    %9 = arith.addf %8, %7 : vector<2x64xf32>
    %10 = arith.divf %8, %9 : vector<2x64xf32>
    %11 = arith.mulf %5, %10 : vector<2x64xf32>
    %c0_6 = arith.constant 0 : index
    %c0_7 = arith.constant 0 : index
    %12 = vector.load %arg3[%c0_6, %c0_7] : memref<64x64xf32, #tpu.memory_space<vmem>>, vector<64x64xf32>
    %cst_8 = arith.constant dense<0.000000e+00> : vector<2x64xf32>
    %13 = tpu.matmul %11, %12, %cst_8 {dimension_numbers = #tpu.dot_dimension_numbers<[1], [0], [0], [1], [0, 0, 1, 1], [], []>} : vector<2x64xf32>, vector<64x64xf32>, vector<2x64xf32> -> vector<2x64xf32>
    %c0_9 = arith.constant 0 : index
    %c0_10 = arith.constant 0 : index
    %14 = vector.load %arg4[%c0_9, %c0_10] : memref<1x64xf32, #tpu.memory_space<vmem>>, vector<1x64xf32>
    %15 = vector.broadcast %14 : vector<1x64xf32> to vector<2x64xf32>
    %16 = arith.addf %13, %15 : vector<2x64xf32>
    %17 = arith.negf %16 : vector<2x64xf32>
    %18 = math.exp %17 : vector<2x64xf32>
    %cst_11 = arith.constant 1.000000e+00 : f32
    %19 = vector.broadcast %cst_11 : f32 to vector<2x64xf32>
    %20 = arith.addf %19, %18 : vector<2x64xf32>
    %21 = arith.divf %19, %20 : vector<2x64xf32>
    %22 = arith.mulf %16, %21 : vector<2x64xf32>
    %c0_12 = arith.constant 0 : index
    %c0_13 = arith.constant 0 : index
    %23 = vector.load %arg5[%c0_12, %c0_13] : memref<64x64xf32, #tpu.memory_space<vmem>>, vector<64x64xf32>
    %cst_14 = arith.constant dense<0.000000e+00> : vector<2x64xf32>
    %24 = tpu.matmul %22, %23, %cst_14 {dimension_numbers = #tpu.dot_dimension_numbers<[1], [0], [0], [1], [0, 0, 1, 1], [], []>} : vector<2x64xf32>, vector<64x64xf32>, vector<2x64xf32> -> vector<2x64xf32>
    %c0_15 = arith.constant 0 : index
    %c0_16 = arith.constant 0 : index
    %25 = vector.load %arg6[%c0_15, %c0_16] : memref<1x64xf32, #tpu.memory_space<vmem>>, vector<1x64xf32>
    %26 = vector.broadcast %25 : vector<1x64xf32> to vector<2x64xf32>
    %27 = arith.addf %24, %26 : vector<2x64xf32>
    %c0_17 = arith.constant 0 : index
    %c0_18 = arith.constant 0 : index
    %28 = vector.load %arg14[%c0_17, %c0_18] : memref<2x64xf32, #tpu.memory_space<vmem>>, vector<2x64xf32>
    tpu.vector_store %arg14[%c0_17, %c0_18], %27 {strides = array<i32>} : memref<2x64xf32, #tpu.memory_space<vmem>>, vector<2x64xf32>,
    %c0_19 = arith.constant 0 : index
    %c0_20 = arith.constant 0 : index
    %29 = vector.load %arg7[%c0_19, %c0_20] : memref<256x24xf32, #tpu.memory_space<vmem>>, vector<256x24xf32>
    %c0_21 = arith.constant 0 : index
    %c0_22 = arith.constant 0 : index
    %30 = vector.load %arg8[%c0_21, %c0_22] : memref<24x32xf32, #tpu.memory_space<vmem>>, vector<24x32xf32>
    %cst_23 = arith.constant dense<0.000000e+00> : vector<256x32xf32>
    %31 = tpu.matmul %29, %30, %cst_23 {dimension_numbers = #tpu.dot_dimension_numbers<[1], [0], [0], [1], [0, 0, 1, 1], [], []>} : vector<256x24xf32>, vector<24x32xf32>, vector<256x32xf32> -> vector<256x32xf32>
    %c0_24 = arith.constant 0 : index
    %c0_25 = arith.constant 0 : index
    %32 = vector.load %arg9[%c0_24, %c0_25] : memref<1x32xf32, #tpu.memory_space<vmem>>, vector<1x32xf32>
    %33 = vector.broadcast %32 : vector<1x32xf32> to vector<256x32xf32>
    %34 = arith.addf %31, %33 : vector<256x32xf32>
    %cst_26 = arith.constant 0.000000e+00 : f32
    %35 = vector.broadcast %cst_26 : f32 to vector<256x32xf32>
    %36 = arith.cmpf oge, %34, %35 : vector<256x32xf32>
    %cst_27 = arith.constant 4.000000e-01 : f32
    %37 = vector.broadcast %cst_27 : f32 to vector<256x32xf32>
    %38 = arith.mulf %37, %34 : vector<256x32xf32>
    %39 = arith.select %36, %34, %38 : vector<256x32xi1>, vector<256x32xf32>
    %c0_28 = arith.constant 0 : index
    %c0_29 = arith.constant 0 : index
    %40 = vector.load %arg10[%c0_28, %c0_29] : memref<32x64xf32, #tpu.memory_space<vmem>>, vector<32x64xf32>
    %cst_30 = arith.constant dense<0.000000e+00> : vector<256x64xf32>
    %41 = tpu.matmul %39, %40, %cst_30 {dimension_numbers = #tpu.dot_dimension_numbers<[1], [0], [0], [1], [0, 0, 1, 1], [], []>} : vector<256x32xf32>, vector<32x64xf32>, vector<256x64xf32> -> vector<256x64xf32>
    %c0_31 = arith.constant 0 : index
    %c0_32 = arith.constant 0 : index
    %42 = vector.load %arg11[%c0_31, %c0_32] : memref<1x64xf32, #tpu.memory_space<vmem>>, vector<1x64xf32>
    %43 = vector.broadcast %42 : vector<1x64xf32> to vector<256x64xf32>
    %44 = arith.addf %41, %43 : vector<256x64xf32>
    %cst_33 = arith.constant 0.000000e+00 : f32
    %45 = vector.broadcast %cst_33 : f32 to vector<256x64xf32>
    %46 = arith.cmpf oge, %44, %45 : vector<256x64xf32>
    %cst_34 = arith.constant 4.000000e-01 : f32
    %47 = vector.broadcast %cst_34 : f32 to vector<256x64xf32>
    %48 = arith.mulf %47, %44 : vector<256x64xf32>
    %49 = arith.select %46, %44, %48 : vector<256x64xi1>, vector<256x64xf32>
    %c0_35 = arith.constant 0 : index
    %c0_36 = arith.constant 0 : index
    %50 = vector.load %arg12[%c0_35, %c0_36] : memref<64x128xf32, #tpu.memory_space<vmem>>, vector<64x128xf32>
    %cst_37 = arith.constant dense<0.000000e+00> : vector<256x128xf32>
    %51 = tpu.matmul %49, %50, %cst_37 {dimension_numbers = #tpu.dot_dimension_numbers<[1], [0], [0], [1], [0, 0, 1, 1], [], []>} : vector<256x64xf32>, vector<64x128xf32>, vector<256x128xf32> -> vector<256x128xf32>
    %c0_38 = arith.constant 0 : index
    %c0_39 = arith.constant 0 : index
    %52 = vector.load %arg13[%c0_38, %c0_39] : memref<1x128xf32, #tpu.memory_space<vmem>>, vector<1x128xf32>
    %53 = vector.broadcast %52 : vector<1x128xf32> to vector<256x128xf32>
    %54 = arith.addf %51, %53 : vector<256x128xf32>
    %c0_40 = arith.constant 0 : index
    %c0_41 = arith.constant 0 : index
    %55 = vector.load %arg15[%c0_40, %c0_41] : memref<256x128xf32, #tpu.memory_space<vmem>>, vector<256x128xf32>
    tpu.vector_store %arg15[%c0_40, %c0_41], %54 {strides = array<i32>} : memref<256x128xf32, #tpu.memory_space<vmem>>, vector<256x128xf32>,
    return
  }
}

module attributes {stable_mosaic.version = 11 : i64} {
  func.func @_stack_kernel(%arg0: i32, %arg1: memref<1x8x16xf32, #tpu.memory_space<vmem>>, %arg2: memref<1x1x16xf32, #tpu.memory_space<vmem>>, %arg3: memref<8x8x256xf32, #tpu.memory_space<vmem>>, %arg4: memref<16x128xf32, #tpu.memory_space<vmem>>, %arg5: memref<1x128xf32, #tpu.memory_space<vmem>>, %arg6: memref<8x128x256xf32, #tpu.memory_space<vmem>>, %arg7: memref<8x128x256xf32, #tpu.memory_space<vmem>>, %arg8: memref<8x1x256xf32, #tpu.memory_space<vmem>>, %arg9: memref<128x128xf32, #tpu.memory_space<vmem>>, %arg10: memref<1x128xf32, #tpu.memory_space<vmem>>, %arg11: memref<128x16xf32, #tpu.memory_space<vmem>>, %arg12: memref<1x16xf32, #tpu.memory_space<vmem>>, %arg13: memref<1x8x16xf32, #tpu.memory_space<vmem>>) attributes {dimension_semantics = [#tpu.dimension_semantics<parallel>], iteration_bounds = array<i64: 2>, scalar_prefetch = 0 : i64, scratch_operands = 0 : i64, tpu.core_type = #tpu.core_type<tc>, window_params = [{transform_indices = @transform_0, window_bounds = array<i64: 1, 8, 16>}, {transform_indices = @transform_1, window_bounds = array<i64: 1, 1, 16>}, {transform_indices = @transform_2, window_bounds = array<i64: 8, 8, 256>}, {pipeline_mode = #tpu.pipeline_mode<synchronous>, transform_indices = @transform_3, window_bounds = array<i64: 16, 128>}, {pipeline_mode = #tpu.pipeline_mode<synchronous>, transform_indices = @transform_4, window_bounds = array<i64: 1, 128>}, {pipeline_mode = #tpu.pipeline_mode<synchronous>, transform_indices = @transform_5, window_bounds = array<i64: 8, 128, 256>}, {pipeline_mode = #tpu.pipeline_mode<synchronous>, transform_indices = @transform_6, window_bounds = array<i64: 8, 128, 256>}, {pipeline_mode = #tpu.pipeline_mode<synchronous>, transform_indices = @transform_7, window_bounds = array<i64: 8, 1, 256>}, {pipeline_mode = #tpu.pipeline_mode<synchronous>, transform_indices = @transform_8, window_bounds = array<i64: 128, 128>}, {pipeline_mode = #tpu.pipeline_mode<synchronous>, transform_indices = @transform_9, window_bounds = array<i64: 1, 128>}, {pipeline_mode = #tpu.pipeline_mode<synchronous>, transform_indices = @transform_10, window_bounds = array<i64: 128, 16>}, {pipeline_mode = #tpu.pipeline_mode<synchronous>, transform_indices = @transform_11, window_bounds = array<i64: 1, 16>}, {transform_indices = @transform_12, window_bounds = array<i64: 1, 8, 16>}]} {
    %c0 = arith.constant 0 : index
    %c0_0 = arith.constant 0 : index
    %c0_1 = arith.constant 0 : index
    %0 = vector.load %arg1[%c0, %c0_0, %c0_1] : memref<1x8x16xf32, #tpu.memory_space<vmem>>, vector<1x8x16xf32>
    %1 = vector.shape_cast %0 : vector<1x8x16xf32> to vector<8x16xf32>
    %c0_2 = arith.constant 0 : index
    %c0_3 = arith.constant 0 : index
    %c0_4 = arith.constant 0 : index
    %2 = vector.load %arg2[%c0_2, %c0_3, %c0_4] : memref<1x1x16xf32, #tpu.memory_space<vmem>>, vector<1x1x16xf32>
    %3 = vector.shape_cast %2 : vector<1x1x16xf32> to vector<1x16xf32>
    %4 = vector.broadcast %3 : vector<1x16xf32> to vector<8x16xf32>
    %5 = arith.mulf %1, %4 : vector<8x16xf32>
    %c0_5 = arith.constant 0 : index
    %c0_6 = arith.constant 0 : index
    %6 = vector.load %arg4[%c0_5, %c0_6] : memref<16x128xf32, #tpu.memory_space<vmem>>, vector<16x128xf32>
    %cst = arith.constant dense<0.000000e+00> : vector<8x128xf32>
    %7 = tpu.matmul %5, %6, %cst {dimension_numbers = #tpu.dot_dimension_numbers<[1], [0], [0], [1], [0, 0, 1, 1], [], []>} : vector<8x16xf32>, vector<16x128xf32>, vector<8x128xf32> -> vector<8x128xf32>
    %c0_7 = arith.constant 0 : index
    %c0_8 = arith.constant 0 : index
    %8 = vector.load %arg5[%c0_7, %c0_8] : memref<1x128xf32, #tpu.memory_space<vmem>>, vector<1x128xf32>
    %9 = vector.broadcast %8 : vector<1x128xf32> to vector<8x128xf32>
    %10 = arith.addf %7, %9 : vector<8x128xf32>
    %cst_9 = arith.constant 0.000000e+00 : f32
    %11 = vector.broadcast %cst_9 : f32 to vector<8x128xf32>
    %12 = arith.cmpf oge, %10, %11 : vector<8x128xf32>
    %cst_10 = arith.constant 4.000000e-01 : f32
    %13 = vector.broadcast %cst_10 : f32 to vector<8x128xf32>
    %14 = arith.mulf %13, %10 : vector<8x128xf32>
    %15 = arith.select %12, %10, %14 : vector<8x128xi1>, vector<8x128xf32>
    %cst_11 = arith.constant 0.000000e+00 : f32
    %16 = vector.broadcast %cst_11 : f32 to vector<8x128xf32>
    %c0_12 = arith.constant 0 : index
    %c0_13 = arith.constant 0 : index
    %c0_14 = arith.constant 0 : index
    %17 = vector.load %arg6[%c0_12, %c0_13, %c0_14] : memref<8x128x256xf32, #tpu.memory_space<vmem>>, vector<1x128x256xf32>
    %18 = vector.shape_cast %17 : vector<1x128x256xf32> to vector<128x256xf32>
    %cst_15 = arith.constant dense<0.000000e+00> : vector<8x256xf32>
    %19 = tpu.matmul %15, %18, %cst_15 {dimension_numbers = #tpu.dot_dimension_numbers<[1], [0], [0], [1], [0, 0, 1, 1], [], []>} : vector<8x128xf32>, vector<128x256xf32>, vector<8x256xf32> -> vector<8x256xf32>
    %c0_16 = arith.constant 0 : index
    %c0_17 = arith.constant 0 : index
    %c0_18 = arith.constant 0 : index
    %20 = vector.load %arg3[%c0_16, %c0_17, %c0_18] : memref<8x8x256xf32, #tpu.memory_space<vmem>>, vector<1x8x256xf32>
    %21 = vector.shape_cast %20 : vector<1x8x256xf32> to vector<8x256xf32>
    %22 = arith.addf %19, %21 : vector<8x256xf32>
    %23 = vector.extract_strided_slice %22 {offsets = [0, 0], sizes = [8, 128], strides = [1, 1]} : vector<8x256xf32> to vector<8x128xf32>
    %24 = arith.negf %23 : vector<8x128xf32>
    %25 = math.exp %24 : vector<8x128xf32>
    %cst_19 = arith.constant 1.000000e+00 : f32
    %26 = vector.broadcast %cst_19 : f32 to vector<8x128xf32>
    %27 = arith.addf %26, %25 : vector<8x128xf32>
    %28 = arith.divf %26, %27 : vector<8x128xf32>
    %29 = vector.extract_strided_slice %22 {offsets = [0, 128], sizes = [8, 128], strides = [1, 1]} : vector<8x256xf32> to vector<8x128xf32>
    %30 = math.tanh %29 : vector<8x128xf32>
    %31 = arith.mulf %28, %30 : vector<8x128xf32>
    %c0_20 = arith.constant 0 : index
    %c0_21 = arith.constant 0 : index
    %c0_22 = arith.constant 0 : index
    %32 = vector.load %arg7[%c0_20, %c0_21, %c0_22] : memref<8x128x256xf32, #tpu.memory_space<vmem>>, vector<1x128x256xf32>
    %33 = vector.shape_cast %32 : vector<1x128x256xf32> to vector<128x256xf32>
    %cst_23 = arith.constant dense<0.000000e+00> : vector<8x256xf32>
    %34 = tpu.matmul %31, %33, %cst_23 {dimension_numbers = #tpu.dot_dimension_numbers<[1], [0], [0], [1], [0, 0, 1, 1], [], []>} : vector<8x128xf32>, vector<128x256xf32>, vector<8x256xf32> -> vector<8x256xf32>
    %c0_24 = arith.constant 0 : index
    %c0_25 = arith.constant 0 : index
    %c0_26 = arith.constant 0 : index
    %35 = vector.load %arg8[%c0_24, %c0_25, %c0_26] : memref<8x1x256xf32, #tpu.memory_space<vmem>>, vector<1x1x256xf32>
    %36 = vector.shape_cast %35 : vector<1x1x256xf32> to vector<1x256xf32>
    %37 = vector.broadcast %36 : vector<1x256xf32> to vector<8x256xf32>
    %38 = arith.addf %34, %37 : vector<8x256xf32>
    %cst_27 = arith.constant 0.000000e+00 : f32
    %39 = vector.broadcast %cst_27 : f32 to vector<8x256xf32>
    %40 = arith.cmpf oge, %38, %39 : vector<8x256xf32>
    %cst_28 = arith.constant 4.000000e-01 : f32
    %41 = vector.broadcast %cst_28 : f32 to vector<8x256xf32>
    %42 = arith.mulf %41, %38 : vector<8x256xf32>
    %43 = arith.select %40, %38, %42 : vector<8x256xi1>, vector<8x256xf32>
    %44 = vector.extract_strided_slice %43 {offsets = [0, 0], sizes = [8, 128], strides = [1, 1]} : vector<8x256xf32> to vector<8x128xf32>
    %45 = arith.addf %15, %44 : vector<8x128xf32>
    %cst_29 = arith.constant 0.707106769 : f32
    %46 = vector.broadcast %cst_29 : f32 to vector<8x128xf32>
    %47 = arith.mulf %45, %46 : vector<8x128xf32>
    %48 = vector.extract_strided_slice %43 {offsets = [0, 128], sizes = [8, 128], strides = [1, 1]} : vector<8x256xf32> to vector<8x128xf32>
    %49 = arith.addf %16, %48 : vector<8x128xf32>
    %c1 = arith.constant 1 : index
    %c0_30 = arith.constant 0 : index
    %c0_31 = arith.constant 0 : index
    %50 = vector.load %arg6[%c1, %c0_30, %c0_31] : memref<8x128x256xf32, #tpu.memory_space<vmem>>, vector<1x128x256xf32>
    %51 = vector.shape_cast %50 : vector<1x128x256xf32> to vector<128x256xf32>
    %cst_32 = arith.constant dense<0.000000e+00> : vector<8x256xf32>
    %52 = tpu.matmul %47, %51, %cst_32 {dimension_numbers = #tpu.dot_dimension_numbers<[1], [0], [0], [1], [0, 0, 1, 1], [], []>} : vector<8x128xf32>, vector<128x256xf32>, vector<8x256xf32> -> vector<8x256xf32>
    %c1_33 = arith.constant 1 : index
    %c0_34 = arith.constant 0 : index
    %c0_35 = arith.constant 0 : index
    %53 = vector.load %arg3[%c1_33, %c0_34, %c0_35] : memref<8x8x256xf32, #tpu.memory_space<vmem>>, vector<1x8x256xf32>
    %54 = vector.shape_cast %53 : vector<1x8x256xf32> to vector<8x256xf32>
    %55 = arith.addf %52, %54 : vector<8x256xf32>
    %56 = vector.extract_strided_slice %55 {offsets = [0, 0], sizes = [8, 128], strides = [1, 1]} : vector<8x256xf32> to vector<8x128xf32>
    %57 = arith.negf %56 : vector<8x128xf32>
    %58 = math.exp %57 : vector<8x128xf32>
    %cst_36 = arith.constant 1.000000e+00 : f32
    %59 = vector.broadcast %cst_36 : f32 to vector<8x128xf32>
    %60 = arith.addf %59, %58 : vector<8x128xf32>
    %61 = arith.divf %59, %60 : vector<8x128xf32>
    %62 = vector.extract_strided_slice %55 {offsets = [0, 128], sizes = [8, 128], strides = [1, 1]} : vector<8x256xf32> to vector<8x128xf32>
    %63 = math.tanh %62 : vector<8x128xf32>
    %64 = arith.mulf %61, %63 : vector<8x128xf32>
    %c1_37 = arith.constant 1 : index
    %c0_38 = arith.constant 0 : index
    %c0_39 = arith.constant 0 : index
    %65 = vector.load %arg7[%c1_37, %c0_38, %c0_39] : memref<8x128x256xf32, #tpu.memory_space<vmem>>, vector<1x128x256xf32>
    %66 = vector.shape_cast %65 : vector<1x128x256xf32> to vector<128x256xf32>
    %cst_40 = arith.constant dense<0.000000e+00> : vector<8x256xf32>
    %67 = tpu.matmul %64, %66, %cst_40 {dimension_numbers = #tpu.dot_dimension_numbers<[1], [0], [0], [1], [0, 0, 1, 1], [], []>} : vector<8x128xf32>, vector<128x256xf32>, vector<8x256xf32> -> vector<8x256xf32>
    %c1_41 = arith.constant 1 : index
    %c0_42 = arith.constant 0 : index
    %c0_43 = arith.constant 0 : index
    %68 = vector.load %arg8[%c1_41, %c0_42, %c0_43] : memref<8x1x256xf32, #tpu.memory_space<vmem>>, vector<1x1x256xf32>
    %69 = vector.shape_cast %68 : vector<1x1x256xf32> to vector<1x256xf32>
    %70 = vector.broadcast %69 : vector<1x256xf32> to vector<8x256xf32>
    %71 = arith.addf %67, %70 : vector<8x256xf32>
    %cst_44 = arith.constant 0.000000e+00 : f32
    %72 = vector.broadcast %cst_44 : f32 to vector<8x256xf32>
    %73 = arith.cmpf oge, %71, %72 : vector<8x256xf32>
    %cst_45 = arith.constant 4.000000e-01 : f32
    %74 = vector.broadcast %cst_45 : f32 to vector<8x256xf32>
    %75 = arith.mulf %74, %71 : vector<8x256xf32>
    %76 = arith.select %73, %71, %75 : vector<8x256xi1>, vector<8x256xf32>
    %77 = vector.extract_strided_slice %76 {offsets = [0, 0], sizes = [8, 128], strides = [1, 1]} : vector<8x256xf32> to vector<8x128xf32>
    %78 = arith.addf %47, %77 : vector<8x128xf32>
    %cst_46 = arith.constant 0.707106769 : f32
    %79 = vector.broadcast %cst_46 : f32 to vector<8x128xf32>
    %80 = arith.mulf %78, %79 : vector<8x128xf32>
    %81 = vector.extract_strided_slice %76 {offsets = [0, 128], sizes = [8, 128], strides = [1, 1]} : vector<8x256xf32> to vector<8x128xf32>
    %82 = arith.addf %49, %81 : vector<8x128xf32>
    %c2 = arith.constant 2 : index
    %c0_47 = arith.constant 0 : index
    %c0_48 = arith.constant 0 : index
    %83 = vector.load %arg6[%c2, %c0_47, %c0_48] : memref<8x128x256xf32, #tpu.memory_space<vmem>>, vector<1x128x256xf32>
    %84 = vector.shape_cast %83 : vector<1x128x256xf32> to vector<128x256xf32>
    %cst_49 = arith.constant dense<0.000000e+00> : vector<8x256xf32>
    %85 = tpu.matmul %80, %84, %cst_49 {dimension_numbers = #tpu.dot_dimension_numbers<[1], [0], [0], [1], [0, 0, 1, 1], [], []>} : vector<8x128xf32>, vector<128x256xf32>, vector<8x256xf32> -> vector<8x256xf32>
    %c2_50 = arith.constant 2 : index
    %c0_51 = arith.constant 0 : index
    %c0_52 = arith.constant 0 : index
    %86 = vector.load %arg3[%c2_50, %c0_51, %c0_52] : memref<8x8x256xf32, #tpu.memory_space<vmem>>, vector<1x8x256xf32>
    %87 = vector.shape_cast %86 : vector<1x8x256xf32> to vector<8x256xf32>
    %88 = arith.addf %85, %87 : vector<8x256xf32>
    %89 = vector.extract_strided_slice %88 {offsets = [0, 0], sizes = [8, 128], strides = [1, 1]} : vector<8x256xf32> to vector<8x128xf32>
    %90 = arith.negf %89 : vector<8x128xf32>
    %91 = math.exp %90 : vector<8x128xf32>
    %cst_53 = arith.constant 1.000000e+00 : f32
    %92 = vector.broadcast %cst_53 : f32 to vector<8x128xf32>
    %93 = arith.addf %92, %91 : vector<8x128xf32>
    %94 = arith.divf %92, %93 : vector<8x128xf32>
    %95 = vector.extract_strided_slice %88 {offsets = [0, 128], sizes = [8, 128], strides = [1, 1]} : vector<8x256xf32> to vector<8x128xf32>
    %96 = math.tanh %95 : vector<8x128xf32>
    %97 = arith.mulf %94, %96 : vector<8x128xf32>
    %c2_54 = arith.constant 2 : index
    %c0_55 = arith.constant 0 : index
    %c0_56 = arith.constant 0 : index
    %98 = vector.load %arg7[%c2_54, %c0_55, %c0_56] : memref<8x128x256xf32, #tpu.memory_space<vmem>>, vector<1x128x256xf32>
    %99 = vector.shape_cast %98 : vector<1x128x256xf32> to vector<128x256xf32>
    %cst_57 = arith.constant dense<0.000000e+00> : vector<8x256xf32>
    %100 = tpu.matmul %97, %99, %cst_57 {dimension_numbers = #tpu.dot_dimension_numbers<[1], [0], [0], [1], [0, 0, 1, 1], [], []>} : vector<8x128xf32>, vector<128x256xf32>, vector<8x256xf32> -> vector<8x256xf32>
    %c2_58 = arith.constant 2 : index
    %c0_59 = arith.constant 0 : index
    %c0_60 = arith.constant 0 : index
    %101 = vector.load %arg8[%c2_58, %c0_59, %c0_60] : memref<8x1x256xf32, #tpu.memory_space<vmem>>, vector<1x1x256xf32>
    %102 = vector.shape_cast %101 : vector<1x1x256xf32> to vector<1x256xf32>
    %103 = vector.broadcast %102 : vector<1x256xf32> to vector<8x256xf32>
    %104 = arith.addf %100, %103 : vector<8x256xf32>
    %cst_61 = arith.constant 0.000000e+00 : f32
    %105 = vector.broadcast %cst_61 : f32 to vector<8x256xf32>
    %106 = arith.cmpf oge, %104, %105 : vector<8x256xf32>
    %cst_62 = arith.constant 4.000000e-01 : f32
    %107 = vector.broadcast %cst_62 : f32 to vector<8x256xf32>
    %108 = arith.mulf %107, %104 : vector<8x256xf32>
    %109 = arith.select %106, %104, %108 : vector<8x256xi1>, vector<8x256xf32>
    %110 = vector.extract_strided_slice %109 {offsets = [0, 0], sizes = [8, 128], strides = [1, 1]} : vector<8x256xf32> to vector<8x128xf32>
    %111 = arith.addf %80, %110 : vector<8x128xf32>
    %cst_63 = arith.constant 0.707106769 : f32
    %112 = vector.broadcast %cst_63 : f32 to vector<8x128xf32>
    %113 = arith.mulf %111, %112 : vector<8x128xf32>
    %114 = vector.extract_strided_slice %109 {offsets = [0, 128], sizes = [8, 128], strides = [1, 1]} : vector<8x256xf32> to vector<8x128xf32>
    %115 = arith.addf %82, %114 : vector<8x128xf32>
    %c3 = arith.constant 3 : index
    %c0_64 = arith.constant 0 : index
    %c0_65 = arith.constant 0 : index
    %116 = vector.load %arg6[%c3, %c0_64, %c0_65] : memref<8x128x256xf32, #tpu.memory_space<vmem>>, vector<1x128x256xf32>
    %117 = vector.shape_cast %116 : vector<1x128x256xf32> to vector<128x256xf32>
    %cst_66 = arith.constant dense<0.000000e+00> : vector<8x256xf32>
    %118 = tpu.matmul %113, %117, %cst_66 {dimension_numbers = #tpu.dot_dimension_numbers<[1], [0], [0], [1], [0, 0, 1, 1], [], []>} : vector<8x128xf32>, vector<128x256xf32>, vector<8x256xf32> -> vector<8x256xf32>
    %c3_67 = arith.constant 3 : index
    %c0_68 = arith.constant 0 : index
    %c0_69 = arith.constant 0 : index
    %119 = vector.load %arg3[%c3_67, %c0_68, %c0_69] : memref<8x8x256xf32, #tpu.memory_space<vmem>>, vector<1x8x256xf32>
    %120 = vector.shape_cast %119 : vector<1x8x256xf32> to vector<8x256xf32>
    %121 = arith.addf %118, %120 : vector<8x256xf32>
    %122 = vector.extract_strided_slice %121 {offsets = [0, 0], sizes = [8, 128], strides = [1, 1]} : vector<8x256xf32> to vector<8x128xf32>
    %123 = arith.negf %122 : vector<8x128xf32>
    %124 = math.exp %123 : vector<8x128xf32>
    %cst_70 = arith.constant 1.000000e+00 : f32
    %125 = vector.broadcast %cst_70 : f32 to vector<8x128xf32>
    %126 = arith.addf %125, %124 : vector<8x128xf32>
    %127 = arith.divf %125, %126 : vector<8x128xf32>
    %128 = vector.extract_strided_slice %121 {offsets = [0, 128], sizes = [8, 128], strides = [1, 1]} : vector<8x256xf32> to vector<8x128xf32>
    %129 = math.tanh %128 : vector<8x128xf32>
    %130 = arith.mulf %127, %129 : vector<8x128xf32>
    %c3_71 = arith.constant 3 : index
    %c0_72 = arith.constant 0 : index
    %c0_73 = arith.constant 0 : index
    %131 = vector.load %arg7[%c3_71, %c0_72, %c0_73] : memref<8x128x256xf32, #tpu.memory_space<vmem>>, vector<1x128x256xf32>
    %132 = vector.shape_cast %131 : vector<1x128x256xf32> to vector<128x256xf32>
    %cst_74 = arith.constant dense<0.000000e+00> : vector<8x256xf32>
    %133 = tpu.matmul %130, %132, %cst_74 {dimension_numbers = #tpu.dot_dimension_numbers<[1], [0], [0], [1], [0, 0, 1, 1], [], []>} : vector<8x128xf32>, vector<128x256xf32>, vector<8x256xf32> -> vector<8x256xf32>
    %c3_75 = arith.constant 3 : index
    %c0_76 = arith.constant 0 : index
    %c0_77 = arith.constant 0 : index
    %134 = vector.load %arg8[%c3_75, %c0_76, %c0_77] : memref<8x1x256xf32, #tpu.memory_space<vmem>>, vector<1x1x256xf32>
    %135 = vector.shape_cast %134 : vector<1x1x256xf32> to vector<1x256xf32>
    %136 = vector.broadcast %135 : vector<1x256xf32> to vector<8x256xf32>
    %137 = arith.addf %133, %136 : vector<8x256xf32>
    %cst_78 = arith.constant 0.000000e+00 : f32
    %138 = vector.broadcast %cst_78 : f32 to vector<8x256xf32>
    %139 = arith.cmpf oge, %137, %138 : vector<8x256xf32>
    %cst_79 = arith.constant 4.000000e-01 : f32
    %140 = vector.broadcast %cst_79 : f32 to vector<8x256xf32>
    %141 = arith.mulf %140, %137 : vector<8x256xf32>
    %142 = arith.select %139, %137, %141 : vector<8x256xi1>, vector<8x256xf32>
    %143 = vector.extract_strided_slice %142 {offsets = [0, 0], sizes = [8, 128], strides = [1, 1]} : vector<8x256xf32> to vector<8x128xf32>
    %144 = arith.addf %113, %143 : vector<8x128xf32>
    %cst_80 = arith.constant 0.707106769 : f32
    %145 = vector.broadcast %cst_80 : f32 to vector<8x128xf32>
    %146 = arith.mulf %144, %145 : vector<8x128xf32>
    %147 = vector.extract_strided_slice %142 {offsets = [0, 128], sizes = [8, 128], strides = [1, 1]} : vector<8x256xf32> to vector<8x128xf32>
    %148 = arith.addf %115, %147 : vector<8x128xf32>
    %c4 = arith.constant 4 : index
    %c0_81 = arith.constant 0 : index
    %c0_82 = arith.constant 0 : index
    %149 = vector.load %arg6[%c4, %c0_81, %c0_82] : memref<8x128x256xf32, #tpu.memory_space<vmem>>, vector<1x128x256xf32>
    %150 = vector.shape_cast %149 : vector<1x128x256xf32> to vector<128x256xf32>
    %cst_83 = arith.constant dense<0.000000e+00> : vector<8x256xf32>
    %151 = tpu.matmul %146, %150, %cst_83 {dimension_numbers = #tpu.dot_dimension_numbers<[1], [0], [0], [1], [0, 0, 1, 1], [], []>} : vector<8x128xf32>, vector<128x256xf32>, vector<8x256xf32> -> vector<8x256xf32>
    %c4_84 = arith.constant 4 : index
    %c0_85 = arith.constant 0 : index
    %c0_86 = arith.constant 0 : index
    %152 = vector.load %arg3[%c4_84, %c0_85, %c0_86] : memref<8x8x256xf32, #tpu.memory_space<vmem>>, vector<1x8x256xf32>
    %153 = vector.shape_cast %152 : vector<1x8x256xf32> to vector<8x256xf32>
    %154 = arith.addf %151, %153 : vector<8x256xf32>
    %155 = vector.extract_strided_slice %154 {offsets = [0, 0], sizes = [8, 128], strides = [1, 1]} : vector<8x256xf32> to vector<8x128xf32>
    %156 = arith.negf %155 : vector<8x128xf32>
    %157 = math.exp %156 : vector<8x128xf32>
    %cst_87 = arith.constant 1.000000e+00 : f32
    %158 = vector.broadcast %cst_87 : f32 to vector<8x128xf32>
    %159 = arith.addf %158, %157 : vector<8x128xf32>
    %160 = arith.divf %158, %159 : vector<8x128xf32>
    %161 = vector.extract_strided_slice %154 {offsets = [0, 128], sizes = [8, 128], strides = [1, 1]} : vector<8x256xf32> to vector<8x128xf32>
    %162 = math.tanh %161 : vector<8x128xf32>
    %163 = arith.mulf %160, %162 : vector<8x128xf32>
    %c4_88 = arith.constant 4 : index
    %c0_89 = arith.constant 0 : index
    %c0_90 = arith.constant 0 : index
    %164 = vector.load %arg7[%c4_88, %c0_89, %c0_90] : memref<8x128x256xf32, #tpu.memory_space<vmem>>, vector<1x128x256xf32>
    %165 = vector.shape_cast %164 : vector<1x128x256xf32> to vector<128x256xf32>
    %cst_91 = arith.constant dense<0.000000e+00> : vector<8x256xf32>
    %166 = tpu.matmul %163, %165, %cst_91 {dimension_numbers = #tpu.dot_dimension_numbers<[1], [0], [0], [1], [0, 0, 1, 1], [], []>} : vector<8x128xf32>, vector<128x256xf32>, vector<8x256xf32> -> vector<8x256xf32>
    %c4_92 = arith.constant 4 : index
    %c0_93 = arith.constant 0 : index
    %c0_94 = arith.constant 0 : index
    %167 = vector.load %arg8[%c4_92, %c0_93, %c0_94] : memref<8x1x256xf32, #tpu.memory_space<vmem>>, vector<1x1x256xf32>
    %168 = vector.shape_cast %167 : vector<1x1x256xf32> to vector<1x256xf32>
    %169 = vector.broadcast %168 : vector<1x256xf32> to vector<8x256xf32>
    %170 = arith.addf %166, %169 : vector<8x256xf32>
    %cst_95 = arith.constant 0.000000e+00 : f32
    %171 = vector.broadcast %cst_95 : f32 to vector<8x256xf32>
    %172 = arith.cmpf oge, %170, %171 : vector<8x256xf32>
    %cst_96 = arith.constant 4.000000e-01 : f32
    %173 = vector.broadcast %cst_96 : f32 to vector<8x256xf32>
    %174 = arith.mulf %173, %170 : vector<8x256xf32>
    %175 = arith.select %172, %170, %174 : vector<8x256xi1>, vector<8x256xf32>
    %176 = vector.extract_strided_slice %175 {offsets = [0, 0], sizes = [8, 128], strides = [1, 1]} : vector<8x256xf32> to vector<8x128xf32>
    %177 = arith.addf %146, %176 : vector<8x128xf32>
    %cst_97 = arith.constant 0.707106769 : f32
    %178 = vector.broadcast %cst_97 : f32 to vector<8x128xf32>
    %179 = arith.mulf %177, %178 : vector<8x128xf32>
    %180 = vector.extract_strided_slice %175 {offsets = [0, 128], sizes = [8, 128], strides = [1, 1]} : vector<8x256xf32> to vector<8x128xf32>
    %181 = arith.addf %148, %180 : vector<8x128xf32>
    %c5 = arith.constant 5 : index
    %c0_98 = arith.constant 0 : index
    %c0_99 = arith.constant 0 : index
    %182 = vector.load %arg6[%c5, %c0_98, %c0_99] : memref<8x128x256xf32, #tpu.memory_space<vmem>>, vector<1x128x256xf32>
    %183 = vector.shape_cast %182 : vector<1x128x256xf32> to vector<128x256xf32>
    %cst_100 = arith.constant dense<0.000000e+00> : vector<8x256xf32>
    %184 = tpu.matmul %179, %183, %cst_100 {dimension_numbers = #tpu.dot_dimension_numbers<[1], [0], [0], [1], [0, 0, 1, 1], [], []>} : vector<8x128xf32>, vector<128x256xf32>, vector<8x256xf32> -> vector<8x256xf32>
    %c5_101 = arith.constant 5 : index
    %c0_102 = arith.constant 0 : index
    %c0_103 = arith.constant 0 : index
    %185 = vector.load %arg3[%c5_101, %c0_102, %c0_103] : memref<8x8x256xf32, #tpu.memory_space<vmem>>, vector<1x8x256xf32>
    %186 = vector.shape_cast %185 : vector<1x8x256xf32> to vector<8x256xf32>
    %187 = arith.addf %184, %186 : vector<8x256xf32>
    %188 = vector.extract_strided_slice %187 {offsets = [0, 0], sizes = [8, 128], strides = [1, 1]} : vector<8x256xf32> to vector<8x128xf32>
    %189 = arith.negf %188 : vector<8x128xf32>
    %190 = math.exp %189 : vector<8x128xf32>
    %cst_104 = arith.constant 1.000000e+00 : f32
    %191 = vector.broadcast %cst_104 : f32 to vector<8x128xf32>
    %192 = arith.addf %191, %190 : vector<8x128xf32>
    %193 = arith.divf %191, %192 : vector<8x128xf32>
    %194 = vector.extract_strided_slice %187 {offsets = [0, 128], sizes = [8, 128], strides = [1, 1]} : vector<8x256xf32> to vector<8x128xf32>
    %195 = math.tanh %194 : vector<8x128xf32>
    %196 = arith.mulf %193, %195 : vector<8x128xf32>
    %c5_105 = arith.constant 5 : index
    %c0_106 = arith.constant 0 : index
    %c0_107 = arith.constant 0 : index
    %197 = vector.load %arg7[%c5_105, %c0_106, %c0_107] : memref<8x128x256xf32, #tpu.memory_space<vmem>>, vector<1x128x256xf32>
    %198 = vector.shape_cast %197 : vector<1x128x256xf32> to vector<128x256xf32>
    %cst_108 = arith.constant dense<0.000000e+00> : vector<8x256xf32>
    %199 = tpu.matmul %196, %198, %cst_108 {dimension_numbers = #tpu.dot_dimension_numbers<[1], [0], [0], [1], [0, 0, 1, 1], [], []>} : vector<8x128xf32>, vector<128x256xf32>, vector<8x256xf32> -> vector<8x256xf32>
    %c5_109 = arith.constant 5 : index
    %c0_110 = arith.constant 0 : index
    %c0_111 = arith.constant 0 : index
    %200 = vector.load %arg8[%c5_109, %c0_110, %c0_111] : memref<8x1x256xf32, #tpu.memory_space<vmem>>, vector<1x1x256xf32>
    %201 = vector.shape_cast %200 : vector<1x1x256xf32> to vector<1x256xf32>
    %202 = vector.broadcast %201 : vector<1x256xf32> to vector<8x256xf32>
    %203 = arith.addf %199, %202 : vector<8x256xf32>
    %cst_112 = arith.constant 0.000000e+00 : f32
    %204 = vector.broadcast %cst_112 : f32 to vector<8x256xf32>
    %205 = arith.cmpf oge, %203, %204 : vector<8x256xf32>
    %cst_113 = arith.constant 4.000000e-01 : f32
    %206 = vector.broadcast %cst_113 : f32 to vector<8x256xf32>
    %207 = arith.mulf %206, %203 : vector<8x256xf32>
    %208 = arith.select %205, %203, %207 : vector<8x256xi1>, vector<8x256xf32>
    %209 = vector.extract_strided_slice %208 {offsets = [0, 0], sizes = [8, 128], strides = [1, 1]} : vector<8x256xf32> to vector<8x128xf32>
    %210 = arith.addf %179, %209 : vector<8x128xf32>
    %cst_114 = arith.constant 0.707106769 : f32
    %211 = vector.broadcast %cst_114 : f32 to vector<8x128xf32>
    %212 = arith.mulf %210, %211 : vector<8x128xf32>
    %213 = vector.extract_strided_slice %208 {offsets = [0, 128], sizes = [8, 128], strides = [1, 1]} : vector<8x256xf32> to vector<8x128xf32>
    %214 = arith.addf %181, %213 : vector<8x128xf32>
    %c6 = arith.constant 6 : index
    %c0_115 = arith.constant 0 : index
    %c0_116 = arith.constant 0 : index
    %215 = vector.load %arg6[%c6, %c0_115, %c0_116] : memref<8x128x256xf32, #tpu.memory_space<vmem>>, vector<1x128x256xf32>
    %216 = vector.shape_cast %215 : vector<1x128x256xf32> to vector<128x256xf32>
    %cst_117 = arith.constant dense<0.000000e+00> : vector<8x256xf32>
    %217 = tpu.matmul %212, %216, %cst_117 {dimension_numbers = #tpu.dot_dimension_numbers<[1], [0], [0], [1], [0, 0, 1, 1], [], []>} : vector<8x128xf32>, vector<128x256xf32>, vector<8x256xf32> -> vector<8x256xf32>
    %c6_118 = arith.constant 6 : index
    %c0_119 = arith.constant 0 : index
    %c0_120 = arith.constant 0 : index
    %218 = vector.load %arg3[%c6_118, %c0_119, %c0_120] : memref<8x8x256xf32, #tpu.memory_space<vmem>>, vector<1x8x256xf32>
    %219 = vector.shape_cast %218 : vector<1x8x256xf32> to vector<8x256xf32>
    %220 = arith.addf %217, %219 : vector<8x256xf32>
    %221 = vector.extract_strided_slice %220 {offsets = [0, 0], sizes = [8, 128], strides = [1, 1]} : vector<8x256xf32> to vector<8x128xf32>
    %222 = arith.negf %221 : vector<8x128xf32>
    %223 = math.exp %222 : vector<8x128xf32>
    %cst_121 = arith.constant 1.000000e+00 : f32
    %224 = vector.broadcast %cst_121 : f32 to vector<8x128xf32>
    %225 = arith.addf %224, %223 : vector<8x128xf32>
    %226 = arith.divf %224, %225 : vector<8x128xf32>
    %227 = vector.extract_strided_slice %220 {offsets = [0, 128], sizes = [8, 128], strides = [1, 1]} : vector<8x256xf32> to vector<8x128xf32>
    %228 = math.tanh %227 : vector<8x128xf32>
    %229 = arith.mulf %226, %228 : vector<8x128xf32>
    %c6_122 = arith.constant 6 : index
    %c0_123 = arith.constant 0 : index
    %c0_124 = arith.constant 0 : index
    %230 = vector.load %arg7[%c6_122, %c0_123, %c0_124] : memref<8x128x256xf32, #tpu.memory_space<vmem>>, vector<1x128x256xf32>
    %231 = vector.shape_cast %230 : vector<1x128x256xf32> to vector<128x256xf32>
    %cst_125 = arith.constant dense<0.000000e+00> : vector<8x256xf32>
    %232 = tpu.matmul %229, %231, %cst_125 {dimension_numbers = #tpu.dot_dimension_numbers<[1], [0], [0], [1], [0, 0, 1, 1], [], []>} : vector<8x128xf32>, vector<128x256xf32>, vector<8x256xf32> -> vector<8x256xf32>
    %c6_126 = arith.constant 6 : index
    %c0_127 = arith.constant 0 : index
    %c0_128 = arith.constant 0 : index
    %233 = vector.load %arg8[%c6_126, %c0_127, %c0_128] : memref<8x1x256xf32, #tpu.memory_space<vmem>>, vector<1x1x256xf32>
    %234 = vector.shape_cast %233 : vector<1x1x256xf32> to vector<1x256xf32>
    %235 = vector.broadcast %234 : vector<1x256xf32> to vector<8x256xf32>
    %236 = arith.addf %232, %235 : vector<8x256xf32>
    %cst_129 = arith.constant 0.000000e+00 : f32
    %237 = vector.broadcast %cst_129 : f32 to vector<8x256xf32>
    %238 = arith.cmpf oge, %236, %237 : vector<8x256xf32>
    %cst_130 = arith.constant 4.000000e-01 : f32
    %239 = vector.broadcast %cst_130 : f32 to vector<8x256xf32>
    %240 = arith.mulf %239, %236 : vector<8x256xf32>
    %241 = arith.select %238, %236, %240 : vector<8x256xi1>, vector<8x256xf32>
    %242 = vector.extract_strided_slice %241 {offsets = [0, 0], sizes = [8, 128], strides = [1, 1]} : vector<8x256xf32> to vector<8x128xf32>
    %243 = arith.addf %212, %242 : vector<8x128xf32>
    %cst_131 = arith.constant 0.707106769 : f32
    %244 = vector.broadcast %cst_131 : f32 to vector<8x128xf32>
    %245 = arith.mulf %243, %244 : vector<8x128xf32>
    %246 = vector.extract_strided_slice %241 {offsets = [0, 128], sizes = [8, 128], strides = [1, 1]} : vector<8x256xf32> to vector<8x128xf32>
    %247 = arith.addf %214, %246 : vector<8x128xf32>
    %c7 = arith.constant 7 : index
    %c0_132 = arith.constant 0 : index
    %c0_133 = arith.constant 0 : index
    %248 = vector.load %arg6[%c7, %c0_132, %c0_133] : memref<8x128x256xf32, #tpu.memory_space<vmem>>, vector<1x128x256xf32>
    %249 = vector.shape_cast %248 : vector<1x128x256xf32> to vector<128x256xf32>
    %cst_134 = arith.constant dense<0.000000e+00> : vector<8x256xf32>
    %250 = tpu.matmul %245, %249, %cst_134 {dimension_numbers = #tpu.dot_dimension_numbers<[1], [0], [0], [1], [0, 0, 1, 1], [], []>} : vector<8x128xf32>, vector<128x256xf32>, vector<8x256xf32> -> vector<8x256xf32>
    %c7_135 = arith.constant 7 : index
    %c0_136 = arith.constant 0 : index
    %c0_137 = arith.constant 0 : index
    %251 = vector.load %arg3[%c7_135, %c0_136, %c0_137] : memref<8x8x256xf32, #tpu.memory_space<vmem>>, vector<1x8x256xf32>
    %252 = vector.shape_cast %251 : vector<1x8x256xf32> to vector<8x256xf32>
    %253 = arith.addf %250, %252 : vector<8x256xf32>
    %254 = vector.extract_strided_slice %253 {offsets = [0, 0], sizes = [8, 128], strides = [1, 1]} : vector<8x256xf32> to vector<8x128xf32>
    %255 = arith.negf %254 : vector<8x128xf32>
    %256 = math.exp %255 : vector<8x128xf32>
    %cst_138 = arith.constant 1.000000e+00 : f32
    %257 = vector.broadcast %cst_138 : f32 to vector<8x128xf32>
    %258 = arith.addf %257, %256 : vector<8x128xf32>
    %259 = arith.divf %257, %258 : vector<8x128xf32>
    %260 = vector.extract_strided_slice %253 {offsets = [0, 128], sizes = [8, 128], strides = [1, 1]} : vector<8x256xf32> to vector<8x128xf32>
    %261 = math.tanh %260 : vector<8x128xf32>
    %262 = arith.mulf %259, %261 : vector<8x128xf32>
    %c7_139 = arith.constant 7 : index
    %c0_140 = arith.constant 0 : index
    %c0_141 = arith.constant 0 : index
    %263 = vector.load %arg7[%c7_139, %c0_140, %c0_141] : memref<8x128x256xf32, #tpu.memory_space<vmem>>, vector<1x128x256xf32>
    %264 = vector.shape_cast %263 : vector<1x128x256xf32> to vector<128x256xf32>
    %cst_142 = arith.constant dense<0.000000e+00> : vector<8x256xf32>
    %265 = tpu.matmul %262, %264, %cst_142 {dimension_numbers = #tpu.dot_dimension_numbers<[1], [0], [0], [1], [0, 0, 1, 1], [], []>} : vector<8x128xf32>, vector<128x256xf32>, vector<8x256xf32> -> vector<8x256xf32>
    %c7_143 = arith.constant 7 : index
    %c0_144 = arith.constant 0 : index
    %c0_145 = arith.constant 0 : index
    %266 = vector.load %arg8[%c7_143, %c0_144, %c0_145] : memref<8x1x256xf32, #tpu.memory_space<vmem>>, vector<1x1x256xf32>
    %267 = vector.shape_cast %266 : vector<1x1x256xf32> to vector<1x256xf32>
    %268 = vector.broadcast %267 : vector<1x256xf32> to vector<8x256xf32>
    %269 = arith.addf %265, %268 : vector<8x256xf32>
    %cst_146 = arith.constant 0.000000e+00 : f32
    %270 = vector.broadcast %cst_146 : f32 to vector<8x256xf32>
    %271 = arith.cmpf oge, %269, %270 : vector<8x256xf32>
    %cst_147 = arith.constant 4.000000e-01 : f32
    %272 = vector.broadcast %cst_147 : f32 to vector<8x256xf32>
    %273 = arith.mulf %272, %269 : vector<8x256xf32>
    %274 = arith.select %271, %269, %273 : vector<8x256xi1>, vector<8x256xf32>
    %275 = vector.extract_strided_slice %274 {offsets = [0, 128], sizes = [8, 128], strides = [1, 1]} : vector<8x256xf32> to vector<8x128xf32>
    %276 = arith.addf %247, %275 : vector<8x128xf32>
    %cst_148 = arith.constant 0.353553385 : f32
    %277 = vector.broadcast %cst_148 : f32 to vector<8x128xf32>
    %278 = arith.mulf %276, %277 : vector<8x128xf32>
    %c0_149 = arith.constant 0 : index
    %c0_150 = arith.constant 0 : index
    %279 = vector.load %arg9[%c0_149, %c0_150] : memref<128x128xf32, #tpu.memory_space<vmem>>, vector<128x128xf32>
    %cst_151 = arith.constant dense<0.000000e+00> : vector<8x128xf32>
    %280 = tpu.matmul %278, %279, %cst_151 {dimension_numbers = #tpu.dot_dimension_numbers<[1], [0], [0], [1], [0, 0, 1, 1], [], []>} : vector<8x128xf32>, vector<128x128xf32>, vector<8x128xf32> -> vector<8x128xf32>
    %c0_152 = arith.constant 0 : index
    %c0_153 = arith.constant 0 : index
    %281 = vector.load %arg10[%c0_152, %c0_153] : memref<1x128xf32, #tpu.memory_space<vmem>>, vector<1x128xf32>
    %282 = vector.broadcast %281 : vector<1x128xf32> to vector<8x128xf32>
    %283 = arith.addf %280, %282 : vector<8x128xf32>
    %cst_154 = arith.constant 0.000000e+00 : f32
    %284 = vector.broadcast %cst_154 : f32 to vector<8x128xf32>
    %285 = arith.cmpf oge, %283, %284 : vector<8x128xf32>
    %cst_155 = arith.constant 4.000000e-01 : f32
    %286 = vector.broadcast %cst_155 : f32 to vector<8x128xf32>
    %287 = arith.mulf %286, %283 : vector<8x128xf32>
    %288 = arith.select %285, %283, %287 : vector<8x128xi1>, vector<8x128xf32>
    %c0_156 = arith.constant 0 : index
    %c0_157 = arith.constant 0 : index
    %289 = vector.load %arg11[%c0_156, %c0_157] : memref<128x16xf32, #tpu.memory_space<vmem>>, vector<128x16xf32>
    %cst_158 = arith.constant dense<0.000000e+00> : vector<8x16xf32>
    %290 = tpu.matmul %288, %289, %cst_158 {dimension_numbers = #tpu.dot_dimension_numbers<[1], [0], [0], [1], [0, 0, 1, 1], [], []>} : vector<8x128xf32>, vector<128x16xf32>, vector<8x16xf32> -> vector<8x16xf32>
    %c0_159 = arith.constant 0 : index
    %c0_160 = arith.constant 0 : index
    %291 = vector.load %arg12[%c0_159, %c0_160] : memref<1x16xf32, #tpu.memory_space<vmem>>, vector<1x16xf32>
    %292 = vector.broadcast %291 : vector<1x16xf32> to vector<8x16xf32>
    %293 = arith.addf %290, %292 : vector<8x16xf32>
    %c0_161 = arith.constant 0 : index
    %c0_162 = arith.constant 0 : index
    %c0_163 = arith.constant 0 : index
    %294 = vector.load %arg13[%c0_161, %c0_162, %c0_163] : memref<1x8x16xf32, #tpu.memory_space<vmem>>, vector<1x8x16xf32>
    %295 = vector.shape_cast %294 : vector<1x8x16xf32> to vector<8x16xf32>
    %296 = vector.shape_cast %293 : vector<8x16xf32> to vector<1x8x16xf32>
    tpu.vector_store %arg13[%c0_161, %c0_162, %c0_163], %296 {strides = array<i32>} : memref<1x8x16xf32, #tpu.memory_space<vmem>>, vector<1x8x16xf32>,
    return
  }
  func.func @transform_0(%arg0: i32) -> (i32, i32, i32) {
    %c0_i32 = arith.constant 0 : i32
    %c0_i32_0 = arith.constant 0 : i32
    %c0_i32_1 = arith.constant 0 : i32
    return %arg0, %c0_i32, %c0_i32_0 : i32, i32, i32
  }
  func.func @transform_1(%arg0: i32) -> (i32, i32, i32) {
    %c0_i32 = arith.constant 0 : i32
    %c0_i32_0 = arith.constant 0 : i32
    %c0_i32_1 = arith.constant 0 : i32
    return %arg0, %c0_i32, %c0_i32_0 : i32, i32, i32
  }
  func.func @transform_2(%arg0: i32) -> (i32, i32, i32) {
    %c0_i32 = arith.constant 0 : i32
    %c0_i32_0 = arith.constant 0 : i32
    %c0_i32_1 = arith.constant 0 : i32
    return %c0_i32, %arg0, %c0_i32_0 : i32, i32, i32
  }
  func.func @transform_3(%arg0: i32) -> (i32, i32) {
    %c0_i32 = arith.constant 0 : i32
    %c0_i32_0 = arith.constant 0 : i32
    %c0_i32_1 = arith.constant 0 : i32
    return %c0_i32, %c0_i32_0 : i32, i32
  }
  func.func @transform_4(%arg0: i32) -> (i32, i32) {
    %c0_i32 = arith.constant 0 : i32
    %c0_i32_0 = arith.constant 0 : i32
    %c0_i32_1 = arith.constant 0 : i32
    return %c0_i32, %c0_i32_0 : i32, i32
  }
  func.func @transform_5(%arg0: i32) -> (i32, i32, i32) {
    %c0_i32 = arith.constant 0 : i32
    %c0_i32_0 = arith.constant 0 : i32
    %c0_i32_1 = arith.constant 0 : i32
    %c0_i32_2 = arith.constant 0 : i32
    return %c0_i32, %c0_i32_0, %c0_i32_1 : i32, i32, i32
  }
  func.func @transform_6(%arg0: i32) -> (i32, i32, i32) {
    %c0_i32 = arith.constant 0 : i32
    %c0_i32_0 = arith.constant 0 : i32
    %c0_i32_1 = arith.constant 0 : i32
    %c0_i32_2 = arith.constant 0 : i32
    return %c0_i32, %c0_i32_0, %c0_i32_1 : i32, i32, i32
  }
  func.func @transform_7(%arg0: i32) -> (i32, i32, i32) {
    %c0_i32 = arith.constant 0 : i32
    %c0_i32_0 = arith.constant 0 : i32
    %c0_i32_1 = arith.constant 0 : i32
    %c0_i32_2 = arith.constant 0 : i32
    return %c0_i32, %c0_i32_0, %c0_i32_1 : i32, i32, i32
  }
  func.func @transform_8(%arg0: i32) -> (i32, i32) {
    %c0_i32 = arith.constant 0 : i32
    %c0_i32_0 = arith.constant 0 : i32
    %c0_i32_1 = arith.constant 0 : i32
    return %c0_i32, %c0_i32_0 : i32, i32
  }
  func.func @transform_9(%arg0: i32) -> (i32, i32) {
    %c0_i32 = arith.constant 0 : i32
    %c0_i32_0 = arith.constant 0 : i32
    %c0_i32_1 = arith.constant 0 : i32
    return %c0_i32, %c0_i32_0 : i32, i32
  }
  func.func @transform_10(%arg0: i32) -> (i32, i32) {
    %c0_i32 = arith.constant 0 : i32
    %c0_i32_0 = arith.constant 0 : i32
    %c0_i32_1 = arith.constant 0 : i32
    return %c0_i32, %c0_i32_0 : i32, i32
  }
  func.func @transform_11(%arg0: i32) -> (i32, i32) {
    %c0_i32 = arith.constant 0 : i32
    %c0_i32_0 = arith.constant 0 : i32
    %c0_i32_1 = arith.constant 0 : i32
    return %c0_i32, %c0_i32_0 : i32, i32
  }
  func.func @transform_12(%arg0: i32) -> (i32, i32, i32) {
    %c0_i32 = arith.constant 0 : i32
    %c0_i32_0 = arith.constant 0 : i32
    %c0_i32_1 = arith.constant 0 : i32
    return %arg0, %c0_i32, %c0_i32_0 : i32, i32, i32
  }
}

</mosaic_0001>

<bundles_post_ra>
// kernel: forward_pallas.2
= control target key start
LH: loop header
LB: loop body
LE: loop exit
PB: predicated region body
PF: predicated region fallthrough
CT: control target
= control target key end

     0   :  { %v2129_v0 = vmov 0.0|0.0   ;;  %vm2130_vm0 = vmmov 0   ;;  %v2131_v4 = vmov 0.0   ;;  %vm61_vm1 = vcmask 261120   ;;  %s2807_s1 = inlined_call_operand.vmem [shape: f32[32,64], index: 1, kind: input, shape index: {}]   ;;  %s2808_s0 = inlined_call_operand.vmem [shape: f32[2,32], index: 0, kind: input, shape index: {}]   ;;  %s2809_s3 = inlined_call_operand.vmem [shape: f32[64,64], index: 3, kind: input, shape index: {}]   ;;  %s2810_s2 = inlined_call_operand.vmem [shape: f32[1,64], index: 2, kind: input, shape index: {}]   ;;  %s2811_s5 = inlined_call_operand.vmem [shape: f32[64,64], index: 5, kind: input, shape index: {}]   ;;  %s2812_s8 = inlined_call_operand.vmem [shape: f32[24,32], index: 8, kind: input, shape index: {}]   ;;  %s2813_s7 = inlined_call_operand.vmem [shape: f32[256,24], index: 7, kind: input, shape index: {}]   ;;  %s2814_s4 = inlined_call_operand.vmem [shape: f32[1,64], index: 4, kind: input, shape index: {}]   ;;  %s2815_s10 = inlined_call_operand.vmem [shape: f32[32,64], index: 10, kind: input, shape index: {}]   ;;  %s2816_s12 = inlined_call_operand.vmem [shape: f32[64,128], index: 12, kind: input, shape index: {}]   ;;  %s2817_s6 = inlined_call_operand.vmem [shape: f32[1,64], index: 6, kind: input, shape index: {}]   ;;  %s2818_s14 = inlined_call_operand.vmem [shape: f32[2,64], index: 14, kind: output, shape index: {0}]   ;;  %s2819_s9 = inlined_call_operand.vmem [shape: f32[1,32], index: 9, kind: input, shape index: {}]   ;;  %s2820_s11 = inlined_call_operand.vmem [shape: f32[1,64], index: 11, kind: input, shape index: {}]   ;;  %s2821_s13 = inlined_call_operand.vmem [shape: f32[1,128], index: 13, kind: input, shape index: {}]   ;;  %s2822_s15 = inlined_call_operand.vmem [shape: f32[256,128], index: 15, kind: output, shape index: {1}]  }
   0x1   :  { %2056 = vmatprep.subr.bf16.mxu0 %v2129_v0  ;;  %v50_v1 = vld [vmem:[%s2807_s1] sm:$0xff]  ;;  %v51_v2 = vld [vmem:[%s2807_s1 + $0x8] sm:$0xff]  ;;  %v52_v3 = vld [vmem:[%s2807_s1 + $0x10] sm:$0xff]  ;;  %1841 = vmatprep.mubr.msk.f32.mxu0 %vm2130_vm0, %v2131_v4  ;;  %vm157_vm2 = vcmask 523264   ;;  %vm370_vm3 = vcmask 195584   ;;  %vm326_vm4 = vcmask 517120  }
   0x2   :  { %v2057_v5 = vpack.c.bf16 %v51_v2, %v50_v1  ;;  %v53_v6 = vld [vmem:[%s2807_s1 + $0x18] sm:$0xff]  ;;  %2062 = vmatprep.subr.bf16.mxu1 %v2129_v0  ;;  %1860 = vmatprep.mubr.msk.f32.mxu1 %vm2130_vm0, %v2131_v4  ;;  %v49_v8 = vld [vmem:[%s2808_s0] sm:$0x3]  ;;  %v143_v10 = vld [vmem:[%s2809_s3 + $0x8] sm:$0xff] }
   0x3   :  { %v2060_v7 = vpack.c.bf16 %v53_v6, %v52_v3  ;;  %v142_v9 = vld [vmem:[%s2809_s3] sm:$0xff]  ;;  %v144_v12 = vld [vmem:[%s2809_s3 + $0x10] sm:$0xff]  ;;  %v145_v13 = vld [vmem:[%s2809_s3 + $0x18] sm:$0xff] }
   0x4   :  { %2058 = vmatpush3.bf16.msra.mxu0 %v2057_v5  ;;  %v2063_v11 = vpack.c.bf16 %v143_v10, %v142_v9  ;;  %v2066_v14 = vpack.c.bf16 %v145_v13, %v144_v12  ;;  %v146_v15 = vld [vmem:[%s2809_s3 + $0x20] sm:$0xff]  ;;  %v147_v16 = vld [vmem:[%s2809_s3 + $0x28] sm:$0xff]  ;;  %v148_v18 = vld [vmem:[%s2809_s3 + $0x30] sm:$0xff] }
   0x5   :  { %2059 = vmatprep.subr.bf16.mxu0 %v2129_v0  ;;  %v2069_v17 = vpack.c.bf16 %v147_v16, %v146_v15  ;;  %v149_v19 = vld [vmem:[%s2809_s3 + $0x38] sm:$0xff]  ;;  %v1592_v21 = vld [vmem:[%s2810_s2] ss:$0 sm:$0xff]  ;;  %v239_v31 = vld [vmem:[%s2811_s5 + $0x8] sm:$0xff] }
   0x6   :  { %2064 = vmatpush3.bf16.msra.mxu1 %v2063_v11  ;;  %v2072_v20 = vpack.c.bf16 %v149_v19, %v148_v18  ;;  %v238_v30 = vld [vmem:[%s2811_s5] sm:$0xff]  ;;  %v240_v33 = vld [vmem:[%s2811_s5 + $0x10] sm:$0xff]  ;;  %v241_v34 = vld [vmem:[%s2811_s5 + $0x18] sm:$0xff] }
   0x7   :  { %2065 = vmatprep.subr.bf16.mxu1 %v2129_v0  ;;  %v2075_v32 = vpack.c.bf16 %v239_v31, %v238_v30  ;;  %v2078_v35 = vpack.c.bf16 %v241_v34, %v240_v33  ;;  %v242_v36 = vld [vmem:[%s2811_s5 + $0x20] sm:$0xff]  ;;  %v243_v37 = vld [vmem:[%s2811_s5 + $0x28] sm:$0xff]  ;;  %v244_v39 = vld [vmem:[%s2811_s5 + $0x30] sm:$0xff] }
   0x8   :  { %2061 = vmatpush3.bf16.msra.mxu0 %v2060_v7  ;;  %v2081_v38 = vpack.c.bf16 %v243_v37, %v242_v36  ;;  %v245_v40 = vld [vmem:[%s2811_s5 + $0x38] sm:$0xff]  ;;  %v360_v42 = vld [vmem:[%s2812_s8] sm:$0xff]  ;;  %v361_v43 = vld [vmem:[%s2812_s8 + $0x8] sm:$0xff] }
   0x9   :  { %2074 = vmatprep.subr.bf16.mxu0 %v2129_v0  ;;  %v2084_v41 = vpack.c.bf16 %v245_v40, %v244_v39  ;;  %v2086_v44 = vpack.c.bf16 %v361_v43, %v360_v42  ;;  %v2302_v45 = vld [vmem:[%s2812_s8 + $0x10] sm:$0xff]  ;;  %v343_v47 = vld [vmem:[%s2813_s7 + $0x78] sm:$0xff]  ;;  %v344_v48 = vld [vmem:[%s2813_s7 + $0x80] sm:$0xff] }
   0xa   :  { %2067 = vmatpush3.bf16.msra.mxu1 %v2066_v14  ;;  %v342_v46 = vld [vmem:[%s2813_s7 + $0x70] sm:$0xff]  ;;  %v345_v49 = vld [vmem:[%s2813_s7 + $0x88] sm:$0xff]  ;;  %v347_v51 = vld [vmem:[%s2813_s7 + $0x98] sm:$0xff] }
   0xb   :  { %1842 = vmatmul.mubr.msk.f32.vlgmr.msra.gmra.mrb[0].mxu0 %vm61_vm1, %v49_v8  ;;  %2068 = vmatprep.subr.bf16.mxu1 %v2129_v0  ;;  %v346_v50 = vld [vmem:[%s2813_s7 + $0x90] sm:$0xff]  ;;  %v348_v52 = vld [vmem:[%s2813_s7 + $0xa0] sm:$0xff]  ;;  %v349_v53 = vld [vmem:[%s2813_s7 + $0xa8] sm:$0xff] }
   0xc   :  { %1879 = vmatprep.mubr.msk.f32.mxu0 %vm2130_vm0, %v2131_v4  ;;  %2076 = vmatpush3.bf16.msra.mxu0 %v2075_v32  ;;  %v350_v54 = vld [vmem:[%s2813_s7 + $0xb0] sm:$0xff]  ;;  %v351_v55 = vld [vmem:[%s2813_s7 + $0xb8] sm:$0xff]  ;;  %v352_v56 = vld [vmem:[%s2813_s7 + $0xc0] sm:$0xff] }
   0xd   :  { %2077 = vmatprep.subr.bf16.mxu0 %v2129_v0  ;;  %v353_v57 = vld [vmem:[%s2813_s7 + $0xc8] sm:$0xff]  ;;  %v354_v58 = vld [vmem:[%s2813_s7 + $0xd0] sm:$0xff]  ;;  %v355_v59 = vld [vmem:[%s2813_s7 + $0xd8] sm:$0xff] }
   0xe   :  { %2070 = vmatpush3.bf16.msra.mxu1 %v2069_v17  ;;  %v356_v60 = vld [vmem:[%s2813_s7 + $0xe0] sm:$0xff]  ;;  %v357_v61 = vld [vmem:[%s2813_s7 + $0xe8] sm:$0xff]  ;;  %v358_v62 = vld [vmem:[%s2813_s7 + $0xf0] sm:$0xff] }
   0xf   :  { %2071 = vmatprep.subr.bf16.mxu1 %v2129_v0  ;;  %v359_v63 = vld [vmem:[%s2813_s7 + $0xf8] sm:$0xff]  ;;  %v328_v9 = vld [vmem:[%s2813_s7] sm:$0xff]  ;;  %v789_v11 = vld [vmem:[%s2815_s10 + $0x8] sm:$0xff] }
  0x10   :  { %2079 = vmatpush3.bf16.msra.mxu0 %v2078_v35  ;;  %v788_v10 = vld [vmem:[%s2815_s10] sm:$0xff]  ;;  %v790_v12 = vld [vmem:[%s2815_s10 + $0x10] sm:$0xff]  ;;  %v791_v13 = vld [vmem:[%s2815_s10 + $0x18] sm:$0xff] }
  0x11   :  { %2080 = vmatprep.subr.bf16.mxu0 %v2129_v0  ;;  %v2090_v14 = vpack.c.bf16 %v789_v11, %v788_v10  ;;  %v329_v15 = vld [vmem:[%s2813_s7 + $0x8] sm:$0xff]  ;;  %v330_v16 = vld [vmem:[%s2813_s7 + $0x10] sm:$0xff]  ;;  %v2094_v17 = vpack.c.bf16 %v791_v13, %v790_v12  ;;  %v331_v18 = vld [vmem:[%s2813_s7 + $0x18] sm:$0xff] }
  0x12   :  { %2073 = vmatpush3.bf16.msra.mxu1 %v2072_v20  ;;  %v332_v19 = vld [vmem:[%s2813_s7 + $0x20] sm:$0xff]  ;;  %v333_v20 = vld [vmem:[%s2813_s7 + $0x28] sm:$0xff] }
  0x13   :  { %2114 = vmatprep.subr.bf16.mxu1 %v2086_v44 }
  0x14   :  { %2082 = vmatpush3.bf16.msra.mxu0 %v2081_v38 }
  0x15   :  { %2083 = vmatprep.subr.bf16.mxu0 %v2129_v0  ;;  %v1595_v0 = vld [vmem:[%s2814_s4] ss:$0 sm:$0xff] }
  0x18   :  { %2085 = vmatpush3.bf16.msra.mxu0 %v2084_v41 }
  0x19   :  { %2087 = vmatprep.subr.bf16.mxu0 %v2086_v44 }
  0xde   :  { %v131_v22 = vpop.f32.mrb[0].mxu0 }
  0xdf   :  { %v132_v23 = vadd.f32 %v1592_v21, %v131_v22  ;;  %v1843_v24 = vpop.f32.mrb[1].mxu0  ;;  %v334_v21 = vld [vmem:[%s2813_s7 + $0x30] sm:$0xff]  ;;  %v335_v22 = vld [vmem:[%s2813_s7 + $0x38] sm:$0xff] }
  0xe0   :  { %v337_v24 = vld [vmem:[%s2813_s7 + $0x48] sm:$0xff] }
  0xe1   :  { %v1594_v25 = vmul.f32 -1.442695, %v132_v23 }
  0xe3   :  { %2121 = vpow2.f32 %v1594_v25  ;;  %v338_v25 = vld [vmem:[%s2813_s7 + $0x50] sm:$0xff] }
  0xed   :  { %v2122_v26 = vpop.eup %2121 }
  0xee   :  { %v138_v27 = vadd.f32 1.0, %v2122_v26  ;;  %v339_v26 = vld [vmem:[%s2813_s7 + $0x58] sm:$0xff] }
  0xf0   :  { %2123 = vrcp.f32 %v138_v27  ;;  %v340_v27 = vld [vmem:[%s2813_s7 + $0x60] sm:$0xff] }
  0xfa   :  { %v2124_v28 = vpop.eup %2123 }
  0xfb   :  { %v141_v29 = vmul.f32 %v2124_v28, %v132_v23  ;;  %v336_v23 = vld [vmem:[%s2813_s7 + $0x40] sm:$0xff]  ;;  %v341_v28 = vld [vmem:[%s2813_s7 + $0x68] sm:$0xff] }
  0xfd   :  { %1861 = vmatmul.mubr.msk.f32.vlgmr.msra.gmra.mrb[0].mxu1 %vm157_vm2, %v141_v29 }
  0xfe   :  { %2116 = vmatpush3.bf16.msra.mxu1 %v2086_v44  ;;  %1909 = vmatprep.mubr.msk.f32.mxu1 %vm370_vm3, %v342_v46 }
  0xff   :  { %2115 = vmatprep.subr.mxu1 %v2302_v45 }
 0x102   :  { %2117 = vmatpush3.msra.mxu1 %v2302_v45 }
 0x103   :  { %1910 = vmatmul.mubr.msk.f32.vlgmr.msra.gmra.mrb[2].mxu1 %vm370_vm3, %v343_v47  ;;  %v1216_v47 = vld [vmem:[%s2816_s12] sm:$0xff] }
 0x104   :  { %1912 = vmatprep.mubr.msk.f32.mxu1 %vm370_vm3, %v344_v48  ;;  %v1217_v48 = vld [vmem:[%s2816_s12 + $0x8] sm:$0xff] }
 0x107   :  { %1913 = vmatmul.mubr.msk.f32.gmra.mrb[4].mxu1 %vm370_vm3, %v345_v49  ;;  %v1218_v49 = vld [vmem:[%s2816_s12 + $0x10] sm:$0xff] }
 0x108   :  { %1915 = vmatprep.mubr.msk.f32.mxu1 %vm370_vm3, %v346_v50  ;;  %v2098_v50 = vpack.c.bf16 %v1217_v48, %v1216_v47 }
 0x10a   :  { %2099 = vmatprep.subr.bf16.mxu1 %v2098_v50 }
 0x10b   :  { %1916 = vmatmul.mubr.msk.f32.gmra.mrb[6].mxu1 %vm370_vm3, %v347_v51  ;;  %v1219_v51 = vld [vmem:[%s2816_s12 + $0x18] sm:$0xff] }
 0x10c   :  { %1918 = vmatprep.mubr.msk.f32.mxu1 %vm370_vm3, %v348_v52  ;;  %v2102_v52 = vpack.c.bf16 %v1219_v51, %v1218_v49  ;;  %2101 = vmatpush3.bf16.msra.mxu1 %v2098_v50 }
 0x10e   :  { %2103 = vmatprep.subr.bf16.mxu1 %v2102_v52 }
 0x10f   :  { %1919 = vmatmul.mubr.msk.f32.gmra.mrb[8].mxu1 %vm370_vm3, %v349_v53  ;;  %v1220_v53 = vld [vmem:[%s2816_s12 + $0x20] sm:$0xff] }
 0x110   :  { %1921 = vmatprep.mubr.msk.f32.mxu1 %vm370_vm3, %v350_v54  ;;  %v1221_v54 = vld [vmem:[%s2816_s12 + $0x28] sm:$0xff]  ;;  %2105 = vmatpush3.bf16.msra.mxu1 %v2102_v52 }
 0x113   :  { %1922 = vmatmul.mubr.msk.f32.gmra.mrb[10].mxu1 %vm370_vm3, %v351_v55  ;;  %v2106_v55 = vpack.c.bf16 %v1221_v54, %v1220_v53 }
 0x114   :  { %1924 = vmatprep.mubr.msk.f32.mxu1 %vm370_vm3, %v352_v56  ;;  %v1222_v56 = vld [vmem:[%s2816_s12 + $0x30] sm:$0xff] }
 0x115   :  { %2107 = vmatprep.subr.bf16.mxu1 %v2106_v55 }
 0x116   :  { %2109 = vmatpush3.bf16.msra.mxu1 %v2106_v55 }
 0x117   :  { %1925 = vmatmul.mubr.msk.f32.gmra.mrb[12].mxu1 %vm370_vm3, %v353_v57  ;;  %v1223_v57 = vld [vmem:[%s2816_s12 + $0x38] sm:$0xff] }
 0x118   :  { %1927 = vmatprep.mubr.msk.f32.mxu1 %vm370_vm3, %v354_v58  ;;  %v2110_v58 = vpack.c.bf16 %v1223_v57, %v1222_v56 }
 0x11a   :  { %2111 = vmatprep.subr.bf16.mxu1 %v2110_v58 }
 0x11b   :  { %1928 = vmatmul.mubr.msk.f32.gmra.mrb[14].mxu1 %vm370_vm3, %v355_v59  ;;  %v1598_v59 = vld [vmem:[%s2817_s6] ss:$0 sm:$0xff] }
 0x11c   :  { %1930 = vmatprep.mubr.msk.f32.mxu1 %vm370_vm3, %v356_v60  ;;  %2113 = vmatpush3.bf16.msra.mxu1 %v2110_v58 }
 0x11f   :  { %1931 = vmatmul.mubr.msk.f32.gmra.mrb[16].mxu1 %vm370_vm3, %v357_v61 }
 0x120   :  { %1933 = vmatprep.mubr.msk.f32.mxu1 %vm370_vm3, %v358_v62 }
 0x123   :  { %1934 = vmatmul.mubr.msk.f32.gmra.mrb[18].mxu1 %vm370_vm3, %v359_v63  ;;  %v2521_v63 = vld [vmem:[%s2819_s9] ss:$0 sm:$0xff] }
 0x1d0   :  { %v227_v1 = vpop.f32.mrb[0].mxu1 }
 0x1d1   :  { %v228_v2 = vadd.f32 %v1595_v0, %v227_v1  ;;  %v1862_v3 = vpop.f32.mrb[1].mxu1 }
 0x1d3   :  { %v1597_v4 = vmul.f32 -1.442695, %v228_v2 }
 0x1d5   :  { %2125 = vpow2.f32 %v1597_v4 }
 0x1d6   :  { %v2452_v29 = vpop.f32.mrb[2].mxu1 }
 0x1d7   :  { %v2454_v30 = vpop.f32.mrb[3].mxu1 }
 0x1da   :  { %v2456_v31 = vpop.f32.mrb[4].mxu1 }
 0x1db   :  { %v2458_v32 = vpop.f32.mrb[5].mxu1 }
 0x1de   :  { %v2460_v33 = vpop.f32.mrb[6].mxu1 }
 0x1df   :  { %v2126_v5 = vpop.eup %2125  ;;  %v2462_v34 = vpop.f32.mrb[7].mxu1 }
 0x1e0   :  { %v234_v6 = vadd.f32 1.0, %v2126_v5 }
 0x1e2   :  { %2127 = vrcp.f32 %v234_v6  ;;  %v2464_v35 = vpop.f32.mrb[8].mxu1 }
 0x1e3   :  { %v2466_v36 = vpop.f32.mrb[9].mxu1 }
 0x1e6   :  { %v2468_v37 = vpop.f32.mrb[10].mxu1 }
 0x1e7   :  { %v2470_v38 = vpop.f32.mrb[11].mxu1 }
 0x1ea   :  { %v2472_v39 = vpop.f32.mrb[12].mxu1 }
 0x1eb   :  { %v2474_v40 = vpop.f32.mrb[13].mxu1 }
 0x1ec   :  { %v2128_v7 = vpop.eup %2127 }
 0x1ed   :  { %v237_v8 = vmul.f32 %v2128_v7, %v228_v2 }
 0x1ee   :  { %v2476_v41 = vpop.f32.mrb[14].mxu1 }
 0x1ef   :  { %1880 = vmatmul.mubr.msk.f32.vlgmr.msra.gmra.mrb[2].mxu0 %vm157_vm2, %v237_v8  ;;  %v2478_v42 = vpop.f32.mrb[15].mxu1 }
 0x1f0   :  { %2089 = vmatpush3.bf16.msra.mxu0 %v2086_v44  ;;  %1888 = vmatprep.mubr.msk.f32.mxu0 %vm370_vm3, %v328_v9 }
 0x1f1   :  { %1886 = vmatprep.subr.mxu0 %v2302_v45 }
 0x1f2   :  { %v2480_v43 = vpop.f32.mrb[16].mxu1 }
 0x1f3   :  { %v2482_v44 = vpop.f32.mrb[17].mxu1 }
 0x1f4   :  { %1887 = vmatpush3.msra.mxu0 %v2302_v45 }
 0x1f5   :  { %1889 = vmatmul.mubr.msk.f32.vlgmr.msra.gmra.mrb[4].mxu0 %vm370_vm3, %v329_v15  ;;  %2091 = vmatprep.subr.bf16.mxu0 %v2090_v14 }
 0x1f6   :  { %1891 = vmatprep.mubr.msk.f32.mxu0 %vm370_vm3, %v330_v16  ;;  %2093 = vmatpush3.bf16.msra.mxu0 %v2090_v14  ;;  %v2484_v45 = vpop.f32.mrb[18].mxu1 }
 0x1f7   :  { %2095 = vmatprep.subr.bf16.mxu0 %v2094_v17  ;;  %v2486_v46 = vpop.f32.mrb[19].mxu1 }
 0x1f9   :  { %1892 = vmatmul.mubr.msk.f32.gmra.mrb[6].mxu0 %vm370_vm3, %v331_v18 }
 0x1fa   :  { %1894 = vmatprep.mubr.msk.f32.mxu0 %vm370_vm3, %v332_v19  ;;  %2097 = vmatpush3.bf16.msra.mxu0 %v2094_v17 }
 0x1fd   :  { %1895 = vmatmul.mubr.msk.f32.gmra.mrb[8].mxu0 %vm370_vm3, %v333_v20 }
 0x1fe   :  { %1897 = vmatprep.mubr.msk.f32.mxu0 %vm370_vm3, %v334_v21 }
 0x201   :  { %1898 = vmatmul.mubr.msk.f32.gmra.mrb[10].mxu0 %vm370_vm3, %v335_v22 }
 0x202   :  { %1900 = vmatprep.mubr.msk.f32.mxu0 %vm370_vm3, %v336_v23 }
 0x205   :  { %1901 = vmatmul.mubr.msk.f32.gmra.mrb[12].mxu0 %vm370_vm3, %v337_v24 }
 0x206   :  { %1903 = vmatprep.mubr.msk.f32.mxu0 %vm370_vm3, %v338_v25 }
 0x209   :  { %1904 = vmatmul.mubr.msk.f32.gmra.mrb[14].mxu0 %vm370_vm3, %v339_v26 }
 0x20a   :  { %1906 = vmatprep.mubr.msk.f32.mxu0 %vm370_vm3, %v340_v27 }
 0x20d   :  { %1907 = vmatmul.mubr.msk.f32.gmra.mrb[16].mxu0 %vm370_vm3, %v341_v28 }
 0x2c2   :  { %v322_v60 = vpop.f32.mrb[2].mxu0 }
 0x2c3   :  { %v323_v61 = vadd.f32 %v1598_v59, %v322_v60  ;;  %v1881_v62 = vpop.f32.mrb[3].mxu0 }
 0x2c5   :  { %327 = vst.msk [vmem:[%s2818_s14] sm:$0x3] %vm326_vm4, %v323_v61  ;;  %v604_v61 = vadd.f32 %v2521_v63, %v2454_v30  ;;  %v614_v30 = vadd.f32 %v2521_v63, %v2458_v32 }
 0x2c7   :  { %vm706_vm3 = vcmp.ge.f32.partialorder %v604_v61, 0.0 }
 0x2c8   :  { %v1890_v0 = vpop.f32.mrb[4].mxu0 }
 0x2c9   :  { %v539_v1 = vadd.f32 %v1890_v0, %v2521_v63  ;;  %v533_v2 = vpop.f32.mrb[5].mxu0 }
 0x2ca   :  { %v534_v3 = vadd.f32 %v2521_v63, %v533_v2 }
 0x2cb   :  { %v725_v4 = vmul.f32 0.4, %v539_v1  ;;  %vm693_vm5 = vcmp.ge.f32.partialorder %v539_v1, 0.0 }
 0x2cc   :  { %vm692_vm6 = vcmp.ge.f32.partialorder %v534_v3, 0.0  ;;  %v724_v5 = vmul.f32 0.4, %v534_v3  ;;  %v1893_v6 = vpop.f32.mrb[6].mxu0 }
 0x2cd   :  { %v549_v7 = vadd.f32 %v1893_v6, %v2521_v63  ;;  %v543_v8 = vpop.f32.mrb[7].mxu0  ;;  %v757_v11 = vsel %vm693_vm5, %v539_v1, %v725_v4  ;;  %v738_v6 = vmul.f32 0.4, %v604_v61 }
 0x2ce   :  { %v544_v9 = vadd.f32 %v2521_v63, %v543_v8  ;;  %v756_v10 = vsel %vm692_vm6, %v534_v3, %v724_v5  ;;  %vm708_vm6 = vcmp.ge.f32.partialorder %v614_v30, 0.0 }
 0x2cf   :  { %v727_v12 = vmul.f32 0.4, %v549_v7  ;;  %1944 = vmatprep.mubr.msk.f32.mxu0 %vm61_vm1, %v756_v10  ;;  %vm695_vm7 = vcmp.ge.f32.partialorder %v549_v7, 0.0 }
 0x2d0   :  { %vm694_vm8 = vcmp.ge.f32.partialorder %v544_v9, 0.0  ;;  %v726_v13 = vmul.f32 0.4, %v544_v9  ;;  %v1896_v14 = vpop.f32.mrb[8].mxu0  ;;  %1945 = vmatmul.mubr.msk.f32.vlgmr.msra.gmra.mrb[18].mxu0 %vm61_vm1, %v757_v11 }
 0x2d1   :  { %v559_v15 = vadd.f32 %v1896_v14, %v2521_v63  ;;  %v553_v16 = vpop.f32.mrb[9].mxu0  ;;  %v759_v20 = vsel %vm695_vm7, %v549_v7, %v727_v12  ;;  %v740_v12 = vmul.f32 0.4, %v614_v30  ;;  %v770_v14 = vsel %vm706_vm3, %v604_v61, %v738_v6 }
 0x2d2   :  { %v554_v17 = vadd.f32 %v2521_v63, %v553_v16  ;;  %v758_v18 = vsel %vm694_vm8, %v544_v9, %v726_v13  ;;  %v609_v9 = vadd.f32 %v2452_v29, %v2521_v63  ;;  %v619_v16 = vadd.f32 %v2456_v31, %v2521_v63 }
 0x2d3   :  { %v729_v19 = vmul.f32 0.4, %v559_v15  ;;  %1947 = vmatprep.mubr.msk.f32.mxu0 %vm61_vm1, %v758_v18  ;;  %vm697_vm9 = vcmp.ge.f32.partialorder %v559_v15, 0.0  ;;  %v772_v18 = vsel %vm708_vm6, %v614_v30, %v740_v12 }
 0x2d4   :  { %vm696_vm10 = vcmp.ge.f32.partialorder %v554_v17, 0.0  ;;  %v728_v21 = vmul.f32 0.4, %v554_v17  ;;  %v1899_v22 = vpop.f32.mrb[10].mxu0  ;;  %1948 = vmatmul.mubr.msk.f32.gmra.mrb[20].mxu0 %vm61_vm1, %v759_v20  ;;  %v739_v32 = vmul.f32 0.4, %v609_v9 }
 0x2d5   :  { %v569_v23 = vadd.f32 %v1899_v22, %v2521_v63  ;;  %v563_v24 = vpop.f32.mrb[11].mxu0  ;;  %v761_v28 = vsel %vm697_vm9, %v559_v15, %v729_v19  ;;  %v624_v15 = vadd.f32 %v2521_v63, %v2462_v34  ;;  %vm707_vm7 = vcmp.ge.f32.partialorder %v609_v9, 0.0 }
 0x2d6   :  { %v564_v25 = vadd.f32 %v2521_v63, %v563_v24  ;;  %v760_v26 = vsel %vm696_vm10, %v554_v17, %v728_v21  ;;  %v634_v19 = vadd.f32 %v2521_v63, %v2466_v36  ;;  %v741_v20 = vmul.f32 0.4, %v619_v16 }
 0x2d7   :  { %v731_v27 = vmul.f32 0.4, %v569_v23  ;;  %1950 = vmatprep.mubr.msk.f32.mxu0 %vm61_vm1, %v760_v26  ;;  %vm699_vm11 = vcmp.ge.f32.partialorder %v569_v23, 0.0  ;;  %v742_v17 = vmul.f32 0.4, %v624_v15  ;;  %v629_v34 = vadd.f32 %v2460_v33, %v2521_v63 }
 0x2d8   :  { %vm698_vm12 = vcmp.ge.f32.partialorder %v564_v25, 0.0  ;;  %v730_v47 = vmul.f32 0.4, %v564_v25  ;;  %v1902_v48 = vpop.f32.mrb[12].mxu0  ;;  %1951 = vmatmul.mubr.msk.f32.gmra.mrb[22].mxu0 %vm61_vm1, %v761_v28  ;;  %vm710_vm8 = vcmp.ge.f32.partialorder %v624_v15, 0.0  ;;  %v771_v31 = vsel %vm707_vm7, %v609_v9, %v739_v32 }
 0x2d9   :  { %v579_v49 = vadd.f32 %v1902_v48, %v2521_v63  ;;  %v573_v50 = vpop.f32.mrb[13].mxu0  ;;  %v763_v54 = vsel %vm699_vm11, %v569_v23, %v731_v27  ;;  %vm709_vm9 = vcmp.ge.f32.partialorder %v619_v16, 0.0  ;;  %v744_v21 = vmul.f32 0.4, %v634_v19 }
 0x2da   :  { %v574_v51 = vadd.f32 %v2521_v63, %v573_v50  ;;  %v762_v52 = vsel %vm698_vm12, %v564_v25, %v730_v47  ;;  %v774_v22 = vsel %vm710_vm8, %v624_v15, %v742_v17  ;;  %v644_v23 = vadd.f32 %v2521_v63, %v2470_v38 }
 0x2db   :  { %v733_v53 = vmul.f32 0.4, %v579_v49  ;;  %1953 = vmatprep.mubr.msk.f32.mxu0 %vm61_vm1, %v762_v52  ;;  %vm701_vm13 = vcmp.ge.f32.partialorder %v579_v49, 0.0  ;;  %v743_v24 = vmul.f32 0.4, %v629_v34  ;;  %v639_v36 = vadd.f32 %v2464_v35, %v2521_v63 }
 0x2dc   :  { %vm700_vm14 = vcmp.ge.f32.partialorder %v574_v51, 0.0  ;;  %v732_v55 = vmul.f32 0.4, %v574_v51  ;;  %v1905_v56 = vpop.f32.mrb[14].mxu0  ;;  %1954 = vmatmul.mubr.msk.f32.gmra.mrb[24].mxu0 %vm61_vm1, %v763_v54  ;;  %vm712_vm10 = vcmp.ge.f32.partialorder %v634_v19, 0.0  ;;  %v773_v25 = vsel %vm709_vm9, %v619_v16, %v741_v20 }
 0x2dd   :  { %v589_v57 = vadd.f32 %v1905_v56, %v2521_v63  ;;  %v583_v58 = vpop.f32.mrb[15].mxu0  ;;  %v765_v0 = vsel %vm701_vm13, %v579_v49, %v733_v53  ;;  %vm711_vm11 = vcmp.ge.f32.partialorder %v629_v34, 0.0  ;;  %v746_v33 = vmul.f32 0.4, %v644_v23 }
 0x2de   :  { %v584_v59 = vadd.f32 %v2521_v63, %v583_v58  ;;  %v764_v60 = vsel %vm700_vm14, %v574_v51, %v732_v55  ;;  %v776_v26 = vsel %vm712_vm10, %v634_v19, %v744_v21  ;;  %v654_v27 = vadd.f32 %v2521_v63, %v2474_v40 }
 0x2df   :  { %v735_v62 = vmul.f32 0.4, %v589_v57  ;;  %1956 = vmatprep.mubr.msk.f32.mxu0 %vm61_vm1, %v764_v60  ;;  %vm703_vm15 = vcmp.ge.f32.partialorder %v589_v57, 0.0  ;;  %v745_v28 = vmul.f32 0.4, %v639_v36  ;;  %v649_v38 = vadd.f32 %v2468_v37, %v2521_v63 }
 0x2e0   :  { %vm702_vm0 = vcmp.ge.f32.partialorder %v584_v59, 0.0  ;;  %v734_v1 = vmul.f32 0.4, %v584_v59  ;;  %v1908_v2 = vpop.f32.mrb[16].mxu0  ;;  %1957 = vmatmul.mubr.msk.f32.gmra.mrb[26].mxu0 %vm61_vm1, %v765_v0  ;;  %vm714_vm12 = vcmp.ge.f32.partialorder %v644_v23, 0.0  ;;  %v775_v47 = vsel %vm711_vm11, %v629_v34, %v743_v24 }
 0x2e1   :  { %v599_v3 = vadd.f32 %v1908_v2, %v2521_v63  ;;  %v593_v4 = vpop.f32.mrb[17].mxu0  ;;  %v767_v10 = vsel %vm703_vm15, %v589_v57, %v735_v62  ;;  %vm713_vm13 = vcmp.ge.f32.partialorder %v639_v36, 0.0  ;;  %v748_v35 = vmul.f32 0.4, %v654_v27 }
 0x2e2   :  { %v594_v5 = vadd.f32 %v2521_v63, %v593_v4  ;;  %v766_v7 = vsel %vm702_vm0, %v584_v59, %v734_v1  ;;  %v778_v48 = vsel %vm714_vm12, %v644_v23, %v746_v33  ;;  %v664_v49 = vadd.f32 %v2521_v63, %v2478_v42 }
 0x2e3   :  { %v737_v8 = vmul.f32 0.4, %v599_v3  ;;  %1959 = vmatprep.mubr.msk.f32.mxu0 %vm61_vm1, %v766_v7  ;;  %vm705_vm4 = vcmp.ge.f32.partialorder %v599_v3, 0.0  ;;  %v747_v50 = vmul.f32 0.4, %v649_v38  ;;  %v659_v40 = vadd.f32 %v2472_v39, %v2521_v63 }
 0x2e4   :  { %vm704_vm5 = vcmp.ge.f32.partialorder %v594_v5, 0.0  ;;  %v736_v11 = vmul.f32 0.4, %v594_v5  ;;  %1960 = vmatmul.mubr.msk.f32.gmra.mrb[28].mxu0 %vm61_vm1, %v767_v10  ;;  %vm716_vm14 = vcmp.ge.f32.partialorder %v654_v27, 0.0  ;;  %v777_v51 = vsel %vm713_vm13, %v639_v36, %v745_v28 }
 0x2e5   :  { %v769_v29 = vsel %vm705_vm4, %v599_v3, %v737_v8  ;;  %vm715_vm15 = vcmp.ge.f32.partialorder %v649_v38, 0.0  ;;  %v750_v37 = vmul.f32 0.4, %v664_v49  ;;  %v780_v52 = vsel %vm716_vm14, %v654_v27, %v748_v35 }
 0x2e6   :  { %v768_v13 = vsel %vm704_vm5, %v594_v5, %v736_v11  ;;  %v674_v53 = vadd.f32 %v2521_v63, %v2482_v44  ;;  %v749_v54 = vmul.f32 0.4, %v659_v40  ;;  %v669_v42 = vadd.f32 %v2476_v41, %v2521_v63 }
 0x2e7   :  { %1962 = vmatprep.mubr.msk.f32.mxu0 %vm61_vm1, %v768_v13  ;;  %vm718_vm0 = vcmp.ge.f32.partialorder %v664_v49, 0.0  ;;  %v779_v55 = vsel %vm715_vm15, %v649_v38, %v747_v50  ;;  %vm717_vm3 = vcmp.ge.f32.partialorder %v659_v40, 0.0  ;;  %v684_v57 = vadd.f32 %v2521_v63, %v2486_v46 }
 0x2e8   :  { %1963 = vmatmul.mubr.msk.f32.gmra.mrb[30].mxu0 %vm61_vm1, %v769_v29  ;;  %v752_v39 = vmul.f32 0.4, %v674_v53  ;;  %v782_v56 = vsel %vm718_vm0, %v664_v49, %v750_v37  ;;  %v751_v58 = vmul.f32 0.4, %v669_v42  ;;  %v679_v44 = vadd.f32 %v2480_v43, %v2521_v63 }
 0x2e9   :  { %1965 = vmatprep.mubr.msk.f32.mxu0 %vm61_vm1, %v770_v14  ;;  %vm720_vm4 = vcmp.ge.f32.partialorder %v674_v53, 0.0  ;;  %v781_v59 = vsel %vm717_vm3, %v659_v40, %v749_v54  ;;  %vm719_vm5 = vcmp.ge.f32.partialorder %v669_v42, 0.0  ;;  %v754_v41 = vmul.f32 0.4, %v684_v57 }
 0x2ea   :  { %v784_v60 = vsel %vm720_vm4, %v674_v53, %v752_v39  ;;  %v753_v61 = vmul.f32 0.4, %v679_v44  ;;  %v689_v62 = vadd.f32 %v2484_v45, %v2521_v63  ;;  %vm722_vm6 = vcmp.ge.f32.partialorder %v684_v57, 0.0  ;;  %v2608_v45 = vld [vmem:[%s2820_s11] ss:$0 sm:$0xff] }
 0x2eb   :  { %v783_v0 = vsel %vm719_vm5, %v669_v42, %v751_v58  ;;  %vm721_vm7 = vcmp.ge.f32.partialorder %v679_v44, 0.0  ;;  %v786_v43 = vsel %vm722_vm6, %v684_v57, %v754_v41 }
 0x2ec   :  { %1966 = vmatmul.mubr.msk.f32.gmra.mrb[32].mxu0 %vm61_vm1, %v771_v31  ;;  %v755_v46 = vmul.f32 0.4, %v689_v62  ;;  %v785_v1 = vsel %vm721_vm7, %v679_v44, %v753_v61  ;;  %vm723_vm8 = vcmp.ge.f32.partialorder %v689_v62, 0.0 }
 0x2ed   :  { %1968 = vmatprep.mubr.msk.f32.mxu0 %vm61_vm1, %v772_v18 }
 0x2ee   :  { %v787_v2 = vsel %vm723_vm8, %v689_v62, %v755_v46 }
 0x2f0   :  { %1969 = vmatmul.mubr.msk.f32.gmra.mrb[34].mxu0 %vm61_vm1, %v773_v25 }
 0x2f1   :  { %1971 = vmatprep.mubr.msk.f32.mxu0 %vm61_vm1, %v774_v22 }
 0x2f4   :  { %1972 = vmatmul.mubr.msk.f32.gmra.mrb[36].mxu0 %vm61_vm1, %v775_v47 }
 0x2f5   :  { %1974 = vmatprep.mubr.msk.f32.mxu0 %vm61_vm1, %v776_v26 }
 0x2f8   :  { %1975 = vmatmul.mubr.msk.f32.gmra.mrb[38].mxu0 %vm61_vm1, %v777_v51 }
 0x2f9   :  { %1977 = vmatprep.mubr.msk.f32.mxu0 %vm61_vm1, %v778_v48 }
 0x2fc   :  { %1978 = vmatmul.mubr.msk.f32.gmra.mrb[40].mxu0 %vm61_vm1, %v779_v55 }
 0x2fd   :  { %1980 = vmatprep.mubr.msk.f32.mxu0 %vm61_vm1, %v780_v52 }
 0x300   :  { %1981 = vmatmul.mubr.msk.f32.gmra.mrb[42].mxu0 %vm61_vm1, %v781_v59 }
 0x301   :  { %1983 = vmatprep.mubr.msk.f32.mxu0 %vm61_vm1, %v782_v56 }
 0x304   :  { %1984 = vmatmul.mubr.msk.f32.gmra.mrb[44].mxu0 %vm61_vm1, %v783_v0 }
 0x305   :  { %1986 = vmatprep.mubr.msk.f32.mxu0 %vm61_vm1, %v784_v60 }
 0x308   :  { %1987 = vmatmul.mubr.msk.f32.gmra.mrb[46].mxu0 %vm61_vm1, %v785_v1 }
 0x309   :  { %1989 = vmatprep.mubr.msk.f32.mxu0 %vm61_vm1, %v786_v43 }
 0x30c   :  { %1990 = vmatmul.mubr.msk.f32.gmra.mrb[48].mxu0 %vm61_vm1, %v787_v2 }
 0x3a3   :  { %v1946_v63 = vpop.f32.mrb[18].mxu0 }
 0x3a4   :  { %v967_v3 = vadd.f32 %v1946_v63, %v2608_v45  ;;  %v961_v4 = vpop.f32.mrb[19].mxu0 }
 0x3a5   :  { %v962_v5 = vadd.f32 %v2608_v45, %v961_v4 }
 0x3a6   :  { %v1153_v6 = vmul.f32 0.4, %v967_v3  ;;  %vm1121_vm9 = vcmp.ge.f32.partialorder %v967_v3, 0.0 }
 0x3a7   :  { %vm1120_vm10 = vcmp.ge.f32.partialorder %v962_v5, 0.0  ;;  %v1152_v7 = vmul.f32 0.4, %v962_v5  ;;  %v1949_v30 = vpop.f32.mrb[20].mxu0 }
 0x3a8   :  { %v977_v8 = vadd.f32 %v1949_v30, %v2608_v45  ;;  %v971_v9 = vpop.f32.mrb[21].mxu0  ;;  %v1185_v12 = vsel %vm1121_vm9, %v967_v3, %v1153_v6 }
 0x3a9   :  { %v972_v10 = vadd.f32 %v2608_v45, %v971_v9  ;;  %v1184_v11 = vsel %vm1120_vm10, %v962_v5, %v1152_v7 }
 0x3aa   :  { %v1155_v13 = vmul.f32 0.4, %v977_v8  ;;  %2008 = vmatprep.mubr.msk.f32.mxu1 %vm157_vm2, %v1184_v11  ;;  %vm1123_vm1 = vcmp.ge.f32.partialorder %v977_v8, 0.0 }
 0x3ab   :  { %vm1122_vm11 = vcmp.ge.f32.partialorder %v972_v10, 0.0  ;;  %v1154_v14 = vmul.f32 0.4, %v972_v10  ;;  %v1952_v15 = vpop.f32.mrb[22].mxu0  ;;  %2009 = vmatmul.mubr.msk.f32.vlgmr.msra.gmra.mrb[20].mxu1 %vm157_vm2, %v1185_v12 }
 0x3ac   :  { %v987_v32 = vadd.f32 %v1952_v15, %v2608_v45  ;;  %v981_v16 = vpop.f32.mrb[23].mxu0  ;;  %v1187_v19 = vsel %vm1123_vm1, %v977_v8, %v1155_v13 }
 0x3ad   :  { %v982_v29 = vadd.f32 %v2608_v45, %v981_v16  ;;  %v1186_v17 = vsel %vm1122_vm11, %v972_v10, %v1154_v14 }
 0x3ae   :  { %v1157_v18 = vmul.f32 0.4, %v987_v32  ;;  %2011 = vmatprep.mubr.msk.f32.mxu1 %vm157_vm2, %v1186_v17  ;;  %vm1125_vm12 = vcmp.ge.f32.partialorder %v987_v32, 0.0 }
 0x3af   :  { %vm1124_vm13 = vcmp.ge.f32.partialorder %v982_v29, 0.0  ;;  %v1156_v20 = vmul.f32 0.4, %v982_v29  ;;  %v1955_v34 = vpop.f32.mrb[24].mxu0  ;;  %2012 = vmatmul.mubr.msk.f32.gmra.mrb[22].mxu1 %vm157_vm2, %v1187_v19 }
 0x3b0   :  { %v997_v31 = vadd.f32 %v1955_v34, %v2608_v45  ;;  %v991_v21 = vpop.f32.mrb[25].mxu0  ;;  %v1189_v36 = vsel %vm1125_vm12, %v987_v32, %v1157_v18 }
 0x3b1   :  { %v992_v22 = vadd.f32 %v2608_v45, %v991_v21  ;;  %v1188_v23 = vsel %vm1124_vm13, %v982_v29, %v1156_v20 }
 0x3b2   :  { %v1159_v24 = vmul.f32 0.4, %v997_v31  ;;  %2014 = vmatprep.mubr.msk.f32.mxu1 %vm157_vm2, %v1188_v23  ;;  %vm1127_vm14 = vcmp.ge.f32.partialorder %v997_v31, 0.0 }
 0x3b3   :  { %vm1126_vm15 = vcmp.ge.f32.partialorder %v992_v22, 0.0  ;;  %v1158_v25 = vmul.f32 0.4, %v992_v22  ;;  %v1958_v33 = vpop.f32.mrb[26].mxu0  ;;  %2015 = vmatmul.mubr.msk.f32.gmra.mrb[24].mxu1 %vm157_vm2, %v1189_v36 }
 0x3b4   :  { %v1007_v26 = vadd.f32 %v1958_v33, %v2608_v45  ;;  %v1001_v27 = vpop.f32.mrb[27].mxu0  ;;  %v1191_v35 = vsel %vm1127_vm14, %v997_v31, %v1159_v24 }
 0x3b5   :  { %v1002_v28 = vadd.f32 %v2608_v45, %v1001_v27  ;;  %v1190_v38 = vsel %vm1126_vm15, %v992_v22, %v1158_v25 }
 0x3b6   :  { %v1161_v47 = vmul.f32 0.4, %v1007_v26  ;;  %2017 = vmatprep.mubr.msk.f32.mxu1 %vm157_vm2, %v1190_v38  ;;  %vm1129_vm0 = vcmp.ge.f32.partialorder %v1007_v26, 0.0 }
 0x3b7   :  { %vm1128_vm3 = vcmp.ge.f32.partialorder %v1002_v28, 0.0  ;;  %v1160_v48 = vmul.f32 0.4, %v1002_v28  ;;  %v1961_v49 = vpop.f32.mrb[28].mxu0  ;;  %2018 = vmatmul.mubr.msk.f32.gmra.mrb[26].mxu1 %vm157_vm2, %v1191_v35 }
 0x3b8   :  { %v1017_v50 = vadd.f32 %v1961_v49, %v2608_v45  ;;  %v1011_v40 = vpop.f32.mrb[29].mxu0  ;;  %v1193_v53 = vsel %vm1129_vm0, %v1007_v26, %v1161_v47 }
 0x3b9   :  { %v1012_v51 = vadd.f32 %v2608_v45, %v1011_v40  ;;  %v1192_v37 = vsel %vm1128_vm3, %v1002_v28, %v1160_v48 }
 0x3ba   :  { %v1163_v52 = vmul.f32 0.4, %v1017_v50  ;;  %2020 = vmatprep.mubr.msk.f32.mxu1 %vm157_vm2, %v1192_v37  ;;  %vm1131_vm4 = vcmp.ge.f32.partialorder %v1017_v50, 0.0 }
 0x3bb   :  { %vm1130_vm5 = vcmp.ge.f32.partialorder %v1012_v51, 0.0  ;;  %v1162_v54 = vmul.f32 0.4, %v1012_v51  ;;  %v1964_v42 = vpop.f32.mrb[30].mxu0  ;;  %2021 = vmatmul.mubr.msk.f32.gmra.mrb[28].mxu1 %vm157_vm2, %v1193_v53 }
 0x3bc   :  { %v1027_v55 = vadd.f32 %v1964_v42, %v2608_v45  ;;  %v1021_v39 = vpop.f32.mrb[31].mxu0  ;;  %v1195_v44 = vsel %vm1131_vm4, %v1017_v50, %v1163_v52 }
 0x3bd   :  { %v1022_v56 = vadd.f32 %v2608_v45, %v1021_v39  ;;  %v1194_v57 = vsel %vm1130_vm5, %v1012_v51, %v1162_v54 }
 0x3be   :  { %v1165_v58 = vmul.f32 0.4, %v1027_v55  ;;  %2023 = vmatprep.mubr.msk.f32.mxu1 %vm157_vm2, %v1194_v57  ;;  %vm1133_vm6 = vcmp.ge.f32.partialorder %v1027_v55, 0.0 }
 0x3bf   :  { %vm1132_vm7 = vcmp.ge.f32.partialorder %v1022_v56, 0.0  ;;  %v1164_v59 = vmul.f32 0.4, %v1022_v56  ;;  %v1967_v41 = vpop.f32.mrb[32].mxu0  ;;  %2024 = vmatmul.mubr.msk.f32.gmra.mrb[30].mxu1 %vm157_vm2, %v1195_v44 }
 0x3c0   :  { %v1037_v60 = vadd.f32 %v1967_v41, %v2608_v45  ;;  %v1031_v61 = vpop.f32.mrb[33].mxu0  ;;  %v1197_v46 = vsel %vm1133_vm6, %v1027_v55, %v1165_v58 }
 0x3c1   :  { %v1032_v62 = vadd.f32 %v2608_v45, %v1031_v61  ;;  %v1196_v0 = vsel %vm1132_vm7, %v1022_v56, %v1164_v59 }
 0x3c2   :  { %v1167_v43 = vmul.f32 0.4, %v1037_v60  ;;  %2026 = vmatprep.mubr.msk.f32.mxu1 %vm157_vm2, %v1196_v0  ;;  %vm1135_vm8 = vcmp.ge.f32.partialorder %v1037_v60, 0.0 }
 0x3c3   :  { %vm1134_vm9 = vcmp.ge.f32.partialorder %v1032_v62, 0.0  ;;  %v1166_v1 = vmul.f32 0.4, %v1032_v62  ;;  %v1970_v2 = vpop.f32.mrb[34].mxu0  ;;  %2027 = vmatmul.mubr.msk.f32.gmra.mrb[32].mxu1 %vm157_vm2, %v1197_v46 }
 0x3c4   :  { %v1047_v63 = vadd.f32 %v1970_v2, %v2608_v45  ;;  %v1041_v3 = vpop.f32.mrb[35].mxu0  ;;  %v1199_v7 = vsel %vm1135_vm8, %v1037_v60, %v1167_v43 }
 0x3c5   :  { %v1042_v4 = vadd.f32 %v2608_v45, %v1041_v3  ;;  %v1198_v5 = vsel %vm1134_vm9, %v1032_v62, %v1166_v1 }
 0x3c6   :  { %v1169_v6 = vmul.f32 0.4, %v1047_v63  ;;  %2029 = vmatprep.mubr.msk.f32.mxu1 %vm157_vm2, %v1198_v5  ;;  %vm1137_vm10 = vcmp.ge.f32.partialorder %v1047_v63, 0.0 }
 0x3c7   :  { %vm1136_vm1 = vcmp.ge.f32.partialorder %v1042_v4, 0.0  ;;  %v1168_v30 = vmul.f32 0.4, %v1042_v4  ;;  %v1973_v8 = vpop.f32.mrb[36].mxu0  ;;  %2030 = vmatmul.mubr.msk.f32.gmra.mrb[34].mxu1 %vm157_vm2, %v1199_v7 }
 0x3c8   :  { %v1057_v9 = vadd.f32 %v1973_v8, %v2608_v45  ;;  %v1051_v10 = vpop.f32.mrb[37].mxu0  ;;  %v1201_v14 = vsel %vm1137_vm10, %v1047_v63, %v1169_v6 }
 0x3c9   :  { %v1052_v11 = vadd.f32 %v2608_v45, %v1051_v10  ;;  %v1200_v12 = vsel %vm1136_vm1, %v1042_v4, %v1168_v30 }
 0x3ca   :  { %v1171_v13 = vmul.f32 0.4, %v1057_v9  ;;  %2032 = vmatprep.mubr.msk.f32.mxu1 %vm157_vm2, %v1200_v12  ;;  %vm1139_vm11 = vcmp.ge.f32.partialorder %v1057_v9, 0.0 }
 0x3cb   :  { %vm1138_vm12 = vcmp.ge.f32.partialorder %v1052_v11, 0.0  ;;  %v1170_v15 = vmul.f32 0.4, %v1052_v11  ;;  %v1976_v32 = vpop.f32.mrb[38].mxu0  ;;  %2033 = vmatmul.mubr.msk.f32.gmra.mrb[36].mxu1 %vm157_vm2, %v1201_v14 }
 0x3cc   :  { %v1067_v16 = vadd.f32 %v1976_v32, %v2608_v45  ;;  %v1061_v29 = vpop.f32.mrb[39].mxu0  ;;  %v1203_v20 = vsel %vm1139_vm11, %v1057_v9, %v1171_v13 }
 0x3cd   :  { %v1062_v17 = vadd.f32 %v2608_v45, %v1061_v29  ;;  %v1202_v18 = vsel %vm1138_vm12, %v1052_v11, %v1170_v15 }
 0x3ce   :  { %v1173_v19 = vmul.f32 0.4, %v1067_v16  ;;  %2035 = vmatprep.mubr.msk.f32.mxu1 %vm157_vm2, %v1202_v18  ;;  %vm1141_vm13 = vcmp.ge.f32.partialorder %v1067_v16, 0.0 }
 0x3cf   :  { %vm1140_vm14 = vcmp.ge.f32.partialorder %v1062_v17, 0.0  ;;  %v1172_v34 = vmul.f32 0.4, %v1062_v17  ;;  %v1979_v31 = vpop.f32.mrb[40].mxu0  ;;  %2036 = vmatmul.mubr.msk.f32.gmra.mrb[38].mxu1 %vm157_vm2, %v1203_v20 }
 0x3d0   :  { %v1077_v21 = vadd.f32 %v1979_v31, %v2608_v45  ;;  %v1071_v22 = vpop.f32.mrb[41].mxu0  ;;  %v1205_v25 = vsel %vm1141_vm13, %v1067_v16, %v1173_v19 }
 0x3d1   :  { %v1072_v23 = vadd.f32 %v2608_v45, %v1071_v22  ;;  %v1204_v24 = vsel %vm1140_vm14, %v1062_v17, %v1172_v34 }
 0x3d2   :  { %v1175_v36 = vmul.f32 0.4, %v1077_v21  ;;  %2038 = vmatprep.mubr.msk.f32.mxu1 %vm157_vm2, %v1204_v24  ;;  %vm1143_vm15 = vcmp.ge.f32.partialorder %v1077_v21, 0.0 }
 0x3d3   :  { %vm1142_vm0 = vcmp.ge.f32.partialorder %v1072_v23, 0.0  ;;  %v1174_v33 = vmul.f32 0.4, %v1072_v23  ;;  %v1982_v26 = vpop.f32.mrb[42].mxu0  ;;  %2039 = vmatmul.mubr.msk.f32.gmra.mrb[40].mxu1 %vm157_vm2, %v1205_v25 }
 0x3d4   :  { %v1087_v27 = vadd.f32 %v1982_v26, %v2608_v45  ;;  %v1081_v28 = vpop.f32.mrb[43].mxu0  ;;  %v1207_v48 = vsel %vm1143_vm15, %v1077_v21, %v1175_v36 }
 0x3d5   :  { %v1082_v38 = vadd.f32 %v2608_v45, %v1081_v28  ;;  %v1206_v47 = vsel %vm1142_vm0, %v1072_v23, %v1174_v33 }
 0x3d6   :  { %v1177_v35 = vmul.f32 0.4, %v1087_v27  ;;  %2041 = vmatprep.mubr.msk.f32.mxu1 %vm157_vm2, %v1206_v47  ;;  %vm1145_vm3 = vcmp.ge.f32.partialorder %v1087_v27, 0.0 }
 0x3d7   :  { %vm1144_vm4 = vcmp.ge.f32.partialorder %v1082_v38, 0.0  ;;  %v1176_v49 = vmul.f32 0.4, %v1082_v38  ;;  %v1985_v50 = vpop.f32.mrb[44].mxu0  ;;  %2042 = vmatmul.mubr.msk.f32.gmra.mrb[42].mxu1 %vm157_vm2, %v1207_v48 }
 0x3d8   :  { %v1097_v40 = vadd.f32 %v1985_v50, %v2608_v45  ;;  %v1091_v51 = vpop.f32.mrb[45].mxu0  ;;  %v1209_v54 = vsel %vm1145_vm3, %v1087_v27, %v1177_v35 }
 0x3d9   :  { %v1092_v37 = vadd.f32 %v2608_v45, %v1091_v51  ;;  %v1208_v52 = vsel %vm1144_vm4, %v1082_v38, %v1176_v49 }
 0x3da   :  { %v1179_v53 = vmul.f32 0.4, %v1097_v40  ;;  %2044 = vmatprep.mubr.msk.f32.mxu1 %vm157_vm2, %v1208_v52  ;;  %vm1147_vm5 = vcmp.ge.f32.partialorder %v1097_v40, 0.0 }
 0x3db   :  { %vm1146_vm6 = vcmp.ge.f32.partialorder %v1092_v37, 0.0  ;;  %v1178_v42 = vmul.f32 0.4, %v1092_v37  ;;  %v1988_v55 = vpop.f32.mrb[46].mxu0  ;;  %2045 = vmatmul.mubr.msk.f32.gmra.mrb[44].mxu1 %vm157_vm2, %v1209_v54 }
 0x3dc   :  { %v1107_v39 = vadd.f32 %v1988_v55, %v2608_v45  ;;  %v1101_v56 = vpop.f32.mrb[47].mxu0  ;;  %v1211_v59 = vsel %vm1147_vm5, %v1097_v40, %v1179_v53 }
 0x3dd   :  { %v1102_v57 = vadd.f32 %v2608_v45, %v1101_v56  ;;  %v1210_v58 = vsel %vm1146_vm6, %v1092_v37, %v1178_v42 }
 0x3de   :  { %v1181_v44 = vmul.f32 0.4, %v1107_v39  ;;  %2047 = vmatprep.mubr.msk.f32.mxu1 %vm157_vm2, %v1210_v58  ;;  %vm1149_vm7 = vcmp.ge.f32.partialorder %v1107_v39, 0.0 }
 0x3df   :  { %vm1148_vm8 = vcmp.ge.f32.partialorder %v1102_v57, 0.0  ;;  %v1180_v41 = vmul.f32 0.4, %v1102_v57  ;;  %v1991_v60 = vpop.f32.mrb[48].mxu0  ;;  %2048 = vmatmul.mubr.msk.f32.gmra.mrb[46].mxu1 %vm157_vm2, %v1211_v59 }
 0x3e0   :  { %v1117_v61 = vadd.f32 %v1991_v60, %v2608_v45  ;;  %v1111_v62 = vpop.f32.mrb[49].mxu0  ;;  %v1213_v1 = vsel %vm1149_vm7, %v1107_v39, %v1181_v44 }
 0x3e1   :  { %v1112_v0 = vadd.f32 %v2608_v45, %v1111_v62  ;;  %v1212_v43 = vsel %vm1148_vm8, %v1102_v57, %v1180_v41  ;;  %v2677_v45 = vld [vmem:[%s2821_s13] ss:$0 sm:$0xff] }
 0x3e2   :  { %v1183_v46 = vmul.f32 0.4, %v1117_v61  ;;  %2050 = vmatprep.mubr.msk.f32.mxu1 %vm157_vm2, %v1212_v43  ;;  %vm1151_vm9 = vcmp.ge.f32.partialorder %v1117_v61, 0.0 }
 0x3e3   :  { %vm1150_vm10 = vcmp.ge.f32.partialorder %v1112_v0, 0.0  ;;  %v1182_v2 = vmul.f32 0.4, %v1112_v0  ;;  %2051 = vmatmul.mubr.msk.f32.gmra.mrb[48].mxu1 %vm157_vm2, %v1213_v1 }
 0x3e4   :  { %v1215_v3 = vsel %vm1151_vm9, %v1117_v61, %v1183_v46 }
 0x3e5   :  { %v1214_v63 = vsel %vm1150_vm10, %v1112_v0, %v1182_v2 }
 0x3e6   :  { %2053 = vmatprep.mubr.msk.f32.mxu1 %vm157_vm2, %v1214_v63 }
 0x3e7   :  { %2054 = vmatmul.mubr.msk.f32.gmra.mrb[50].mxu1 %vm157_vm2, %v1215_v3 }
 0x47e   :  { %v2010_v4 = vpop.f32.mrb[20].mxu1 }
 0x47f   :  { %v1399_v5 = vadd.f32 %v2010_v4, %v2677_v45  ;;  %v1393_v6 = vpop.f32.mrb[21].mxu1 }
 0x480   :  { %v1394_v7 = vadd.f32 %v2677_v45, %v1393_v6 }
 0x481   :  { %1553 = vst [vmem:[%s2822_s15 + $0x8] sm:$0xff] %v1399_v5 }
 0x482   :  { %1552 = vst [vmem:[%s2822_s15] sm:$0xff] %v1394_v7  ;;  %v2013_v30 = vpop.f32.mrb[22].mxu1 }
 0x483   :  { %v1409_v8 = vadd.f32 %v2013_v30, %v2677_v45  ;;  %v1403_v9 = vpop.f32.mrb[23].mxu1 }
 0x484   :  { %v1404_v10 = vadd.f32 %v2677_v45, %v1403_v9 }
 0x485   :  { %1555 = vst [vmem:[%s2822_s15 + $0x18] sm:$0xff] %v1409_v8 }
 0x486   :  { %1554 = vst [vmem:[%s2822_s15 + $0x10] sm:$0xff] %v1404_v10  ;;  %v2016_v11 = vpop.f32.mrb[24].mxu1 }
 0x487   :  { %v1419_v12 = vadd.f32 %v2016_v11, %v2677_v45  ;;  %v1413_v13 = vpop.f32.mrb[25].mxu1 }
 0x488   :  { %v1414_v14 = vadd.f32 %v2677_v45, %v1413_v13 }
 0x489   :  { %1557 = vst [vmem:[%s2822_s15 + $0x28] sm:$0xff] %v1419_v12 }
 0x48a   :  { %1556 = vst [vmem:[%s2822_s15 + $0x20] sm:$0xff] %v1414_v14  ;;  %v2019_v15 = vpop.f32.mrb[26].mxu1 }
 0x48b   :  { %v1429_v32 = vadd.f32 %v2019_v15, %v2677_v45  ;;  %v1423_v16 = vpop.f32.mrb[27].mxu1 }
 0x48c   :  { %v1424_v29 = vadd.f32 %v2677_v45, %v1423_v16 }
 0x48d   :  { %1559 = vst [vmem:[%s2822_s15 + $0x38] sm:$0xff] %v1429_v32 }
 0x48e   :  { %1558 = vst [vmem:[%s2822_s15 + $0x30] sm:$0xff] %v1424_v29  ;;  %v2022_v17 = vpop.f32.mrb[28].mxu1 }
 0x48f   :  { %v1439_v18 = vadd.f32 %v2022_v17, %v2677_v45  ;;  %v1433_v19 = vpop.f32.mrb[29].mxu1 }
 0x490   :  { %v1434_v20 = vadd.f32 %v2677_v45, %v1433_v19 }
 0x491   :  { %1561 = vst [vmem:[%s2822_s15 + $0x48] sm:$0xff] %v1439_v18 }
 0x492   :  { %1560 = vst [vmem:[%s2822_s15 + $0x40] sm:$0xff] %v1434_v20  ;;  %v2025_v34 = vpop.f32.mrb[30].mxu1 }
 0x493   :  { %v1449_v31 = vadd.f32 %v2025_v34, %v2677_v45  ;;  %v1443_v21 = vpop.f32.mrb[31].mxu1 }
 0x494   :  { %v1444_v22 = vadd.f32 %v2677_v45, %v1443_v21 }
 0x495   :  { %1563 = vst [vmem:[%s2822_s15 + $0x58] sm:$0xff] %v1449_v31 }
 0x496   :  { %1562 = vst [vmem:[%s2822_s15 + $0x50] sm:$0xff] %v1444_v22  ;;  %v2028_v23 = vpop.f32.mrb[32].mxu1 }
 0x497   :  { %v1459_v24 = vadd.f32 %v2028_v23, %v2677_v45  ;;  %v1453_v36 = vpop.f32.mrb[33].mxu1 }
 0x498   :  { %v1454_v25 = vadd.f32 %v2677_v45, %v1453_v36 }
 0x499   :  { %1565 = vst [vmem:[%s2822_s15 + $0x68] sm:$0xff] %v1459_v24 }
 0x49a   :  { %1564 = vst [vmem:[%s2822_s15 + $0x60] sm:$0xff] %v1454_v25  ;;  %v2031_v33 = vpop.f32.mrb[34].mxu1 }
 0x49b   :  { %v1469_v26 = vadd.f32 %v2031_v33, %v2677_v45  ;;  %v1463_v27 = vpop.f32.mrb[35].mxu1 }
 0x49c   :  { %v1464_v28 = vadd.f32 %v2677_v45, %v1463_v27 }
 0x49d   :  { %1567 = vst [vmem:[%s2822_s15 + $0x78] sm:$0xff] %v1469_v26 }
 0x49e   :  { %1566 = vst [vmem:[%s2822_s15 + $0x70] sm:$0xff] %v1464_v28  ;;  %v2034_v38 = vpop.f32.mrb[36].mxu1 }
 0x49f   :  { %v1479_v47 = vadd.f32 %v2034_v38, %v2677_v45  ;;  %v1473_v35 = vpop.f32.mrb[37].mxu1 }
 0x4a0   :  { %v1474_v48 = vadd.f32 %v2677_v45, %v1473_v35 }
 0x4a1   :  { %1569 = vst [vmem:[%s2822_s15 + $0x88] sm:$0xff] %v1479_v47 }
 0x4a2   :  { %1568 = vst [vmem:[%s2822_s15 + $0x80] sm:$0xff] %v1474_v48  ;;  %v2037_v49 = vpop.f32.mrb[38].mxu1 }
 0x4a3   :  { %v1489_v50 = vadd.f32 %v2037_v49, %v2677_v45  ;;  %v1483_v40 = vpop.f32.mrb[39].mxu1 }
 0x4a4   :  { %v1484_v51 = vadd.f32 %v2677_v45, %v1483_v40 }
 0x4a5   :  { %1571 = vst [vmem:[%s2822_s15 + $0x98] sm:$0xff] %v1489_v50 }
 0x4a6   :  { %1570 = vst [vmem:[%s2822_s15 + $0x90] sm:$0xff] %v1484_v51  ;;  %v2040_v37 = vpop.f32.mrb[40].mxu1 }
 0x4a7   :  { %v1499_v52 = vadd.f32 %v2040_v37, %v2677_v45  ;;  %v1493_v53 = vpop.f32.mrb[41].mxu1 }
 0x4a8   :  { %v1494_v54 = vadd.f32 %v2677_v45, %v1493_v53 }
 0x4a9   :  { %1573 = vst [vmem:[%s2822_s15 + $0xa8] sm:$0xff] %v1499_v52 }
 0x4aa   :  { %1572 = vst [vmem:[%s2822_s15 + $0xa0] sm:$0xff] %v1494_v54  ;;  %v2043_v42 = vpop.f32.mrb[42].mxu1 }
 0x4ab   :  { %v1509_v55 = vadd.f32 %v2043_v42, %v2677_v45  ;;  %v1503_v39 = vpop.f32.mrb[43].mxu1 }
 0x4ac   :  { %v1504_v56 = vadd.f32 %v2677_v45, %v1503_v39 }
 0x4ad   :  { %1575 = vst [vmem:[%s2822_s15 + $0xb8] sm:$0xff] %v1509_v55 }
 0x4ae   :  { %1574 = vst [vmem:[%s2822_s15 + $0xb0] sm:$0xff] %v1504_v56  ;;  %v2046_v57 = vpop.f32.mrb[44].mxu1 }
 0x4af   :  { %v1519_v58 = vadd.f32 %v2046_v57, %v2677_v45  ;;  %v1513_v44 = vpop.f32.mrb[45].mxu1 }
 0x4b0   :  { %v1514_v59 = vadd.f32 %v2677_v45, %v1513_v44 }
 0x4b1   :  { %1577 = vst [vmem:[%s2822_s15 + $0xc8] sm:$0xff] %v1519_v58 }
 0x4b2   :  { %1576 = vst [vmem:[%s2822_s15 + $0xc0] sm:$0xff] %v1514_v59  ;;  %v2049_v41 = vpop.f32.mrb[46].mxu1 }
 0x4b3   :  { %v1529_v60 = vadd.f32 %v2049_v41, %v2677_v45  ;;  %v1523_v61 = vpop.f32.mrb[47].mxu1 }
 0x4b4   :  { %v1524_v62 = vadd.f32 %v2677_v45, %v1523_v61 }
 0x4b5   :  { %1579 = vst [vmem:[%s2822_s15 + $0xd8] sm:$0xff] %v1529_v60 }
 0x4b6   :  { %1578 = vst [vmem:[%s2822_s15 + $0xd0] sm:$0xff] %v1524_v62  ;;  %v2052_v0 = vpop.f32.mrb[48].mxu1 }
 0x4b7   :  { %v1539_v43 = vadd.f32 %v2052_v0, %v2677_v45  ;;  %v1533_v46 = vpop.f32.mrb[49].mxu1 }
 0x4b8   :  { %v1534_v1 = vadd.f32 %v2677_v45, %v1533_v46 }
 0x4b9   :  { %1581 = vst [vmem:[%s2822_s15 + $0xe8] sm:$0xff] %v1539_v43 }
 0x4ba   :  { %1580 = vst [vmem:[%s2822_s15 + $0xe0] sm:$0xff] %v1534_v1  ;;  %v2055_v2 = vpop.f32.mrb[50].mxu1 }
 0x4bb   :  { %v1549_v63 = vadd.f32 %v2055_v2, %v2677_v45  ;;  %v1543_v3 = vpop.f32.mrb[51].mxu1 }
 0x4bc   :  { %v1544_v4 = vadd.f32 %v2677_v45, %v1543_v3 }
 0x4bd   :  { %1583 = vst [vmem:[%s2822_s15 + $0xf8] sm:$0xff] %v1549_v63 }
 0x4be   :  { %1582 = vst [vmem:[%s2822_s15 + $0xf0] sm:$0xff] %v1544_v4 }

// kernel: forward_pallas.3
= control target key start
LH: loop header
LB: loop body
LE: loop exit
PB: predicated region body
PF: predicated region fallthrough
CT: control target
= control target key end

     0   :  { %s6125_s0 = inlined_call_operand.vmem [shape: f32[2,8,16], index: 0, kind: input, shape index: {}]   ;;  %s6126_s1 = inlined_call_operand.vmem [shape: f32[2,1,16], index: 1, kind: input, shape index: {}]   ;;  %s6127_s2 = inlined_call_operand.vmem [shape: f32[8,16,256], index: 2, kind: input, shape index: {}]   ;;  %s6128_s3 = inlined_call_operand.vmem [shape: f32[16,128], index: 3, kind: input, shape index: {}]   ;;  %s6129_s4 = inlined_call_operand.vmem [shape: f32[1,128], index: 4, kind: input, shape index: {}]   ;;  %s6130_s5 = inlined_call_operand.vmem [shape: f32[8,128,256], index: 5, kind: input, shape index: {}]   ;;  %s6131_s6 = inlined_call_operand.vmem [shape: f32[8,128,256], index: 6, kind: input, shape index: {}]   ;;  %s6132_s7 = inlined_call_operand.vmem [shape: f32[8,1,256], index: 7, kind: input, shape index: {}]   ;;  %s6133_s8 = inlined_call_operand.vmem [shape: f32[128,128], index: 8, kind: input, shape index: {}]   ;;  %s6134_s9 = inlined_call_operand.vmem [shape: f32[1,128], index: 9, kind: input, shape index: {}]   ;;  %s6135_s10 = inlined_call_operand.vmem [shape: f32[128,16], index: 10, kind: input, shape index: {}]   ;;  %s6136_s11 = inlined_call_operand.vmem [shape: f32[1,16], index: 11, kind: input, shape index: {}]   ;;  %s6137_s12 = inlined_call_operand.hbm [shape: f32[2,8,16], index: 12, kind: output, shape index: {}]  }
   0x1   :  { %6141 = sst [smem:[#allocation9_spill]] %s6127_s2 }
   0x2   :  { %6142 = sst [smem:[#allocation10_spill]] %s6128_s3 }
   0x3   :  { %17 = vsyncpa [#allocation4], 0 }
   0x4   :  { %19 = vsyncpa [#allocation4 + $0x1], 0  ;;  %s4189_s21 = smov 0   ;;  %s4191_s22 = smov 0  }
   0x5   :  { %s4193_s23 = smov 0   ;;  %s4195_s24 = smov 0  }
   0x6 LB: > { %6143 = sst [smem:[#allocation6_spill]] %s4114_s23  ;;  %s4210_s25 = sadd.s32 4294967295, %s4118_s24   ;;  %s4118_s24 = sphi %s4195_s24, %s6150_s24   ;;  %s4114_s23 = sphi %s4193_s23, %s6152_s23   ;;  %s4110_s22 = sphi %s4191_s22, %s6154_s22   ;;  %s4106_s21 = sphi %s4189_s21, %s6153_s21  }
   0x7   : > { %s2792_s26 = sadd.s32 4294967294, %s4118_s24   ;;  %s4214_s27 = sadd.s32 1, %s4118_s24  }
   0x8   : > { %6144 = sst [smem:[#allocation7_spill]] %s4214_s27  ;;  %s84_s28 = sadd.s32 1, %s4114_s23 }
   0x9   : > { %s81_s29 = ssub.s32 %s4118_s24, %s4214_s27  ;;  %p91_p0 = scmp.ne.s32.totalorder %s4114_s23, %s4110_s22 }
   0xa   : > { %p82_p1 = scmp.eq.s32.totalorder %s81_s29, 0  ;;  %p92_p2 = scmp.eq.s32.totalorder %s4118_s24, 0 }
   0xb   : > { %p310_p3 = scmp.eq.s32.totalorder %s4210_s25, 1  ;;  %p315_p4 = scmp.ne.s32.totalorder %s4110_s22, %s4106_s21 }
   0xc   : > { %s4226_s30 = scalar_select %p82_p1, %s4114_s23, %s84_s28  }
   0xd   : > { %p93_p5 = por %p92_p2, %p91_p0  ;;  %p4228_p6 = por %p310_p3, %p91_p0 }
   0xe   : > { %6145 = sst [smem:[#allocation8_spill]] %s4226_s30  ;;  %p316_p7 = scmp.eq.s32.totalorder %s2792_s26, 1 }
   0xf   : > { %p2794_p9 = scmp.ge.s32.totalorder %s4118_s24, 2 }
  0x10   : > { %p4232_p8 = por %p316_p7, %p315_p4 }
  0x11   : > { %359 = sbr.rel (%p2794_p9) target bundleno = 42 (0x2a), region = 52 }
  0x18   : > { %375 = sbr.rel (!%p93_p5) target bundleno = 42 (0x2a), region = 64  ;;  %s377_s15 = sand.u32 (%p93_p5), 1, %s4114_s23  }
  0x19   : > { %s3288_s16 = sshll.u32 (%p93_p5), %s4118_s24, 4  ;;  %s2795_s17 = sshll.u32 (%p93_p5), %s377_s15, 7 }
  0x1a   : > { %s6148_s2 = sld [smem:[#allocation9_spill]] (%p93_p5)  ;;  %s379_s26 = scalar_lea.vmem (%p93_p5), [#allocation2], %s2795_s17 }
  0x20   : > { %s4244_s20 = scalar_lea.vmem %s6148_s2, %s3288_s16 }
  0x21   : > { %v395_v0 = vld [vmem:[%s4244_s20] sm:$0xff]  ;;  %v397_v1 = vld [vmem:[%s4244_s20 + $0x8] sm:$0xff] }
  0x22   : > { %v399_v2 = vld [vmem:[%s4244_s20 + $0x20] sm:$0xff]  ;;  %396 = vst [vmem:[%s379_s26] sm:$0xff] %v395_v0  ;;  %398 = vst [vmem:[%s379_s26 + $0x8] sm:$0xff] %v397_v1  ;;  %v401_v3 = vld [vmem:[%s4244_s20 + $0x28] sm:$0xff] }
  0x23   : > { %400 = vst [vmem:[%s379_s26 + $0x10] sm:$0xff] %v399_v2  ;;  %v403_v4 = vld [vmem:[%s4244_s20 + $0x40] sm:$0xff]  ;;  %v405_v5 = vld [vmem:[%s4244_s20 + $0x48] sm:$0xff]  ;;  %402 = vst [vmem:[%s379_s26 + $0x18] sm:$0xff] %v401_v3 }
  0x24   : > { %404 = vst [vmem:[%s379_s26 + $0x20] sm:$0xff] %v403_v4  ;;  %406 = vst [vmem:[%s379_s26 + $0x28] sm:$0xff] %v405_v5  ;;  %v407_v6 = vld [vmem:[%s4244_s20 + $0x60] sm:$0xff]  ;;  %v409_v7 = vld [vmem:[%s4244_s20 + $0x68] sm:$0xff] }
  0x25   : > { %v411_v8 = vld [vmem:[%s4244_s20 + $0x80] sm:$0xff]  ;;  %408 = vst [vmem:[%s379_s26 + $0x30] sm:$0xff] %v407_v6  ;;  %410 = vst [vmem:[%s379_s26 + $0x38] sm:$0xff] %v409_v7  ;;  %v413_v9 = vld [vmem:[%s4244_s20 + $0x88] sm:$0xff] }
  0x26   : > { %412 = vst [vmem:[%s379_s26 + $0x40] sm:$0xff] %v411_v8  ;;  %v415_v10 = vld [vmem:[%s4244_s20 + $0xa0] sm:$0xff]  ;;  %v417_v11 = vld [vmem:[%s4244_s20 + $0xa8] sm:$0xff]  ;;  %414 = vst [vmem:[%s379_s26 + $0x48] sm:$0xff] %v413_v9 }
  0x27   : > { %416 = vst [vmem:[%s379_s26 + $0x50] sm:$0xff] %v415_v10  ;;  %418 = vst [vmem:[%s379_s26 + $0x58] sm:$0xff] %v417_v11  ;;  %v419_v12 = vld [vmem:[%s4244_s20 + $0xc0] sm:$0xff]  ;;  %v421_v13 = vld [vmem:[%s4244_s20 + $0xc8] sm:$0xff] }
  0x28   : > { %v423_v14 = vld [vmem:[%s4244_s20 + $0xe0] sm:$0xff]  ;;  %420 = vst [vmem:[%s379_s26 + $0x60] sm:$0xff] %v419_v12  ;;  %422 = vst [vmem:[%s379_s26 + $0x68] sm:$0xff] %v421_v13  ;;  %v425_v15 = vld [vmem:[%s4244_s20 + $0xe8] sm:$0xff] }
  0x29   : > { %424 = vst [vmem:[%s379_s26 + $0x70] sm:$0xff] %v423_v14  ;;  %426 = vst [vmem:[%s379_s26 + $0x78] sm:$0xff] %v425_v15 }
  0x2a PF: > { %p2798_p10 = scmp.ge.s32.totalorder %s4118_s24, 1  ;;  %p431_p11 = scmp.lt.s32.totalorder %s4118_s24, 3 }
  0x2c   : > { %p432_p12 = pnand %p2798_p10, %p431_p11 }
  0x2d   : > { %s6149_s3 = sld [smem:[#allocation10_spill]] (!%p432_p12)  ;;  %p486_p13 = scmp.lt.s32.totalorder (!%p432_p12), %s4210_s25, 1  ;;  %v4120_v18 = vmov (!%p432_p12), 0.0|0.0   ;;  %vm4121_vm0 = vmmov (!%p432_p12), 0   ;;  %v4122_v20 = vmov (!%p432_p12), 0.0   ;;  %v589_v21 = vld [vmem:[%s6130_s5 + $0x8] sm:$0xff] (!%p432_p12) }
  0x2e   : > { %435 = sbr.rel (%p432_p12) target bundleno = 4427 (0x114b), region = 87  ;;  %3403 = vmatprep.subr.bf16.mxu0 (!%p432_p12), %v4120_v18  ;;  %3330 = vmatprep.mubr.msk.f32.mxu0 (!%p432_p12), %vm4121_vm0, %v4122_v20  ;;  %v591_v22 = vld [vmem:[%s6130_s5 + $0x18] sm:$0xff] (!%p432_p12)  ;;  %v588_v23 = vld [vmem:[%s6130_s5] sm:$0xff] (!%p432_p12)  ;;  %v590_v25 = vld [vmem:[%s6130_s5 + $0x10] sm:$0xff] (!%p432_p12)  ;;  %vm511_vm1 = vcmask (!%p432_p12), 130048   ;;  %s4556_s23 = sand.u32 (!%p432_p12), 1, %s4110_s22  }
  0x2f   : > { %v3406_v24 = vpack.c.bf16 (!%p432_p12), %v591_v22, %v589_v21  ;;  %v593_v26 = vld [vmem:[%s6130_s5 + $0x28] sm:$0xff] (!%p432_p12)  ;;  %v595_v27 = vld [vmem:[%s6130_s5 + $0x38] sm:$0xff] (!%p432_p12)  ;;  %686 = vmatprep.mubr.f32.mxu1 (!%p432_p12), %v4122_v20  ;;  %v3408_v28 = vpack.c.bf16 (!%p432_p12), %v590_v25, %v588_v23  ;;  %v592_v30 = vld [vmem:[%s6130_s5 + $0x20] sm:$0xff] (!%p432_p12)  ;;  %s2799_s30 = sshll.u32 (!%p432_p12), %s4556_s23, 7  ;;  %s2800_s16 = sshll.u32 (!%p432_p12), %s4556_s23, 3 }
  0x30   : > { %v3410_v29 = vpack.c.bf16 (!%p432_p12), %v595_v27, %v593_v26  ;;  %v594_v31 = vld [vmem:[%s6130_s5 + $0x30] sm:$0xff] (!%p432_p12)  ;;  %v597_v32 = vld [vmem:[%s6130_s5 + $0x48] sm:$0xff] (!%p432_p12)  ;;  %v599_v33 = vld [vmem:[%s6130_s5 + $0x58] sm:$0xff] (!%p432_p12)  ;;  %s4559_s2 = scalar_lea.vmem (!%p432_p12), [#allocation2], %s2799_s30  ;;  %s3285_s19 = sshll.u32 (!%p432_p12), %s4210_s25, 7 }
  0x31   : > { %3407 = vmatprep.subr.bf16.mxu1 (!%p432_p12), %v3406_v24  ;;  %v3412_v35 = vpack.c.bf16 (!%p432_p12), %v594_v31, %v592_v30  ;;  %v3414_v37 = vpack.c.bf16 (!%p432_p12), %v599_v33, %v597_v32  ;;  %v596_v38 = vld [vmem:[%s6130_s5 + $0x40] sm:$0xff] (!%p432_p12)  ;;  %v598_v39 = vld [vmem:[%s6130_s5 + $0x50] sm:$0xff] (!%p432_p12)  ;;  %v601_v41 = vld [vmem:[%s6130_s5 + $0x68] sm:$0xff] (!%p432_p12)  ;;  %s485_s20 = scalar_lea.vmem (!%p432_p12), [#allocation3], %s2800_s16  ;;  %s2693_s15 = scalar_lea.sflag (!%p432_p12), [#allocation4], %s4556_s23 }
  0x32   : > { %3409 = vmatpush1.bf16.msra.mxu1 (!%p432_p12), %v3408_v28  ;;  %v603_v42 = vld [vmem:[%s6130_s5 + $0x78] sm:$0xff] (!%p432_p12)  ;;  %v3416_v43 = vpack.c.bf16 (!%p432_p12), %v598_v39, %v596_v38  ;;  %v600_v45 = vld [vmem:[%s6130_s5 + $0x60] sm:$0xff] (!%p432_p12)  ;;  %v602_v46 = vld [vmem:[%s6130_s5 + $0x70] sm:$0xff] (!%p432_p12)  ;;  %s2706_s26 = sshll.u32 (!%p432_p12), %s485_s20, 4  ;;  %s6082_s26 = int_to_ptr.vmem [resolvable:$true] %s2706_s26 }
  0x33   : > { %v502_v16 = vld [vmem:[%s6149_s3] sm:$0xff] (!%p432_p12)  ;;  %v503_v17 = vld [vmem:[%s6149_s3 + $0x8] sm:$0xff] (!%p432_p12)  ;;  %3411 = vmatprep.subr.bf16.mxu1 (!%p432_p12), %v3410_v29  ;;  %v3418_v44 = vpack.c.bf16 (!%p432_p12), %v603_v42, %v601_v41  ;;  %v607_v48 = vld [vmem:[%s6130_s5 + $0x98] sm:$0xff] (!%p432_p12)  ;;  %v3420_v49 = vpack.c.bf16 (!%p432_p12), %v602_v46, %v600_v45  ;;  %s4056_s30 = scalar_lea.vmem (!%p432_p12), %s6082_s26, 128 }
  0x34   : > { %v3404_v19 = vpack.c.bf16 (!%p432_p12), %v503_v17, %v502_v16  ;;  %v605_v47 = vld [vmem:[%s6130_s5 + $0x88] sm:$0xff] (!%p432_p12)  ;;  %v604_v51 = vld [vmem:[%s6130_s5 + $0x80] sm:$0xff] (!%p432_p12)  ;;  %v606_v52 = vld [vmem:[%s6130_s5 + $0x90] sm:$0xff] (!%p432_p12)  ;;  %p4057_p0 = scmp.ne.s32.totalorder (!%p432_p12), %s6082_s26, %s4056_s30 }
  0x35   : > { %s487_s29 = scalar_select %p486_p13, %s4210_s25, 1  ;;  %v3422_v50 = vpack.c.bf16 %v607_v48, %v605_v47  ;;  %v609_v53 = vld [vmem:[%s6130_s5 + $0xa8] sm:$0xff]  ;;  %v611_v54 = vld [vmem:[%s6130_s5 + $0xb8] sm:$0xff]  ;;  %v3424_v55 = vpack.c.bf16 %v606_v52, %v604_v51  ;;  %v608_v57 = vld [vmem:[%s6130_s5 + $0xa0] sm:$0xff] }
  0x36   : > { %3405 = vmatpush3.bf16.msra.mxu0 %v3404_v19  ;;  %3413 = vmatpush1.bf16.msra.mxu1 %v3412_v35  ;;  %v3426_v56 = vpack.c.bf16 %v611_v54, %v609_v53  ;;  %v610_v58 = vld [vmem:[%s6130_s5 + $0xb0] sm:$0xff]  ;;  %v613_v59 = vld [vmem:[%s6130_s5 + $0xc8] sm:$0xff]  ;;  %v615_v60 = vld [vmem:[%s6130_s5 + $0xd8] sm:$0xff]  ;;  %p4058_p1 = pnand %p4057_p0, %p4228_p6  ;;  %s4123_s25 = smov [#allocation3]  }
  0x37   : > { %s2801_s3 = sshll.u32 %s487_s29, 3  ;;  %s492_s18 = scalar_lea.vmem %s6126_s1, %s487_s29  ;;  %3415 = vmatprep.subr.bf16.mxu1 %v3414_v37  ;;  %v3428_v61 = vpack.c.bf16 %v610_v58, %v608_v57  ;;  %v3430_v62 = vpack.c.bf16 %v615_v60, %v613_v59  ;;  %v612_v63 = vld [vmem:[%s6130_s5 + $0xc0] sm:$0xff]  ;;  %v614_v0 = vld [vmem:[%s6130_s5 + $0xd0] sm:$0xff]  ;;  %v617_v2 = vld [vmem:[%s6130_s5 + $0xe8] sm:$0xff] }
  0x38   : > { %s489_s27 = scalar_lea.vmem %s6125_s0, %s2801_s3  ;;  %v2802_v34 = vld [vmem:[%s492_s18] ss:$0 sm:$0xff]  ;;  %v3432_v1 = vpack.c.bf16 %v614_v0, %v612_v63  ;;  %v619_v3 = vld [vmem:[%s6130_s5 + $0xf8] sm:$0xff]  ;;  %v618_v6 = vld [vmem:[%s6130_s5 + $0xf0] sm:$0xff]  ;;  %p4059_p2 = pneg %p4058_p1 }
  0x39   : > { %v493_v36 = vld [vmem:[%s489_s27] sm:$0xff]  ;;  %v3434_v4 = vpack.c.bf16 %v619_v3, %v617_v2  ;;  %v702_v8 = vld [vmem:[%s6131_s6 + $0x8] sm:$0xff]  ;;  %v704_v9 = vld [vmem:[%s6131_s6 + $0x18] sm:$0xff]  ;;  %s4060_s3 = sshll.u32 %s4123_s25, 4  ;;  %s4061_s3 = int_to_ptr.vmem [resolvable:$false] %s4060_s3 }
  0x3a   : > { %v501_v40 = vmul.f32 %v2802_v34, %v493_v36  ;;  %3417 = vmatpush1.bf16.msra.mxu1 %v3416_v43  ;;  %v616_v5 = vld [vmem:[%s6130_s5 + $0xe0] sm:$0xff]  ;;  %v3438_v10 = vpack.c.bf16 %v704_v9, %v702_v8  ;;  %v703_v19 = vld [vmem:[%s6131_s6 + $0x10] sm:$0xff]  ;;  %v706_v22 = vld [vmem:[%s6131_s6 + $0x28] sm:$0xff]  ;;  %s4062_s27 = scalar_lea.vmem %s4061_s3, 256  ;;  %p4063_p3 = scmp.lt.s32.totalorder %s6082_s26, %s4061_s3 }
  0x3b   : > { %3419 = vmatprep.subr.bf16.mxu1 %v3418_v44  ;;  %v3436_v7 = vpack.c.bf16 %v618_v6, %v616_v5  ;;  %v2803_v11 = vld [vmem:[%s6129_s4] ss:$0 sm:$0xff]  ;;  %v708_v23 = vld [vmem:[%s6131_s6 + $0x38] sm:$0xff]  ;;  %v707_v26 = vld [vmem:[%s6131_s6 + $0x30] sm:$0xff]  ;;  %p4064_p4 = scmp.lt.s32.totalorder %s4062_s27, %s4056_s30 }
  0x3c   : > { %3331 = vmatmul.mubr.msk.f32.vlgmr.msra.gmra.mrb[0].mxu0 %vm511_vm1, %v501_v40  ;;  %3439 = vmatprep.subr.bf16.mxu0 %v3438_v10  ;;  %v701_v17 = vld [vmem:[%s6131_s6] sm:$0xff]  ;;  %v3442_v24 = vpack.c.bf16 %v708_v23, %v706_v22  ;;  %v710_v28 = vld [vmem:[%s6131_s6 + $0x48] sm:$0xff]  ;;  %v712_v29 = vld [vmem:[%s6131_s6 + $0x58] sm:$0xff] }
  0x3d   : > { %809 = vmatprep.mubr.f32.mxu0 %v4122_v20  ;;  %v3440_v21 = vpack.c.bf16 %v703_v19, %v701_v17  ;;  %v705_v25 = vld [vmem:[%s6131_s6 + $0x20] sm:$0xff]  ;;  %v3446_v30 = vpack.c.bf16 %v712_v29, %v710_v28  ;;  %v711_v32 = vld [vmem:[%s6131_s6 + $0x50] sm:$0xff]  ;;  %v714_v34 = vld [vmem:[%s6131_s6 + $0x68] sm:$0xff]  ;;  %p4065_p5 = por %p4064_p4, %p4063_p3 }
  0x3e   : > { %3421 = vmatpush1.bf16.msra.mxu1 %v3420_v49  ;;  %v3444_v27 = vpack.c.bf16 %v707_v26, %v705_v25  ;;  %v709_v31 = vld [vmem:[%s6131_s6 + $0x40] sm:$0xff]  ;;  %v716_v35 = vld [vmem:[%s6131_s6 + $0x78] sm:$0xff]  ;;  %v715_v38 = vld [vmem:[%s6131_s6 + $0x70] sm:$0xff] }
  0x3f   : > { %3423 = vmatprep.subr.bf16.mxu1 %v3422_v50  ;;  %3441 = vmatpush1.bf16.msra.mxu0 %v3440_v21  ;;  %v3448_v33 = vpack.c.bf16 %v711_v32, %v709_v31  ;;  %v3450_v36 = vpack.c.bf16 %v716_v35, %v714_v34  ;;  %v713_v37 = vld [vmem:[%s6131_s6 + $0x60] sm:$0xff]  ;;  %v718_v40 = vld [vmem:[%s6131_s6 + $0x88] sm:$0xff]  ;;  %v720_v41 = vld [vmem:[%s6131_s6 + $0x98] sm:$0xff]  ;;  %p4066_p7 = pnand %p4065_p5, %p4059_p2 }
  0x40   : > { %3443 = vmatprep.subr.bf16.mxu0 %v3442_v24  ;;  %v3452_v39 = vpack.c.bf16 %v715_v38, %v713_v37  ;;  %v3454_v42 = vpack.c.bf16 %v720_v41, %v718_v40  ;;  %v717_v43 = vld [vmem:[%s6131_s6 + $0x80] sm:$0xff]  ;;  %v719_v44 = vld [vmem:[%s6131_s6 + $0x90] sm:$0xff]  ;;  %v722_v46 = vld [vmem:[%s6131_s6 + $0xa8] sm:$0xff] }
  0x41   : > { %v3456_v45 = vpack.c.bf16 %v719_v44, %v717_v43  ;;  %v724_v47 = vld [vmem:[%s6131_s6 + $0xb8] sm:$0xff]  ;;  %v721_v49 = vld [vmem:[%s6131_s6 + $0xa0] sm:$0xff]  ;;  %v723_v50 = vld [vmem:[%s6131_s6 + $0xb0] sm:$0xff] }
  0x42   : > { %3425 = vmatpush1.bf16.msra.mxu1 %v3424_v55  ;;  %v3458_v48 = vpack.c.bf16 %v724_v47, %v722_v46  ;;  %v3460_v51 = vpack.c.bf16 %v723_v50, %v721_v49  ;;  %v726_v52 = vld [vmem:[%s6131_s6 + $0xc8] sm:$0xff]  ;;  %v728_v53 = vld [vmem:[%s6131_s6 + $0xd8] sm:$0xff]  ;;  %v725_v54 = vld [vmem:[%s6131_s6 + $0xc0] sm:$0xff] }
  0x43   : > { %3427 = vmatprep.subr.bf16.mxu1 %v3426_v56  ;;  %3445 = vmatpush1.bf16.msra.mxu0 %v3444_v27  ;;  %v3462_v55 = vpack.c.bf16 %v728_v53, %v726_v52  ;;  %v727_v56 = vld [vmem:[%s6131_s6 + $0xd0] sm:$0xff]  ;;  %v730_v57 = vld [vmem:[%s6131_s6 + $0xe8] sm:$0xff]  ;;  %v732_v58 = vld [vmem:[%s6131_s6 + $0xf8] sm:$0xff] }
  0x44   : > { %3447 = vmatprep.subr.bf16.mxu0 %v3446_v30  ;;  %v3464_v59 = vpack.c.bf16 %v727_v56, %v725_v54  ;;  %v3466_v60 = vpack.c.bf16 %v732_v58, %v730_v57  ;;  %v2807_v0 = vld [vmem:[%s6130_s5 + $0x108] sm:$0xff]  ;;  %v2806_v2 = vld [vmem:[%s6130_s5 + $0x100] sm:$0xff]  ;;  %v2813_v6 = vld [vmem:[%s6130_s5 + $0x138] sm:$0xff] }
  0x45   : > { %v2811_v5 = vld [vmem:[%s6130_s5 + $0x128] sm:$0xff]  ;;  %v2810_v9 = vld [vmem:[%s6130_s5 + $0x120] sm:$0xff]  ;;  %v2812_v10 = vld [vmem:[%s6130_s5 + $0x130] sm:$0xff] }
  0x46   : > { %3429 = vmatpush1.bf16.msra.mxu1 %v3428_v61  ;;  %v729_v61 = vld [vmem:[%s6131_s6 + $0xe0] sm:$0xff]  ;;  %v3474_v8 = vpack.c.bf16 %v2813_v6, %v2811_v5  ;;  %v2816_v17 = vld [vmem:[%s6130_s5 + $0x150] sm:$0xff]  ;;  %v2819_v19 = vld [vmem:[%s6130_s5 + $0x168] sm:$0xff] }
  0x47   : > { %3431 = vmatprep.subr.bf16.mxu1 %v3430_v62  ;;  %3449 = vmatpush1.bf16.msra.mxu0 %v3448_v33  ;;  %v731_v62 = vld [vmem:[%s6131_s6 + $0xf0] sm:$0xff]  ;;  %v2821_v21 = vld [vmem:[%s6130_s5 + $0x178] sm:$0xff]  ;;  %v2818_v24 = vld [vmem:[%s6130_s5 + $0x160] sm:$0xff] }
  0x48   : > { %3451 = vmatprep.subr.bf16.mxu0 %v3450_v36  ;;  %v3468_v63 = vpack.c.bf16 %v731_v62, %v729_v61  ;;  %v3482_v23 = vpack.c.bf16 %v2821_v21, %v2819_v19  ;;  %v2820_v25 = vld [vmem:[%s6130_s5 + $0x170] sm:$0xff]  ;;  %v2823_v26 = vld [vmem:[%s6130_s5 + $0x188] sm:$0xff]  ;;  %v2825_v27 = vld [vmem:[%s6130_s5 + $0x198] sm:$0xff] }
  0x49   : > { %v3484_v28 = vpack.c.bf16 %v2820_v25, %v2818_v24  ;;  %v3486_v29 = vpack.c.bf16 %v2825_v27, %v2823_v26  ;;  %v2822_v30 = vld [vmem:[%s6130_s5 + $0x180] sm:$0xff]  ;;  %v2824_v31 = vld [vmem:[%s6130_s5 + $0x190] sm:$0xff]  ;;  %v2827_v32 = vld [vmem:[%s6130_s5 + $0x1a8] sm:$0xff] }
  0x4a   : > { %3433 = vmatpush1.bf16.msra.mxu1 %v3432_v1  ;;  %v2809_v1 = vld [vmem:[%s6130_s5 + $0x118] sm:$0xff]  ;;  %v3488_v34 = vpack.c.bf16 %v2824_v31, %v2822_v30  ;;  %v2826_v36 = vld [vmem:[%s6130_s5 + $0x1a0] sm:$0xff]  ;;  %v2828_v37 = vld [vmem:[%s6130_s5 + $0x1b0] sm:$0xff] }
  0x4b   : > { %3435 = vmatprep.subr.bf16.mxu1 %v3434_v4  ;;  %3453 = vmatpush1.bf16.msra.mxu0 %v3452_v39  ;;  %v3470_v3 = vpack.c.bf16 %v2809_v1, %v2807_v0  ;;  %v2808_v4 = vld [vmem:[%s6130_s5 + $0x110] sm:$0xff]  ;;  %v2829_v33 = vld [vmem:[%s6130_s5 + $0x1b8] sm:$0xff]  ;;  %v3492_v38 = vpack.c.bf16 %v2828_v37, %v2826_v36  ;;  %v620_v39 = vld [vmem:[%s4559_s2] sm:$0xff] }
  0x4c   : > { %3455 = vmatprep.subr.bf16.mxu0 %v3454_v42  ;;  %v3490_v35 = vpack.c.bf16 %v2829_v33, %v2827_v32  ;;  %v621_v44 = vld [vmem:[%s4559_s2 + $0x8] sm:$0xff]  ;;  %v2833_v52 = vld [vmem:[%s6130_s5 + $0x1d8] sm:$0xff]  ;;  %v2830_v54 = vld [vmem:[%s6130_s5 + $0x1c0] sm:$0xff] }
  0x4d   : > { %v2835_v57 = vld [vmem:[%s6130_s5 + $0x1e8] sm:$0xff]  ;;  %v2837_v58 = vld [vmem:[%s6130_s5 + $0x1f8] sm:$0xff]  ;;  %v2836_v61 = vld [vmem:[%s6130_s5 + $0x1f0] sm:$0xff] }
  0x4e   : > { %3437 = vmatpush1.bf16.msra.mxu1 %v3436_v7  ;;  %v3472_v7 = vpack.c.bf16 %v2808_v4, %v2806_v2  ;;  %v2844_v0 = vld [vmem:[%s6131_s6 + $0x118] sm:$0xff]  ;;  %v735_v2 = vlaneseq  ;;  %v733_v5 = vld [vmem:[%s6132_s7] sm:$0x3]  ;;  %v2843_v21 = vld [vmem:[%s6131_s6 + $0x110] sm:$0xff] }
  0x4f   : > { %3457 = vmatpush1.bf16.msra.mxu0 %v3456_v45  ;;  %3471 = vmatprep.subr.bf16.mxu1 %v3470_v3  ;;  %v2841_v19 = vld [vmem:[%s6131_s6 + $0x100] sm:$0xff]  ;;  %v2847_v26 = vld [vmem:[%s6131_s6 + $0x130] sm:$0xff] }
  0x50   : > { %3459 = vmatprep.subr.bf16.mxu0 %v3458_v48  ;;  %v736_v3 = vshrl.u32 %v735_v2, 7  ;;  %v2845_v25 = vld [vmem:[%s6131_s6 + $0x120] sm:$0xff]  ;;  %v2851_v32 = vld [vmem:[%s6131_s6 + $0x150] sm:$0xff] }
  0x51   : > { %v3508_v27 = vpack.c.bf16 %v2847_v26, %v2845_v25  ;;  %v2849_v31 = vld [vmem:[%s6131_s6 + $0x140] sm:$0xff] }
  0x52   : > { %v4594_v4 = vsub.s32 0, %v736_v3  ;;  %v4599_v6 = vsub.s32 1, %v736_v3  ;;  %v3512_v33 = vpack.c.bf16 %v2851_v32, %v2849_v31  ;;  %v2853_v37 = vld [vmem:[%s6131_s6 + $0x160] sm:$0xff] }
  0x53   : > { %3461 = vmatpush1.bf16.msra.mxu0 %v3460_v51  ;;  %v2831_v51 = vld [vmem:[%s6130_s5 + $0x1c8] sm:$0xff]  ;;  %v2874_v2 = vld [vmem:[%s6130_s5 + $0x200] sm:$0xff] }
  0x54   : > { %3463 = vmatprep.subr.bf16.mxu0 %v3462_v55  ;;  %v3494_v53 = vpack.c.bf16 %v2833_v52, %v2831_v51  ;;  %v2832_v55 = vld [vmem:[%s6130_s5 + $0x1d0] sm:$0xff]  ;;  %v2866_v52 = vld [vmem:[%s6131_s6 + $0x1c8] sm:$0xff] }
  0x55   : > { %v3496_v56 = vpack.c.bf16 %v2832_v55, %v2830_v54  ;;  %v2865_v54 = vld [vmem:[%s6131_s6 + $0x1c0] sm:$0xff] }
  0x57   : > { %3465 = vmatpush1.bf16.msra.mxu0 %v3464_v59  ;;  %v3498_v59 = vpack.c.bf16 %v2837_v58, %v2835_v57  ;;  %v2870_v57 = vld [vmem:[%s6131_s6 + $0x1e8] sm:$0xff]  ;;  %v2872_v58 = vld [vmem:[%s6131_s6 + $0x1f8] sm:$0xff] }
  0x58   : > { %3467 = vmatprep.subr.bf16.mxu0 %v3466_v60  ;;  %v2834_v60 = vld [vmem:[%s6130_s5 + $0x1e0] sm:$0xff] }
  0x59   : > { %v3500_v62 = vpack.c.bf16 %v2836_v61, %v2834_v60  ;;  %v3530_v60 = vpack.c.bf16 %v2872_v58, %v2870_v57  ;;  %v2869_v61 = vld [vmem:[%s6131_s6 + $0x1e0] sm:$0xff]  ;;  %v2900_v58 = vld [vmem:[%s6130_s5 + $0x2d0] sm:$0xff] }
  0x5a   : > { %v2898_v57 = vld [vmem:[%s6130_s5 + $0x2c0] sm:$0xff] }
  0x5b   : > { %3469 = vmatpush1.bf16.msra.mxu0 %v3468_v63  ;;  %v2842_v63 = vld [vmem:[%s6131_s6 + $0x108] sm:$0xff] }
  0x5c   : > { %v3502_v1 = vpack.c.bf16 %v2844_v0, %v2842_v63  ;;  %v2875_v0 = vld [vmem:[%s6130_s5 + $0x208] sm:$0xff] }
  0x5e   : > { %3503 = vmatprep.subr.bf16.mxu0 %v3502_v1  ;;  %v2877_v1 = vld [vmem:[%s6130_s5 + $0x218] sm:$0xff] }
  0x5f   : > { %v3534_v3 = vpack.c.bf16 %v2877_v1, %v2875_v0  ;;  %v2904_v0 = vld [vmem:[%s6130_s5 + $0x2f0] sm:$0xff] }
 0x10f   : > { %v581_v12 = vpop.f32.mrb[0].mxu0 }
 0x110   : > { %v582_v13 = vadd.f32 %v2803_v11, %v581_v12  ;;  %v3332_v14 = vpop.f32.mrb[1].mxu0  ;;  %v2815_v11 = vld [vmem:[%s6130_s5 + $0x148] sm:$0xff]  ;;  %v2817_v12 = vld [vmem:[%s6130_s5 + $0x158] sm:$0xff] }
 0x111   : > { %v3478_v14 = vpack.c.bf16 %v2817_v12, %v2815_v11 }
 0x112   : > { %v586_v15 = vmul.f32 0.4, %v582_v13  ;;  %vm585_vm2 = vcmp.ge.f32.partialorder %v582_v13, 0.0 }
 0x114   : > { %v4389_v16 = vsel %vm585_vm2, %v582_v13, %v586_v15  ;;  %v3476_v13 = vpack.c.bf16 %v2812_v10, %v2810_v9  ;;  %v2814_v15 = vld [vmem:[%s6130_s5 + $0x140] sm:$0xff] }
 0x115   : > { %687 = vmatmul.mubr.f32.vlgmr.msra.gmra.mrb[0].mxu1 %v4389_v16  ;;  %v3480_v22 = vpack.c.bf16 %v2816_v17, %v2814_v15 }
 0x116   : > { %925 = vmatprep.mubr.f32.mxu1 %v4122_v20  ;;  %3473 = vmatpush1.bf16.msra.mxu1 %v3472_v7  ;;  %v738_v7 = vrot.slane %v733_v5, %v4594_v4 }
 0x117   : > { %3475 = vmatprep.subr.bf16.mxu1 %v3474_v8  ;;  %v742_v8 = vrot.slane %v733_v5, %v4599_v6  ;;  %v2876_v5 = vld [vmem:[%s6130_s5 + $0x210] sm:$0xff] }
 0x11a   : > { %3477 = vmatpush1.bf16.msra.mxu1 %v3476_v13 }
 0x11b   : > { %3479 = vmatprep.subr.bf16.mxu1 %v3478_v14 }
 0x11e   : > { %3481 = vmatpush1.bf16.msra.mxu1 %v3480_v22  ;;  %v3504_v22 = vpack.c.bf16 %v2843_v21, %v2841_v19 }
 0x11f   : > { %3483 = vmatprep.subr.bf16.mxu1 %v3482_v23  ;;  %v2848_v23 = vld [vmem:[%s6131_s6 + $0x138] sm:$0xff] }
 0x122   : > { %3485 = vmatpush1.bf16.msra.mxu1 %v3484_v28  ;;  %v2850_v28 = vld [vmem:[%s6131_s6 + $0x148] sm:$0xff] }
 0x123   : > { %3487 = vmatprep.subr.bf16.mxu1 %v3486_v29  ;;  %v2852_v29 = vld [vmem:[%s6131_s6 + $0x158] sm:$0xff] }
 0x124   : > { %v3510_v30 = vpack.c.bf16 %v2852_v29, %v2850_v28  ;;  %v2888_v28 = vld [vmem:[%s6130_s5 + $0x270] sm:$0xff]  ;;  %v2891_v29 = vld [vmem:[%s6130_s5 + $0x288] sm:$0xff] }
 0x126   : > { %3489 = vmatpush1.bf16.msra.mxu1 %v3488_v34  ;;  %v2854_v34 = vld [vmem:[%s6131_s6 + $0x168] sm:$0xff] }
 0x127   : > { %3491 = vmatprep.subr.bf16.mxu1 %v3490_v35  ;;  %v2856_v35 = vld [vmem:[%s6131_s6 + $0x178] sm:$0xff] }
 0x128   : > { %v3514_v36 = vpack.c.bf16 %v2856_v35, %v2854_v34  ;;  %v2892_v34 = vld [vmem:[%s6130_s5 + $0x290] sm:$0xff]  ;;  %v2895_v35 = vld [vmem:[%s6130_s5 + $0x2a8] sm:$0xff] }
 0x12a   : > { %3493 = vmatpush1.bf16.msra.mxu1 %v3492_v38  ;;  %v2855_v38 = vld [vmem:[%s6131_s6 + $0x170] sm:$0xff] }
 0x12b   : > { %3495 = vmatprep.subr.bf16.mxu1 %v3494_v53  ;;  %v2868_v53 = vld [vmem:[%s6131_s6 + $0x1d8] sm:$0xff] }
 0x12c   : > { %v3526_v55 = vpack.c.bf16 %v2868_v53, %v2866_v52 }
 0x12e   : > { %3497 = vmatpush1.bf16.msra.mxu1 %v3496_v56  ;;  %v2867_v56 = vld [vmem:[%s6131_s6 + $0x1d0] sm:$0xff] }
 0x12f   : > { %3499 = vmatprep.subr.bf16.mxu1 %v3498_v59  ;;  %v3528_v59 = vpack.c.bf16 %v2867_v56, %v2865_v54  ;;  %v2899_v54 = vld [vmem:[%s6130_s5 + $0x2c8] sm:$0xff] }
 0x132   : > { %3501 = vmatpush1.bf16.msra.mxu1 %v3500_v62  ;;  %v2871_v62 = vld [vmem:[%s6131_s6 + $0x1f0] sm:$0xff] }
 0x133   : > { %v3532_v63 = vpack.c.bf16 %v2871_v62, %v2869_v61  ;;  %3535 = vmatprep.subr.bf16.mxu1 %v3534_v3  ;;  %v2905_v61 = vld [vmem:[%s6130_s5 + $0x2f8] sm:$0xff] }
 0x134   : > { %v2912_v3 = vld [vmem:[%s6131_s6 + $0x218] sm:$0xff] }
 0x1e8   : > { %v688_v40 = vpop.f32.mrb[0].mxu1 }
 0x1e9   : > { %v689_v41 = vadd.f32 %v688_v40, %v620_v39  ;;  %v690_v42 = vpop.f32.mrb[1].mxu1  ;;  %v3516_v39 = vpack.c.bf16 %v2855_v38, %v2853_v37  ;;  %v2858_v40 = vld [vmem:[%s6131_s6 + $0x188] sm:$0xff] }
 0x1ea   : > { %v691_v45 = vadd.f32 %v690_v42, %v621_v44  ;;  %v2859_v44 = vld [vmem:[%s6131_s6 + $0x190] sm:$0xff] }
 0x1eb   : > { %v2805_v43 = vmul.f32 -1.442695, %v689_v41  ;;  %v2860_v41 = vld [vmem:[%s6131_s6 + $0x198] sm:$0xff] }
 0x1ec   : > { %v3518_v42 = vpack.c.bf16 %v2860_v41, %v2858_v40  ;;  %v2896_v40 = vld [vmem:[%s6130_s5 + $0x2b0] sm:$0xff] }
 0x1ed   : > { %4008 = vpow2.f32 %v2805_v43  ;;  %v2857_v43 = vld [vmem:[%s6131_s6 + $0x180] sm:$0xff] }
 0x1ee   : > { %4010 = vtanh.f32 %v691_v45  ;;  %v3520_v45 = vpack.c.bf16 %v2859_v44, %v2857_v43 }
 0x1f7   : > { %v4009_v46 = vpop.eup %4008 }
 0x1f8   : > { %v696_v47 = vadd.f32 1.0, %v4009_v46  ;;  %v4011_v48 = vpop.eup %4010  ;;  %v2862_v46 = vld [vmem:[%s6131_s6 + $0x1a8] sm:$0xff] }
 0x1fa   : > { %4012 = vrcp.f32 %v696_v47  ;;  %v2864_v47 = vld [vmem:[%s6131_s6 + $0x1b8] sm:$0xff] }
 0x204   : > { %v4013_v49 = vpop.eup %4012 }
 0x205   : > { %v700_v50 = vmul.f32 %v4013_v49, %v4011_v48  ;;  %v3522_v48 = vpack.c.bf16 %v2864_v47, %v2862_v46  ;;  %v2861_v49 = vld [vmem:[%s6131_s6 + $0x1a0] sm:$0xff]  ;;  %v2839_v47 = vld [vmem:[%s4559_s2 + $0x18] sm:$0xff] }
 0x207   : > { %810 = vmatmul.mubr.f32.vlgmr.msra.gmra.mrb[2].mxu0 %v700_v50  ;;  %v2863_v50 = vld [vmem:[%s6131_s6 + $0x1b0] sm:$0xff] }
 0x208   : > { %1050 = vmatprep.mubr.f32.mxu0 %v4122_v20  ;;  %3505 = vmatpush1.bf16.msra.mxu0 %v3504_v22  ;;  %v3524_v51 = vpack.c.bf16 %v2863_v50, %v2861_v49  ;;  %v2882_v22 = vld [vmem:[%s6130_s5 + $0x240] sm:$0xff] }
 0x2da   : > { %v811_v9 = vpop.f32.mrb[2].mxu0 }
 0x2db   : > { %v812_v10 = vadd.f32 %v811_v9, %v738_v7  ;;  %v813_v11 = vpop.f32.mrb[3].mxu0  ;;  %v2879_v7 = vld [vmem:[%s6130_s5 + $0x228] sm:$0xff]  ;;  %v3536_v9 = vpack.c.bf16 %v2876_v5, %v2874_v2 }
 0x2dc   : > { %v4603_v12 = vadd.f32 %v813_v11, %v742_v8  ;;  %v2881_v8 = vld [vmem:[%s6130_s5 + $0x238] sm:$0xff]  ;;  %v2878_v11 = vld [vmem:[%s6130_s5 + $0x220] sm:$0xff]  ;;  %v2910_v2 = vld [vmem:[%s6131_s6 + $0x208] sm:$0xff] }
 0x2dd   : > { %vm816_vm3 = vcmp.ge.f32.partialorder %v812_v10, 0.0  ;;  %v818_v13 = vmul.f32 0.4, %v812_v10  ;;  %v3566_v5 = vpack.c.bf16 %v2912_v3, %v2910_v2  ;;  %v2937_v3 = vld [vmem:[%s6131_s6 + $0x2e0] sm:$0xff] }
 0x2de   : > { %vm817_vm4 = vcmp.ge.f32.partialorder %v4603_v12, 0.0 }
 0x2df   : > { %v820_v14 = vsel %vm816_vm3, %v812_v10, %v818_v13  ;;  %v3538_v10 = vpack.c.bf16 %v2881_v8, %v2879_v7  ;;  %v2880_v13 = vld [vmem:[%s6130_s5 + $0x230] sm:$0xff]  ;;  %v2873_v7 = vld [vmem:[%s6132_s7 + $0x2] sm:$0x3] }
 0x2e0   : > { %v822_v15 = vadd.f32 %v820_v14, %v4389_v16  ;;  %v2846_v16 = vld [vmem:[%s6131_s6 + $0x128] sm:$0xff]  ;;  %v3540_v19 = vpack.c.bf16 %v2880_v13, %v2878_v11  ;;  %v979_v8 = vrot.slane %v2873_v7, %v4594_v4 }
 0x2e1   : > { %v3506_v24 = vpack.c.bf16 %v2848_v23, %v2846_v16  ;;  %v2883_v14 = vld [vmem:[%s6130_s5 + $0x248] sm:$0xff]  ;;  %v2884_v16 = vld [vmem:[%s6130_s5 + $0x250] sm:$0xff] }
 0x2e2   : > { %v4606_v17 = vmul.f32 0.70710677, %v822_v15  ;;  %v2885_v15 = vld [vmem:[%s6130_s5 + $0x258] sm:$0xff]  ;;  %v2887_v23 = vld [vmem:[%s6130_s5 + $0x268] sm:$0xff]  ;;  %v3544_v25 = vpack.c.bf16 %v2884_v16, %v2882_v22 }
 0x2e3   : > { %3507 = vmatprep.subr.bf16.mxu0 %v3506_v24  ;;  %v3542_v21 = vpack.c.bf16 %v2885_v15, %v2883_v14  ;;  %v2889_v24 = vld [vmem:[%s6130_s5 + $0x278] sm:$0xff]  ;;  %v819_v14 = vmul.f32 0.4, %v4603_v12 }
 0x2e4   : > { %926 = vmatmul.mubr.f32.vlgmr.msra.gmra.mrb[2].mxu1 %v4606_v17  ;;  %3509 = vmatpush1.bf16.msra.mxu0 %v3508_v27  ;;  %v3546_v26 = vpack.c.bf16 %v2889_v24, %v2887_v23  ;;  %v2886_v27 = vld [vmem:[%s6130_s5 + $0x260] sm:$0xff] }
 0x2e5   : > { %1166 = vmatprep.mubr.f32.mxu1 %v4122_v20  ;;  %3511 = vmatprep.subr.bf16.mxu0 %v3510_v30  ;;  %v2893_v30 = vld [vmem:[%s6130_s5 + $0x298] sm:$0xff]  ;;  %v3548_v31 = vpack.c.bf16 %v2888_v28, %v2886_v27  ;;  %v821_v16 = vsel %vm817_vm4, %v4603_v12, %v819_v14  ;;  %v2909_v27 = vld [vmem:[%s6131_s6 + $0x200] sm:$0xff]  ;;  %v2911_v28 = vld [vmem:[%s6131_s6 + $0x210] sm:$0xff] }
 0x2e6   : > { %3537 = vmatpush1.bf16.msra.mxu1 %v3536_v9  ;;  %v3550_v32 = vpack.c.bf16 %v2893_v30, %v2891_v29  ;;  %v983_v9 = vrot.slane %v2873_v7, %v4599_v6  ;;  %v3568_v12 = vpack.c.bf16 %v2911_v28, %v2909_v27  ;;  %v2916_v29 = vld [vmem:[%s6131_s6 + $0x238] sm:$0xff]  ;;  %v2947_v14 = vld [vmem:[%s6130_s5 + $0x328] sm:$0xff] }
 0x2e7   : > { %3539 = vmatprep.subr.bf16.mxu1 %v3538_v10 }
 0x2e8   : > { %3513 = vmatpush1.bf16.msra.mxu0 %v3512_v33  ;;  %v2890_v33 = vld [vmem:[%s6130_s5 + $0x280] sm:$0xff] }
 0x2e9   : > { %3515 = vmatprep.subr.bf16.mxu0 %v3514_v36  ;;  %v2897_v36 = vld [vmem:[%s6130_s5 + $0x2b8] sm:$0xff]  ;;  %v3552_v37 = vpack.c.bf16 %v2892_v34, %v2890_v33  ;;  %v2918_v34 = vld [vmem:[%s6131_s6 + $0x248] sm:$0xff] }
 0x2ea   : > { %3541 = vmatpush1.bf16.msra.mxu1 %v3540_v19  ;;  %v3554_v38 = vpack.c.bf16 %v2897_v36, %v2895_v35  ;;  %v2920_v35 = vld [vmem:[%s6131_s6 + $0x258] sm:$0xff] }
 0x2eb   : > { %3543 = vmatprep.subr.bf16.mxu1 %v3542_v21  ;;  %v3574_v36 = vpack.c.bf16 %v2920_v35, %v2918_v34  ;;  %v2956_v34 = vld [vmem:[%s6130_s5 + $0x370] sm:$0xff]  ;;  %v2959_v35 = vld [vmem:[%s6130_s5 + $0x388] sm:$0xff] }
 0x2ec   : > { %3517 = vmatpush1.bf16.msra.mxu0 %v3516_v39  ;;  %v2894_v39 = vld [vmem:[%s6130_s5 + $0x2a0] sm:$0xff] }
 0x2ed   : > { %3519 = vmatprep.subr.bf16.mxu0 %v3518_v42  ;;  %v3556_v41 = vpack.c.bf16 %v2896_v40, %v2894_v39  ;;  %v2838_v42 = vld [vmem:[%s4559_s2 + $0x10] sm:$0xff]  ;;  %v2922_v40 = vld [vmem:[%s6131_s6 + $0x268] sm:$0xff] }
 0x2ee   : > { %3545 = vmatpush1.bf16.msra.mxu1 %v3544_v25 }
 0x2ef   : > { %3547 = vmatprep.subr.bf16.mxu1 %v3546_v26 }
 0x2f0   : > { %3521 = vmatpush1.bf16.msra.mxu0 %v3520_v45 }
 0x2f1   : > { %3523 = vmatprep.subr.bf16.mxu0 %v3522_v48 }
 0x2f2   : > { %3549 = vmatpush1.bf16.msra.mxu1 %v3548_v31  ;;  %v2913_v31 = vld [vmem:[%s6131_s6 + $0x220] sm:$0xff] }
 0x2f3   : > { %3551 = vmatprep.subr.bf16.mxu1 %v3550_v32  ;;  %v2915_v32 = vld [vmem:[%s6131_s6 + $0x230] sm:$0xff] }
 0x2f4   : > { %3525 = vmatpush1.bf16.msra.mxu0 %v3524_v51  ;;  %v3572_v33 = vpack.c.bf16 %v2915_v32, %v2913_v31 }
 0x2f5   : > { %3527 = vmatprep.subr.bf16.mxu0 %v3526_v55  ;;  %v2901_v55 = vld [vmem:[%s6130_s5 + $0x2d8] sm:$0xff] }
 0x2f6   : > { %3553 = vmatpush1.bf16.msra.mxu1 %v3552_v37  ;;  %v3558_v56 = vpack.c.bf16 %v2901_v55, %v2899_v54  ;;  %v2917_v37 = vld [vmem:[%s6131_s6 + $0x240] sm:$0xff] }
 0x2f7   : > { %3555 = vmatprep.subr.bf16.mxu1 %v3554_v38  ;;  %v2919_v38 = vld [vmem:[%s6131_s6 + $0x250] sm:$0xff]  ;;  %v2929_v55 = vld [vmem:[%s6131_s6 + $0x2a0] sm:$0xff] }
 0x2f8   : > { %3529 = vmatpush1.bf16.msra.mxu0 %v3528_v59  ;;  %v3560_v59 = vpack.c.bf16 %v2900_v58, %v2898_v57  ;;  %v3576_v39 = vpack.c.bf16 %v2919_v38, %v2917_v37  ;;  %v2934_v58 = vld [vmem:[%s6131_s6 + $0x2c8] sm:$0xff] }
 0x2f9   : > { %3531 = vmatprep.subr.bf16.mxu0 %v3530_v60  ;;  %v2903_v60 = vld [vmem:[%s6130_s5 + $0x2e8] sm:$0xff] }
 0x2fa   : > { %3557 = vmatpush1.bf16.msra.mxu1 %v3556_v41  ;;  %v3562_v62 = vpack.c.bf16 %v2905_v61, %v2903_v60  ;;  %v2924_v41 = vld [vmem:[%s6131_s6 + $0x278] sm:$0xff]  ;;  %v2933_v60 = vld [vmem:[%s6131_s6 + $0x2c0] sm:$0xff] }
 0x2fb   : > { %3559 = vmatprep.subr.bf16.mxu1 %v3558_v56  ;;  %v2931_v56 = vld [vmem:[%s6131_s6 + $0x2b0] sm:$0xff] }
 0x2fc   : > { %3533 = vmatpush1.bf16.msra.mxu0 %v3532_v63  ;;  %v2902_v63 = vld [vmem:[%s6130_s5 + $0x2e0] sm:$0xff]  ;;  %v3588_v57 = vpack.c.bf16 %v2931_v56, %v2929_v55 }
 0x2fd   : > { %v3564_v1 = vpack.c.bf16 %v2904_v0, %v2902_v63  ;;  %3567 = vmatprep.subr.bf16.mxu0 %v3566_v5  ;;  %v2938_v63 = vld [vmem:[%s6131_s6 + $0x2e8] sm:$0xff]  ;;  %v2940_v0 = vld [vmem:[%s6131_s6 + $0x2f8] sm:$0xff]  ;;  %v2939_v5 = vld [vmem:[%s6131_s6 + $0x2f0] sm:$0xff] }
 0x2fe   : > { %3561 = vmatpush1.bf16.msra.mxu1 %v3560_v59  ;;  %v2936_v59 = vld [vmem:[%s6131_s6 + $0x2d8] sm:$0xff]  ;;  %v3594_v2 = vpack.c.bf16 %v2940_v0, %v2938_v63  ;;  %v3596_v7 = vpack.c.bf16 %v2939_v5, %v2937_v3  ;;  %v2966_v63 = vld [vmem:[%s6130_s5 + $0x3c0] sm:$0xff]  ;;  %v2968_v0 = vld [vmem:[%s6130_s5 + $0x3d0] sm:$0xff] }
 0x2ff   : > { %3563 = vmatprep.subr.bf16.mxu1 %v3562_v62  ;;  %v3590_v61 = vpack.c.bf16 %v2936_v59, %v2934_v58  ;;  %v2935_v62 = vld [vmem:[%s6131_s6 + $0x2d0] sm:$0xff]  ;;  %v2973_v3 = vld [vmem:[%s6130_s5 + $0x3f8] sm:$0xff] }
 0x302   : > { %3565 = vmatpush1.bf16.msra.mxu1 %v3564_v1  ;;  %v3592_v1 = vpack.c.bf16 %v2935_v62, %v2933_v60  ;;  %v2967_v60 = vld [vmem:[%s6130_s5 + $0x3c8] sm:$0xff] }
 0x3b7   : > { %v927_v43 = vpop.f32.mrb[2].mxu1 }
 0x3b8   : > { %v928_v44 = vadd.f32 %v2838_v42, %v927_v43  ;;  %v929_v45 = vpop.f32.mrb[3].mxu1  ;;  %v3578_v42 = vpack.c.bf16 %v2924_v41, %v2922_v40  ;;  %v2921_v43 = vld [vmem:[%s6131_s6 + $0x260] sm:$0xff]  ;;  %v2960_v40 = vld [vmem:[%s6130_s5 + $0x390] sm:$0xff]  ;;  %v2963_v41 = vld [vmem:[%s6130_s5 + $0x3a8] sm:$0xff] }
 0x3b9   : > { %v930_v48 = vadd.f32 %v2839_v47, %v929_v45  ;;  %v2928_v47 = vld [vmem:[%s6131_s6 + $0x298] sm:$0xff] }
 0x3ba   : > { %v2840_v46 = vmul.f32 -1.442695, %v928_v44  ;;  %v2923_v44 = vld [vmem:[%s6131_s6 + $0x270] sm:$0xff] }
 0x3bb   : > { %v3580_v45 = vpack.c.bf16 %v2923_v44, %v2921_v43 }
 0x3bc   : > { %4014 = vpow2.f32 %v2840_v46  ;;  %v2926_v46 = vld [vmem:[%s6131_s6 + $0x288] sm:$0xff] }
 0x3bd   : > { %4016 = vtanh.f32 %v930_v48  ;;  %v3582_v48 = vpack.c.bf16 %v2928_v47, %v2926_v46  ;;  %v2964_v46 = vld [vmem:[%s6130_s5 + $0x3b0] sm:$0xff] }
 0x3c6   : > { %v4015_v49 = vpop.eup %4014 }
 0x3c7   : > { %v935_v50 = vadd.f32 1.0, %v4015_v49  ;;  %v4017_v51 = vpop.eup %4016  ;;  %v2925_v49 = vld [vmem:[%s6131_s6 + $0x280] sm:$0xff] }
 0x3c9   : > { %4018 = vrcp.f32 %v935_v50  ;;  %v2927_v50 = vld [vmem:[%s6131_s6 + $0x290] sm:$0xff] }
 0x3d3   : > { %v4019_v52 = vpop.eup %4018 }
 0x3d4   : > { %v939_v53 = vmul.f32 %v4019_v52, %v4017_v51  ;;  %v3584_v51 = vpack.c.bf16 %v2927_v50, %v2925_v49  ;;  %v2930_v52 = vld [vmem:[%s6131_s6 + $0x2a8] sm:$0xff] }
 0x3d6   : > { %1051 = vmatmul.mubr.f32.vlgmr.msra.gmra.mrb[4].mxu0 %v939_v53  ;;  %v2932_v53 = vld [vmem:[%s6131_s6 + $0x2b8] sm:$0xff] }
 0x3d7   : > { %1291 = vmatprep.mubr.f32.mxu0 %v4122_v20  ;;  %3569 = vmatpush1.bf16.msra.mxu0 %v3568_v12  ;;  %v3586_v54 = vpack.c.bf16 %v2932_v53, %v2930_v52  ;;  %v2950_v12 = vld [vmem:[%s6130_s5 + $0x340] sm:$0xff]  ;;  %v2907_v53 = vld [vmem:[%s4559_s2 + $0x28] sm:$0xff] }
 0x4a9   : > { %v1052_v10 = vpop.f32.mrb[4].mxu0 }
 0x4aa   : > { %v1053_v11 = vadd.f32 %v1052_v10, %v979_v8  ;;  %v1054_v13 = vpop.f32.mrb[5].mxu0  ;;  %v2943_v8 = vld [vmem:[%s6130_s5 + $0x308] sm:$0xff]  ;;  %v2942_v10 = vld [vmem:[%s6130_s5 + $0x300] sm:$0xff] }
 0x4ab   : > { %v1055_v15 = vadd.f32 %v1054_v13, %v983_v9  ;;  %v2945_v9 = vld [vmem:[%s6130_s5 + $0x318] sm:$0xff]  ;;  %v2944_v13 = vld [vmem:[%s6130_s5 + $0x310] sm:$0xff] }
 0x4ac   : > { %vm1057_vm5 = vcmp.ge.f32.partialorder %v1053_v11, 0.0  ;;  %v1059_v19 = vmul.f32 0.4, %v1053_v11 }
 0x4ad   : > { %vm1058_vm6 = vcmp.ge.f32.partialorder %v1055_v15, 0.0  ;;  %v1060_v21 = vmul.f32 0.4, %v1055_v15 }
 0x4ae   : > { %v1061_v22 = vsel %vm1057_vm5, %v1053_v11, %v1059_v19  ;;  %v3598_v11 = vpack.c.bf16 %v2945_v9, %v2943_v8  ;;  %v3600_v19 = vpack.c.bf16 %v2944_v13, %v2942_v10  ;;  %v2972_v8 = vld [vmem:[%s6130_s5 + $0x3f0] sm:$0xff]  ;;  %v2978_v10 = vld [vmem:[%s6131_s6 + $0x308] sm:$0xff] }
 0x4af   : > { %v1063_v23 = vadd.f32 %v1061_v22, %v4606_v17  ;;  %v1062_v24 = vsel %vm1058_vm6, %v1055_v15, %v1060_v21  ;;  %v2914_v17 = vld [vmem:[%s6131_s6 + $0x228] sm:$0xff]  ;;  %v2949_v15 = vld [vmem:[%s6130_s5 + $0x338] sm:$0xff]  ;;  %v2946_v22 = vld [vmem:[%s6130_s5 + $0x320] sm:$0xff] }
 0x4b0   : > { %v4814_v25 = vadd.f32 %v1062_v24, %v821_v16  ;;  %v3570_v30 = vpack.c.bf16 %v2916_v29, %v2914_v17  ;;  %v3602_v21 = vpack.c.bf16 %v2949_v15, %v2947_v14  ;;  %v2948_v16 = vld [vmem:[%s6130_s5 + $0x330] sm:$0xff]  ;;  %3599 = vmatprep.subr.bf16.mxu1 %v3598_v11  ;;  %v2953_v24 = vld [vmem:[%s6130_s5 + $0x358] sm:$0xff]  ;;  %v2955_v29 = vld [vmem:[%s6130_s5 + $0x368] sm:$0xff] }
 0x4b1   : > { %v4816_v26 = vmul.f32 0.70710677, %v1063_v23  ;;  %v2951_v23 = vld [vmem:[%s6130_s5 + $0x348] sm:$0xff]  ;;  %v3604_v27 = vpack.c.bf16 %v2948_v16, %v2946_v22  ;;  %v2952_v17 = vld [vmem:[%s6130_s5 + $0x350] sm:$0xff]  ;;  %v2980_v11 = vld [vmem:[%s6131_s6 + $0x318] sm:$0xff] }
 0x4b2   : > { %3571 = vmatprep.subr.bf16.mxu0 %v3570_v30  ;;  %v3606_v28 = vpack.c.bf16 %v2953_v24, %v2951_v23  ;;  %v2957_v30 = vld [vmem:[%s6130_s5 + $0x378] sm:$0xff]  ;;  %v3608_v31 = vpack.c.bf16 %v2952_v17, %v2950_v12  ;;  %v3630_v13 = vpack.c.bf16 %v2980_v11, %v2978_v10  ;;  %v2941_v14 = vld [vmem:[%s6132_s7 + $0x4] sm:$0x3]  ;;  %v3007_v10 = vld [vmem:[%s6131_s6 + $0x3f0] sm:$0xff] }
 0x4b3   : > { %1167 = vmatmul.mubr.f32.vlgmr.msra.gmra.mrb[4].mxu1 %v4816_v26  ;;  %3573 = vmatpush1.bf16.msra.mxu0 %v3572_v33  ;;  %v3610_v32 = vpack.c.bf16 %v2957_v30, %v2955_v29  ;;  %v2954_v33 = vld [vmem:[%s6130_s5 + $0x360] sm:$0xff]  ;;  %v1220_v15 = vrot.slane %v2941_v14, %v4594_v4 }
 0x4b4   : > { %1407 = vmatprep.mubr.f32.mxu1 %v4122_v20  ;;  %3575 = vmatprep.subr.bf16.mxu0 %v3574_v36  ;;  %v2961_v36 = vld [vmem:[%s6130_s5 + $0x398] sm:$0xff]  ;;  %v3612_v37 = vpack.c.bf16 %v2956_v34, %v2954_v33 }
 0x4b5   : > { %3601 = vmatpush1.bf16.msra.mxu1 %v3600_v19  ;;  %v3614_v38 = vpack.c.bf16 %v2961_v36, %v2959_v35  ;;  %v1224_v19 = vrot.slane %v2941_v14, %v4599_v6  ;;  %v2981_v35 = vld [vmem:[%s6131_s6 + $0x320] sm:$0xff]  ;;  %v2983_v36 = vld [vmem:[%s6131_s6 + $0x330] sm:$0xff]  ;;  %v3013_v14 = vld [vmem:[%s6130_s5 + $0x418] sm:$0xff] }
 0x4b6   : > { %3603 = vmatprep.subr.bf16.mxu1 %v3602_v21 }
 0x4b7   : > { %3577 = vmatpush1.bf16.msra.mxu0 %v3576_v39  ;;  %v2958_v39 = vld [vmem:[%s6130_s5 + $0x380] sm:$0xff] }
 0x4b8   : > { %3579 = vmatprep.subr.bf16.mxu0 %v3578_v42  ;;  %v2965_v42 = vld [vmem:[%s6130_s5 + $0x3b8] sm:$0xff]  ;;  %v3616_v43 = vpack.c.bf16 %v2960_v40, %v2958_v39 }
 0x4b9   : > { %3605 = vmatpush1.bf16.msra.mxu1 %v3604_v27  ;;  %v3618_v44 = vpack.c.bf16 %v2965_v42, %v2963_v41  ;;  %v2988_v39 = vld [vmem:[%s6131_s6 + $0x358] sm:$0xff]  ;;  %v2985_v41 = vld [vmem:[%s6131_s6 + $0x340] sm:$0xff]  ;;  %v2987_v42 = vld [vmem:[%s6131_s6 + $0x350] sm:$0xff] }
 0x4ba   : > { %3607 = vmatprep.subr.bf16.mxu1 %v3606_v28 }
 0x4bb   : > { %3581 = vmatpush1.bf16.msra.mxu0 %v3580_v45  ;;  %v2962_v45 = vld [vmem:[%s6130_s5 + $0x3a0] sm:$0xff] }
 0x4bc   : > { %3583 = vmatprep.subr.bf16.mxu0 %v3582_v48  ;;  %v3620_v47 = vpack.c.bf16 %v2964_v46, %v2962_v45  ;;  %v2906_v48 = vld [vmem:[%s4559_s2 + $0x20] sm:$0xff]  ;;  %v2992_v45 = vld [vmem:[%s6131_s6 + $0x378] sm:$0xff] }
 0x4bd   : > { %3609 = vmatpush1.bf16.msra.mxu1 %v3608_v31  ;;  %v2977_v31 = vld [vmem:[%s6131_s6 + $0x300] sm:$0xff] }
 0x4be   : > { %3611 = vmatprep.subr.bf16.mxu1 %v3610_v32  ;;  %v2979_v32 = vld [vmem:[%s6131_s6 + $0x310] sm:$0xff] }
 0x4bf   : > { %3585 = vmatpush1.bf16.msra.mxu0 %v3584_v51  ;;  %v3632_v33 = vpack.c.bf16 %v2979_v32, %v2977_v31 }
 0x4c0   : > { %3587 = vmatprep.subr.bf16.mxu0 %v3586_v54 }
 0x4c1   : > { %3613 = vmatpush1.bf16.msra.mxu1 %v3612_v37  ;;  %v3636_v37 = vpack.c.bf16 %v2983_v36, %v2981_v35 }
 0x4c2   : > { %3615 = vmatprep.subr.bf16.mxu1 %v3614_v38  ;;  %v2986_v38 = vld [vmem:[%s6131_s6 + $0x348] sm:$0xff] }
 0x4c3   : > { %3589 = vmatpush1.bf16.msra.mxu0 %v3588_v57  ;;  %v3638_v40 = vpack.c.bf16 %v2988_v39, %v2986_v38  ;;  %v3024_v38 = vld [vmem:[%s6130_s5 + $0x470] sm:$0xff]  ;;  %v3027_v39 = vld [vmem:[%s6130_s5 + $0x488] sm:$0xff] }
 0x4c4   : > { %3591 = vmatprep.subr.bf16.mxu0 %v3590_v61  ;;  %v2969_v61 = vld [vmem:[%s6130_s5 + $0x3d8] sm:$0xff] }
 0x4c5   : > { %3617 = vmatpush1.bf16.msra.mxu1 %v3616_v43  ;;  %v3622_v62 = vpack.c.bf16 %v2969_v61, %v2967_v60  ;;  %v3640_v43 = vpack.c.bf16 %v2987_v42, %v2985_v41  ;;  %v2999_v60 = vld [vmem:[%s6131_s6 + $0x3b0] sm:$0xff] }
 0x4c6   : > { %3619 = vmatprep.subr.bf16.mxu1 %v3618_v44  ;;  %v2990_v44 = vld [vmem:[%s6131_s6 + $0x368] sm:$0xff] }
 0x4c7   : > { %3593 = vmatpush1.bf16.msra.mxu0 %v3592_v1  ;;  %v3624_v1 = vpack.c.bf16 %v2968_v0, %v2966_v63  ;;  %v3642_v46 = vpack.c.bf16 %v2992_v45, %v2990_v44  ;;  %v3004_v63 = vld [vmem:[%s6131_s6 + $0x3d8] sm:$0xff]  ;;  %v3001_v0 = vld [vmem:[%s6131_s6 + $0x3c0] sm:$0xff]  ;;  %v3028_v44 = vld [vmem:[%s6130_s5 + $0x490] sm:$0xff] }
 0x4c8   : > { %3595 = vmatprep.subr.bf16.mxu0 %v3594_v2  ;;  %v2971_v2 = vld [vmem:[%s6130_s5 + $0x3e8] sm:$0xff] }
 0x4c9   : > { %3621 = vmatpush1.bf16.msra.mxu1 %v3620_v47  ;;  %v3626_v5 = vpack.c.bf16 %v2973_v3, %v2971_v2  ;;  %v2989_v47 = vld [vmem:[%s6131_s6 + $0x360] sm:$0xff]  ;;  %v3003_v2 = vld [vmem:[%s6131_s6 + $0x3d0] sm:$0xff]  ;;  %v3006_v3 = vld [vmem:[%s6131_s6 + $0x3e8] sm:$0xff] }
 0x4ca   : > { %3623 = vmatprep.subr.bf16.mxu1 %v3622_v62  ;;  %v3002_v62 = vld [vmem:[%s6131_s6 + $0x3c8] sm:$0xff] }
 0x4cb   : > { %3597 = vmatpush1.bf16.msra.mxu0 %v3596_v7  ;;  %v2970_v7 = vld [vmem:[%s6130_s5 + $0x3e0] sm:$0xff]  ;;  %v3031_v45 = vld [vmem:[%s6130_s5 + $0x4a8] sm:$0xff] }
 0x4cc   : > { %v3628_v9 = vpack.c.bf16 %v2972_v8, %v2970_v7  ;;  %3631 = vmatprep.subr.bf16.mxu0 %v3630_v13  ;;  %v3656_v7 = vpack.c.bf16 %v3003_v2, %v3001_v0  ;;  %v3011_v13 = vld [vmem:[%s6130_s5 + $0x408] sm:$0xff] }
 0x4cd   : > { %3625 = vmatpush1.bf16.msra.mxu1 %v3624_v1  ;;  %v3654_v1 = vpack.c.bf16 %v3004_v63, %v3002_v62  ;;  %v3035_v0 = vld [vmem:[%s6130_s5 + $0x4c8] sm:$0xff] }
 0x4ce   : > { %3627 = vmatprep.subr.bf16.mxu1 %v3626_v5  ;;  %v3008_v5 = vld [vmem:[%s6131_s6 + $0x3f8] sm:$0xff] }
 0x4cf   : > { %v3658_v8 = vpack.c.bf16 %v3008_v5, %v3006_v3  ;;  %v3034_v3 = vld [vmem:[%s6130_s5 + $0x4c0] sm:$0xff]  ;;  %v3036_v5 = vld [vmem:[%s6130_s5 + $0x4d0] sm:$0xff] }
 0x4d1   : > { %3629 = vmatpush1.bf16.msra.mxu1 %v3628_v9  ;;  %v3005_v9 = vld [vmem:[%s6131_s6 + $0x3e0] sm:$0xff] }
 0x4d2   : > { %v3660_v11 = vpack.c.bf16 %v3007_v10, %v3005_v9  ;;  %v3041_v9 = vld [vmem:[%s6130_s5 + $0x4f8] sm:$0xff] }
 0x586   : > { %v1168_v49 = vpop.f32.mrb[4].mxu1 }
 0x587   : > { %v1169_v50 = vadd.f32 %v2906_v48, %v1168_v49  ;;  %v1170_v51 = vpop.f32.mrb[5].mxu1  ;;  %v2991_v48 = vld [vmem:[%s6131_s6 + $0x370] sm:$0xff] }
 0x588   : > { %v1171_v54 = vadd.f32 %v2907_v53, %v1170_v51  ;;  %v3644_v49 = vpack.c.bf16 %v2991_v48, %v2989_v47  ;;  %v2996_v51 = vld [vmem:[%s6131_s6 + $0x398] sm:$0xff]  ;;  %v2993_v53 = vld [vmem:[%s6131_s6 + $0x380] sm:$0xff] }
 0x589   : > { %v2908_v52 = vmul.f32 -1.442695, %v1169_v50  ;;  %v2994_v50 = vld [vmem:[%s6131_s6 + $0x388] sm:$0xff] }
 0x58b   : > { %4020 = vpow2.f32 %v2908_v52  ;;  %v3646_v52 = vpack.c.bf16 %v2996_v51, %v2994_v50  ;;  %v3032_v50 = vld [vmem:[%s6130_s5 + $0x4b0] sm:$0xff] }
 0x58c   : > { %4022 = vtanh.f32 %v1171_v54  ;;  %v2995_v54 = vld [vmem:[%s6131_s6 + $0x390] sm:$0xff] }
 0x595   : > { %v4021_v55 = vpop.eup %4020 }
 0x596   : > { %v1176_v56 = vadd.f32 1.0, %v4021_v55  ;;  %v4023_v57 = vpop.eup %4022  ;;  %v3648_v55 = vpack.c.bf16 %v2995_v54, %v2993_v53 }
 0x598   : > { %4024 = vrcp.f32 %v1176_v56  ;;  %v2998_v56 = vld [vmem:[%s6131_s6 + $0x3a8] sm:$0xff] }
 0x5a2   : > { %v4025_v58 = vpop.eup %4024 }
 0x5a3   : > { %v1180_v59 = vmul.f32 %v4025_v58, %v4023_v57  ;;  %v3000_v57 = vld [vmem:[%s6131_s6 + $0x3b8] sm:$0xff] }
 0x5a4   : > { %v3650_v58 = vpack.c.bf16 %v3000_v57, %v2998_v56  ;;  %v2975_v57 = vld [vmem:[%s4559_s2 + $0x38] sm:$0xff] }
 0x5a5   : > { %1292 = vmatmul.mubr.f32.vlgmr.msra.gmra.mrb[6].mxu0 %v1180_v59  ;;  %v2997_v59 = vld [vmem:[%s6131_s6 + $0x3a0] sm:$0xff] }
 0x5a6   : > { %1532 = vmatprep.mubr.f32.mxu0 %v4122_v20  ;;  %3633 = vmatpush1.bf16.msra.mxu0 %v3632_v33  ;;  %v3652_v61 = vpack.c.bf16 %v2999_v60, %v2997_v59  ;;  %v3018_v33 = vld [vmem:[%s6130_s5 + $0x440] sm:$0xff] }
 0x678   : > { %v1293_v21 = vpop.f32.mrb[6].mxu0 }
 0x679   : > { %v1294_v22 = vadd.f32 %v1293_v21, %v1220_v15  ;;  %v1295_v16 = vpop.f32.mrb[7].mxu0  ;;  %v3010_v15 = vld [vmem:[%s6130_s5 + $0x400] sm:$0xff]  ;;  %v3012_v21 = vld [vmem:[%s6130_s5 + $0x410] sm:$0xff] }
 0x67a   : > { %v1296_v23 = vadd.f32 %v1295_v16, %v1224_v19  ;;  %v3662_v19 = vpack.c.bf16 %v3013_v14, %v3011_v13  ;;  %v3017_v16 = vld [vmem:[%s6130_s5 + $0x438] sm:$0xff]  ;;  %v3040_v13 = vld [vmem:[%s6130_s5 + $0x4f0] sm:$0xff] }
 0x67b   : > { %vm1298_vm7 = vcmp.ge.f32.partialorder %v1294_v22, 0.0  ;;  %v1300_v24 = vmul.f32 0.4, %v1294_v22 }
 0x67c   : > { %vm1299_vm8 = vcmp.ge.f32.partialorder %v1296_v23, 0.0  ;;  %v1301_v27 = vmul.f32 0.4, %v1296_v23  ;;  %3663 = vmatprep.subr.bf16.mxu1 %v3662_v19  ;;  %v3048_v19 = vld [vmem:[%s6131_s6 + $0x418] sm:$0xff] }
 0x67d   : > { %v1302_v28 = vsel %vm1298_vm7, %v1294_v22, %v1300_v24  ;;  %v3015_v22 = vld [vmem:[%s6130_s5 + $0x428] sm:$0xff] }
 0x67e   : > { %v1304_v12 = vadd.f32 %v1302_v28, %v4816_v26  ;;  %v1303_v17 = vsel %vm1299_vm8, %v1296_v23, %v1301_v27  ;;  %v2984_v26 = vld [vmem:[%s6131_s6 + $0x338] sm:$0xff]  ;;  %v3664_v23 = vpack.c.bf16 %v3012_v21, %v3010_v15  ;;  %v3666_v24 = vpack.c.bf16 %v3017_v16, %v3015_v22  ;;  %v3014_v27 = vld [vmem:[%s6130_s5 + $0x420] sm:$0xff]  ;;  %v3016_v28 = vld [vmem:[%s6130_s5 + $0x430] sm:$0xff] }
 0x67f   : > { %v5022_v29 = vadd.f32 %v1303_v17, %v4814_v25  ;;  %v2982_v25 = vld [vmem:[%s6131_s6 + $0x328] sm:$0xff]  ;;  %v3021_v17 = vld [vmem:[%s6130_s5 + $0x458] sm:$0xff]  ;;  %v3668_v31 = vpack.c.bf16 %v3016_v28, %v3014_v27  ;;  %v3009_v22 = vld [vmem:[%s6132_s7 + $0x6] sm:$0x3] }
 0x680   : > { %v5024_v30 = vmul.f32 0.70710677, %v1304_v12  ;;  %v3634_v34 = vpack.c.bf16 %v2984_v26, %v2982_v25  ;;  %v3019_v12 = vld [vmem:[%s6130_s5 + $0x448] sm:$0xff]  ;;  %v3020_v25 = vld [vmem:[%s6130_s5 + $0x450] sm:$0xff]  ;;  %v1461_v16 = vrot.slane %v3009_v22, %v4594_v4 }
 0x681   : > { %v3670_v32 = vpack.c.bf16 %v3021_v17, %v3019_v12  ;;  %v3023_v26 = vld [vmem:[%s6130_s5 + $0x468] sm:$0xff]  ;;  %v3672_v35 = vpack.c.bf16 %v3020_v25, %v3018_v33 }
 0x682   : > { %1408 = vmatmul.mubr.f32.vlgmr.msra.gmra.mrb[6].mxu1 %v5024_v30  ;;  %3635 = vmatprep.subr.bf16.mxu0 %v3634_v34  ;;  %v3025_v34 = vld [vmem:[%s6130_s5 + $0x478] sm:$0xff]  ;;  %v3046_v15 = vld [vmem:[%s6131_s6 + $0x408] sm:$0xff] }
 0x683   : > { %1648 = vmatprep.mubr.f32.mxu1 %v4122_v20  ;;  %3637 = vmatpush1.bf16.msra.mxu0 %v3636_v37  ;;  %v3674_v36 = vpack.c.bf16 %v3025_v34, %v3023_v26  ;;  %v3022_v37 = vld [vmem:[%s6130_s5 + $0x460] sm:$0xff]  ;;  %v3694_v21 = vpack.c.bf16 %v3048_v19, %v3046_v15  ;;  %v3075_v15 = vld [vmem:[%s6131_s6 + $0x4f0] sm:$0xff] }
 0x684   : > { %3639 = vmatprep.subr.bf16.mxu0 %v3638_v40  ;;  %3665 = vmatpush1.bf16.msra.mxu1 %v3664_v23  ;;  %v3029_v40 = vld [vmem:[%s6130_s5 + $0x498] sm:$0xff]  ;;  %v3676_v41 = vpack.c.bf16 %v3024_v38, %v3022_v37  ;;  %v1465_v23 = vrot.slane %v3009_v22, %v4599_v6 }
 0x685   : > { %3667 = vmatprep.subr.bf16.mxu1 %v3666_v24  ;;  %v3678_v42 = vpack.c.bf16 %v3029_v40, %v3027_v39  ;;  %v3049_v39 = vld [vmem:[%s6131_s6 + $0x420] sm:$0xff]  ;;  %v3051_v40 = vld [vmem:[%s6131_s6 + $0x430] sm:$0xff]  ;;  %v3081_v22 = vld [vmem:[%s6130_s5 + $0x518] sm:$0xff] }
 0x687   : > { %3641 = vmatpush1.bf16.msra.mxu0 %v3640_v43  ;;  %v3026_v43 = vld [vmem:[%s6130_s5 + $0x480] sm:$0xff] }
 0x688   : > { %3643 = vmatprep.subr.bf16.mxu0 %v3642_v46  ;;  %3669 = vmatpush1.bf16.msra.mxu1 %v3668_v31  ;;  %v3033_v46 = vld [vmem:[%s6130_s5 + $0x4b8] sm:$0xff]  ;;  %v3680_v47 = vpack.c.bf16 %v3028_v44, %v3026_v43 }
 0x689   : > { %3671 = vmatprep.subr.bf16.mxu1 %v3670_v32  ;;  %v3682_v48 = vpack.c.bf16 %v3033_v46, %v3031_v45  ;;  %v3056_v43 = vld [vmem:[%s6131_s6 + $0x458] sm:$0xff]  ;;  %v3053_v45 = vld [vmem:[%s6131_s6 + $0x440] sm:$0xff]  ;;  %v3055_v46 = vld [vmem:[%s6131_s6 + $0x450] sm:$0xff] }
 0x68b   : > { %3645 = vmatpush1.bf16.msra.mxu0 %v3644_v49  ;;  %v3030_v49 = vld [vmem:[%s6130_s5 + $0x4a0] sm:$0xff] }
 0x68c   : > { %3647 = vmatprep.subr.bf16.mxu0 %v3646_v52  ;;  %3673 = vmatpush1.bf16.msra.mxu1 %v3672_v35  ;;  %v3684_v51 = vpack.c.bf16 %v3032_v50, %v3030_v49  ;;  %v2974_v52 = vld [vmem:[%s4559_s2 + $0x30] sm:$0xff]  ;;  %v3045_v35 = vld [vmem:[%s6131_s6 + $0x400] sm:$0xff]  ;;  %v3060_v49 = vld [vmem:[%s6131_s6 + $0x478] sm:$0xff] }
 0x68d   : > { %3675 = vmatprep.subr.bf16.mxu1 %v3674_v36  ;;  %v3047_v36 = vld [vmem:[%s6131_s6 + $0x410] sm:$0xff] }
 0x68e   : > { %v3696_v37 = vpack.c.bf16 %v3047_v36, %v3045_v35 }
 0x68f   : > { %3649 = vmatpush1.bf16.msra.mxu0 %v3648_v55 }
 0x690   : > { %3651 = vmatprep.subr.bf16.mxu0 %v3650_v58  ;;  %3677 = vmatpush1.bf16.msra.mxu1 %v3676_v41  ;;  %v3700_v41 = vpack.c.bf16 %v3051_v40, %v3049_v39 }
 0x691   : > { %3679 = vmatprep.subr.bf16.mxu1 %v3678_v42  ;;  %v3054_v42 = vld [vmem:[%s6131_s6 + $0x448] sm:$0xff] }
 0x692   : > { %v3702_v44 = vpack.c.bf16 %v3056_v43, %v3054_v42  ;;  %v3092_v42 = vld [vmem:[%s6130_s5 + $0x570] sm:$0xff]  ;;  %v3095_v43 = vld [vmem:[%s6130_s5 + $0x588] sm:$0xff] }
 0x693   : > { %3653 = vmatpush1.bf16.msra.mxu0 %v3652_v61 }
 0x694   : > { %3655 = vmatprep.subr.bf16.mxu0 %v3654_v1  ;;  %3681 = vmatpush1.bf16.msra.mxu1 %v3680_v47  ;;  %v3037_v1 = vld [vmem:[%s6130_s5 + $0x4d8] sm:$0xff]  ;;  %v3704_v47 = vpack.c.bf16 %v3055_v46, %v3053_v45 }
 0x695   : > { %3683 = vmatprep.subr.bf16.mxu1 %v3682_v48  ;;  %v3686_v2 = vpack.c.bf16 %v3037_v1, %v3035_v0  ;;  %v3058_v48 = vld [vmem:[%s6131_s6 + $0x468] sm:$0xff]  ;;  %v3067_v0 = vld [vmem:[%s6131_s6 + $0x4b0] sm:$0xff] }
 0x696   : > { %v3706_v50 = vpack.c.bf16 %v3060_v49, %v3058_v48  ;;  %v3096_v48 = vld [vmem:[%s6130_s5 + $0x590] sm:$0xff]  ;;  %v3099_v49 = vld [vmem:[%s6130_s5 + $0x5a8] sm:$0xff] }
 0x697   : > { %3657 = vmatpush1.bf16.msra.mxu0 %v3656_v7  ;;  %v3688_v7 = vpack.c.bf16 %v3036_v5, %v3034_v3  ;;  %v3072_v3 = vld [vmem:[%s6131_s6 + $0x4d8] sm:$0xff]  ;;  %v3069_v5 = vld [vmem:[%s6131_s6 + $0x4c0] sm:$0xff] }
 0x698   : > { %3659 = vmatprep.subr.bf16.mxu0 %v3658_v8  ;;  %3685 = vmatpush1.bf16.msra.mxu1 %v3684_v51  ;;  %v3039_v8 = vld [vmem:[%s6130_s5 + $0x4e8] sm:$0xff]  ;;  %v3057_v51 = vld [vmem:[%s6131_s6 + $0x460] sm:$0xff] }
 0x699   : > { %3687 = vmatprep.subr.bf16.mxu1 %v3686_v2  ;;  %v3690_v10 = vpack.c.bf16 %v3041_v9, %v3039_v8  ;;  %v3070_v2 = vld [vmem:[%s6131_s6 + $0x4c8] sm:$0xff]  ;;  %v3071_v8 = vld [vmem:[%s6131_s6 + $0x4d0] sm:$0xff] }
 0x69a   : > { %v3074_v9 = vld [vmem:[%s6131_s6 + $0x4e8] sm:$0xff] }
 0x69b   : > { %3661 = vmatpush1.bf16.msra.mxu0 %v3660_v11  ;;  %v3038_v11 = vld [vmem:[%s6130_s5 + $0x4e0] sm:$0xff] }
 0x69c   : > { %3689 = vmatpush1.bf16.msra.mxu1 %v3688_v7  ;;  %v3692_v14 = vpack.c.bf16 %v3040_v13, %v3038_v11  ;;  %3695 = vmatprep.subr.bf16.mxu0 %v3694_v21  ;;  %v3718_v7 = vpack.c.bf16 %v3072_v3, %v3070_v2  ;;  %v3720_v11 = vpack.c.bf16 %v3071_v8, %v3069_v5  ;;  %v3079_v21 = vld [vmem:[%s6130_s5 + $0x508] sm:$0xff] }
 0x69d   : > { %3691 = vmatprep.subr.bf16.mxu1 %v3690_v10  ;;  %v3076_v10 = vld [vmem:[%s6131_s6 + $0x4f8] sm:$0xff]  ;;  %v3103_v5 = vld [vmem:[%s6130_s5 + $0x5c8] sm:$0xff] }
 0x69e   : > { %v3722_v13 = vpack.c.bf16 %v3076_v10, %v3074_v9  ;;  %v3102_v9 = vld [vmem:[%s6130_s5 + $0x5c0] sm:$0xff]  ;;  %v3104_v10 = vld [vmem:[%s6130_s5 + $0x5d0] sm:$0xff] }
 0x6a0   : > { %3693 = vmatpush1.bf16.msra.mxu1 %v3692_v14  ;;  %v3073_v14 = vld [vmem:[%s6131_s6 + $0x4e0] sm:$0xff] }
 0x6a1   : > { %v3724_v19 = vpack.c.bf16 %v3075_v15, %v3073_v14  ;;  %v3109_v14 = vld [vmem:[%s6130_s5 + $0x5f8] sm:$0xff] }
 0x755   : > { %v1409_v53 = vpop.f32.mrb[6].mxu1 }
 0x756   : > { %v1410_v54 = vadd.f32 %v2974_v52, %v1409_v53  ;;  %v1411_v55 = vpop.f32.mrb[7].mxu1  ;;  %v3059_v52 = vld [vmem:[%s6131_s6 + $0x470] sm:$0xff] }
 0x757   : > { %v1412_v58 = vadd.f32 %v2975_v57, %v1411_v55  ;;  %v3708_v53 = vpack.c.bf16 %v3059_v52, %v3057_v51  ;;  %v3064_v55 = vld [vmem:[%s6131_s6 + $0x498] sm:$0xff]  ;;  %v3061_v57 = vld [vmem:[%s6131_s6 + $0x480] sm:$0xff] }
 0x758   : > { %v2976_v56 = vmul.f32 -1.442695, %v1410_v54  ;;  %v3062_v54 = vld [vmem:[%s6131_s6 + $0x488] sm:$0xff] }
 0x75a   : > { %4026 = vpow2.f32 %v2976_v56  ;;  %v3710_v56 = vpack.c.bf16 %v3064_v55, %v3062_v54  ;;  %v3100_v54 = vld [vmem:[%s6130_s5 + $0x5b0] sm:$0xff] }
 0x75b   : > { %4028 = vtanh.f32 %v1412_v58  ;;  %v3063_v58 = vld [vmem:[%s6131_s6 + $0x490] sm:$0xff] }
 0x764   : > { %v4027_v59 = vpop.eup %4026 }
 0x765   : > { %v1417_v60 = vadd.f32 1.0, %v4027_v59  ;;  %v4029_v61 = vpop.eup %4028  ;;  %v3712_v59 = vpack.c.bf16 %v3063_v58, %v3061_v57 }
 0x767   : > { %4030 = vrcp.f32 %v1417_v60  ;;  %v3066_v60 = vld [vmem:[%s6131_s6 + $0x4a8] sm:$0xff] }
 0x771   : > { %v4031_v62 = vpop.eup %4030 }
 0x772   : > { %v1421_v63 = vmul.f32 %v4031_v62, %v4029_v61  ;;  %v3068_v61 = vld [vmem:[%s6131_s6 + $0x4b8] sm:$0xff] }
 0x773   : > { %v3714_v62 = vpack.c.bf16 %v3068_v61, %v3066_v60  ;;  %v3043_v61 = vld [vmem:[%s4559_s2 + $0x48] sm:$0xff] }
 0x774   : > { %1533 = vmatmul.mubr.f32.vlgmr.msra.gmra.mrb[8].mxu0 %v1421_v63  ;;  %v3065_v63 = vld [vmem:[%s6131_s6 + $0x4a0] sm:$0xff] }
 0x775   : > { %1773 = vmatprep.mubr.f32.mxu0 %v4122_v20  ;;  %3697 = vmatpush1.bf16.msra.mxu0 %v3696_v37  ;;  %v3716_v1 = vpack.c.bf16 %v3067_v0, %v3065_v63  ;;  %v3086_v37 = vld [vmem:[%s6130_s5 + $0x540] sm:$0xff] }
 0x847   : > { %v1534_v24 = vpop.f32.mrb[8].mxu0 }
 0x848   : > { %v1535_v27 = vadd.f32 %v1534_v24, %v1461_v16  ;;  %v1536_v28 = vpop.f32.mrb[9].mxu0  ;;  %v3078_v16 = vld [vmem:[%s6130_s5 + $0x500] sm:$0xff]  ;;  %v3080_v24 = vld [vmem:[%s6130_s5 + $0x510] sm:$0xff] }
 0x849   : > { %v1537_v12 = vadd.f32 %v1536_v28, %v1465_v23  ;;  %v3726_v23 = vpack.c.bf16 %v3081_v22, %v3079_v21  ;;  %v3085_v28 = vld [vmem:[%s6130_s5 + $0x538] sm:$0xff]  ;;  %v3108_v21 = vld [vmem:[%s6130_s5 + $0x5f0] sm:$0xff] }
 0x84a   : > { %vm1539_vm9 = vcmp.ge.f32.partialorder %v1535_v27, 0.0  ;;  %v1541_v17 = vmul.f32 0.4, %v1535_v27 }
 0x84b   : > { %vm1540_vm10 = vcmp.ge.f32.partialorder %v1537_v12, 0.0  ;;  %v1542_v31 = vmul.f32 0.4, %v1537_v12  ;;  %3727 = vmatprep.subr.bf16.mxu1 %v3726_v23  ;;  %v3116_v23 = vld [vmem:[%s6131_s6 + $0x518] sm:$0xff] }
 0x84c   : > { %v1543_v32 = vsel %vm1539_vm9, %v1535_v27, %v1541_v17  ;;  %v3083_v27 = vld [vmem:[%s6130_s5 + $0x528] sm:$0xff] }
 0x84d   : > { %v1545_v33 = vadd.f32 %v1543_v32, %v5024_v30  ;;  %v1544_v25 = vsel %vm1540_vm10, %v1537_v12, %v1542_v31  ;;  %v3052_v30 = vld [vmem:[%s6131_s6 + $0x438] sm:$0xff]  ;;  %v3728_v12 = vpack.c.bf16 %v3080_v24, %v3078_v16  ;;  %v3730_v17 = vpack.c.bf16 %v3085_v28, %v3083_v27  ;;  %v3082_v31 = vld [vmem:[%s6130_s5 + $0x520] sm:$0xff]  ;;  %v3084_v32 = vld [vmem:[%s6130_s5 + $0x530] sm:$0xff] }
 0x84e   : > { %v5230_v26 = vadd.f32 %v1544_v25, %v5022_v29  ;;  %v3050_v29 = vld [vmem:[%s6131_s6 + $0x428] sm:$0xff]  ;;  %v3089_v25 = vld [vmem:[%s6130_s5 + $0x558] sm:$0xff]  ;;  %v3732_v35 = vpack.c.bf16 %v3084_v32, %v3082_v31 }
 0x84f   : > { %v5232_v34 = vmul.f32 0.70710677, %v1545_v33  ;;  %v3698_v38 = vpack.c.bf16 %v3052_v30, %v3050_v29  ;;  %v3087_v33 = vld [vmem:[%s6130_s5 + $0x548] sm:$0xff]  ;;  %v3088_v29 = vld [vmem:[%s6130_s5 + $0x550] sm:$0xff] }
 0x850   : > { %v3734_v36 = vpack.c.bf16 %v3089_v25, %v3087_v33  ;;  %v3091_v30 = vld [vmem:[%s6130_s5 + $0x568] sm:$0xff]  ;;  %v3736_v39 = vpack.c.bf16 %v3088_v29, %v3086_v37 }
 0x851   : > { %1649 = vmatmul.mubr.f32.vlgmr.msra.gmra.mrb[8].mxu1 %v5232_v34  ;;  %3699 = vmatprep.subr.bf16.mxu0 %v3698_v38  ;;  %v3093_v38 = vld [vmem:[%s6130_s5 + $0x578] sm:$0xff]  ;;  %v3114_v16 = vld [vmem:[%s6131_s6 + $0x508] sm:$0xff] }
 0x852   : > { %1889 = vmatprep.mubr.f32.mxu1 %v4122_v20  ;;  %3701 = vmatpush1.bf16.msra.mxu0 %v3700_v41  ;;  %v3738_v40 = vpack.c.bf16 %v3093_v38, %v3091_v30  ;;  %v3090_v41 = vld [vmem:[%s6130_s5 + $0x560] sm:$0xff]  ;;  %v3758_v24 = vpack.c.bf16 %v3116_v23, %v3114_v16  ;;  %v3077_v27 = vld [vmem:[%s6132_s7 + $0x8] sm:$0x3]  ;;  %v3143_v16 = vld [vmem:[%s6131_s6 + $0x5f0] sm:$0xff] }
 0x853   : > { %3703 = vmatprep.subr.bf16.mxu0 %v3702_v44  ;;  %3729 = vmatpush1.bf16.msra.mxu1 %v3728_v12  ;;  %v3097_v44 = vld [vmem:[%s6130_s5 + $0x598] sm:$0xff]  ;;  %v3740_v45 = vpack.c.bf16 %v3092_v42, %v3090_v41  ;;  %v1702_v28 = vrot.slane %v3077_v27, %v4594_v4  ;;  %v1706_v12 = vrot.slane %v3077_v27, %v4599_v6 }
 0x854   : > { %3731 = vmatprep.subr.bf16.mxu1 %v3730_v17  ;;  %v3742_v46 = vpack.c.bf16 %v3097_v44, %v3095_v43  ;;  %v3117_v43 = vld [vmem:[%s6131_s6 + $0x520] sm:$0xff]  ;;  %v3119_v44 = vld [vmem:[%s6131_s6 + $0x530] sm:$0xff]  ;;  %v3149_v27 = vld [vmem:[%s6130_s5 + $0x618] sm:$0xff] }
 0x856   : > { %3705 = vmatpush1.bf16.msra.mxu0 %v3704_v47  ;;  %v3094_v47 = vld [vmem:[%s6130_s5 + $0x580] sm:$0xff] }
 0x857   : > { %3707 = vmatprep.subr.bf16.mxu0 %v3706_v50  ;;  %3733 = vmatpush1.bf16.msra.mxu1 %v3732_v35  ;;  %v3101_v50 = vld [vmem:[%s6130_s5 + $0x5b8] sm:$0xff]  ;;  %v3744_v51 = vpack.c.bf16 %v3096_v48, %v3094_v47 }
 0x858   : > { %3735 = vmatprep.subr.bf16.mxu1 %v3734_v36  ;;  %v3746_v52 = vpack.c.bf16 %v3101_v50, %v3099_v49  ;;  %v3124_v47 = vld [vmem:[%s6131_s6 + $0x558] sm:$0xff]  ;;  %v3121_v49 = vld [vmem:[%s6131_s6 + $0x540] sm:$0xff]  ;;  %v3123_v50 = vld [vmem:[%s6131_s6 + $0x550] sm:$0xff] }
 0x85a   : > { %3709 = vmatpush1.bf16.msra.mxu0 %v3708_v53  ;;  %v3098_v53 = vld [vmem:[%s6130_s5 + $0x5a0] sm:$0xff] }
 0x85b   : > { %3711 = vmatprep.subr.bf16.mxu0 %v3710_v56  ;;  %3737 = vmatpush1.bf16.msra.mxu1 %v3736_v39  ;;  %v3748_v55 = vpack.c.bf16 %v3100_v54, %v3098_v53  ;;  %v3042_v56 = vld [vmem:[%s4559_s2 + $0x40] sm:$0xff]  ;;  %v3128_v53 = vld [vmem:[%s6131_s6 + $0x578] sm:$0xff] }
 0x85c   : > { %3739 = vmatprep.subr.bf16.mxu1 %v3738_v40  ;;  %v3113_v39 = vld [vmem:[%s6131_s6 + $0x500] sm:$0xff]  ;;  %v3115_v40 = vld [vmem:[%s6131_s6 + $0x510] sm:$0xff] }
 0x85d   : > { %v3760_v41 = vpack.c.bf16 %v3115_v40, %v3113_v39 }
 0x85e   : > { %3713 = vmatpush1.bf16.msra.mxu0 %v3712_v59 }
 0x85f   : > { %3715 = vmatprep.subr.bf16.mxu0 %v3714_v62  ;;  %3741 = vmatpush1.bf16.msra.mxu1 %v3740_v45  ;;  %v3764_v45 = vpack.c.bf16 %v3119_v44, %v3117_v43 }
 0x860   : > { %3743 = vmatprep.subr.bf16.mxu1 %v3742_v46  ;;  %v3122_v46 = vld [vmem:[%s6131_s6 + $0x548] sm:$0xff] }
 0x861   : > { %v3766_v48 = vpack.c.bf16 %v3124_v47, %v3122_v46  ;;  %v3160_v46 = vld [vmem:[%s6130_s5 + $0x670] sm:$0xff]  ;;  %v3163_v47 = vld [vmem:[%s6130_s5 + $0x688] sm:$0xff] }
 0x862   : > { %3717 = vmatpush1.bf16.msra.mxu0 %v3716_v1 }
 0x863   : > { %3719 = vmatprep.subr.bf16.mxu0 %v3718_v7  ;;  %3745 = vmatpush1.bf16.msra.mxu1 %v3744_v51  ;;  %v3105_v7 = vld [vmem:[%s6130_s5 + $0x5d8] sm:$0xff]  ;;  %v3768_v51 = vpack.c.bf16 %v3123_v50, %v3121_v49 }
 0x864   : > { %3747 = vmatprep.subr.bf16.mxu1 %v3746_v52  ;;  %v3750_v8 = vpack.c.bf16 %v3105_v7, %v3103_v5  ;;  %v3126_v52 = vld [vmem:[%s6131_s6 + $0x568] sm:$0xff]  ;;  %v3135_v5 = vld [vmem:[%s6131_s6 + $0x5b0] sm:$0xff] }
 0x865   : > { %v3770_v54 = vpack.c.bf16 %v3128_v53, %v3126_v52  ;;  %v3164_v52 = vld [vmem:[%s6130_s5 + $0x690] sm:$0xff]  ;;  %v3167_v53 = vld [vmem:[%s6130_s5 + $0x6a8] sm:$0xff] }
 0x866   : > { %3721 = vmatpush1.bf16.msra.mxu0 %v3720_v11  ;;  %v3752_v11 = vpack.c.bf16 %v3104_v10, %v3102_v9  ;;  %v3140_v9 = vld [vmem:[%s6131_s6 + $0x5d8] sm:$0xff]  ;;  %v3137_v10 = vld [vmem:[%s6131_s6 + $0x5c0] sm:$0xff] }
 0x867   : > { %3723 = vmatprep.subr.bf16.mxu0 %v3722_v13  ;;  %3749 = vmatpush1.bf16.msra.mxu1 %v3748_v55  ;;  %v3107_v13 = vld [vmem:[%s6130_s5 + $0x5e8] sm:$0xff]  ;;  %v3125_v55 = vld [vmem:[%s6131_s6 + $0x560] sm:$0xff] }
 0x868   : > { %3751 = vmatprep.subr.bf16.mxu1 %v3750_v8  ;;  %v3754_v15 = vpack.c.bf16 %v3109_v14, %v3107_v13  ;;  %v3138_v8 = vld [vmem:[%s6131_s6 + $0x5c8] sm:$0xff]  ;;  %v3139_v13 = vld [vmem:[%s6131_s6 + $0x5d0] sm:$0xff] }
 0x869   : > { %v3142_v14 = vld [vmem:[%s6131_s6 + $0x5e8] sm:$0xff] }
 0x86a   : > { %3725 = vmatpush1.bf16.msra.mxu0 %v3724_v19  ;;  %v3106_v19 = vld [vmem:[%s6130_s5 + $0x5e0] sm:$0xff] }
 0x86b   : > { %3753 = vmatpush1.bf16.msra.mxu1 %v3752_v11  ;;  %v3756_v22 = vpack.c.bf16 %v3108_v21, %v3106_v19  ;;  %3759 = vmatprep.subr.bf16.mxu0 %v3758_v24  ;;  %v3782_v11 = vpack.c.bf16 %v3140_v9, %v3138_v8  ;;  %v3784_v19 = vpack.c.bf16 %v3139_v13, %v3137_v10  ;;  %v3147_v24 = vld [vmem:[%s6130_s5 + $0x608] sm:$0xff] }
 0x86c   : > { %3755 = vmatprep.subr.bf16.mxu1 %v3754_v15  ;;  %v3144_v15 = vld [vmem:[%s6131_s6 + $0x5f8] sm:$0xff]  ;;  %v3171_v10 = vld [vmem:[%s6130_s5 + $0x6c8] sm:$0xff] }
 0x86d   : > { %v3786_v21 = vpack.c.bf16 %v3144_v15, %v3142_v14  ;;  %v3170_v14 = vld [vmem:[%s6130_s5 + $0x6c0] sm:$0xff]  ;;  %v3172_v15 = vld [vmem:[%s6130_s5 + $0x6d0] sm:$0xff] }
 0x86f   : > { %3757 = vmatpush1.bf16.msra.mxu1 %v3756_v22  ;;  %v3141_v22 = vld [vmem:[%s6131_s6 + $0x5e0] sm:$0xff] }
 0x870   : > { %v3788_v23 = vpack.c.bf16 %v3143_v16, %v3141_v22  ;;  %v3177_v22 = vld [vmem:[%s6130_s5 + $0x6f8] sm:$0xff] }
 0x924   : > { %v1650_v57 = vpop.f32.mrb[8].mxu1 }
 0x925   : > { %v1651_v58 = vadd.f32 %v3042_v56, %v1650_v57  ;;  %v1652_v59 = vpop.f32.mrb[9].mxu1  ;;  %v3127_v56 = vld [vmem:[%s6131_s6 + $0x570] sm:$0xff] }
 0x926   : > { %v1653_v62 = vadd.f32 %v3043_v61, %v1652_v59  ;;  %v3772_v57 = vpack.c.bf16 %v3127_v56, %v3125_v55  ;;  %v3132_v59 = vld [vmem:[%s6131_s6 + $0x598] sm:$0xff]  ;;  %v3129_v61 = vld [vmem:[%s6131_s6 + $0x580] sm:$0xff] }
 0x927   : > { %v3044_v60 = vmul.f32 -1.442695, %v1651_v58  ;;  %v3130_v58 = vld [vmem:[%s6131_s6 + $0x588] sm:$0xff] }
 0x929   : > { %4032 = vpow2.f32 %v3044_v60  ;;  %v3774_v60 = vpack.c.bf16 %v3132_v59, %v3130_v58  ;;  %v3168_v58 = vld [vmem:[%s6130_s5 + $0x6b0] sm:$0xff] }
 0x92a   : > { %4034 = vtanh.f32 %v1653_v62  ;;  %v3131_v62 = vld [vmem:[%s6131_s6 + $0x590] sm:$0xff] }
 0x933   : > { %v4033_v63 = vpop.eup %4032 }
 0x934   : > { %v1658_v0 = vadd.f32 1.0, %v4033_v63  ;;  %v4035_v1 = vpop.eup %4034  ;;  %v3776_v63 = vpack.c.bf16 %v3131_v62, %v3129_v61 }
 0x936   : > { %4036 = vrcp.f32 %v1658_v0  ;;  %v3134_v0 = vld [vmem:[%s6131_s6 + $0x5a8] sm:$0xff] }
 0x940   : > { %v4037_v2 = vpop.eup %4036 }
 0x941   : > { %v1662_v3 = vmul.f32 %v4037_v2, %v4035_v1  ;;  %v3136_v1 = vld [vmem:[%s6131_s6 + $0x5b8] sm:$0xff] }
 0x942   : > { %v3778_v2 = vpack.c.bf16 %v3136_v1, %v3134_v0  ;;  %v3111_v1 = vld [vmem:[%s4559_s2 + $0x58] sm:$0xff] }
 0x943   : > { %1774 = vmatmul.mubr.f32.vlgmr.msra.gmra.mrb[10].mxu0 %v1662_v3  ;;  %v3133_v3 = vld [vmem:[%s6131_s6 + $0x5a0] sm:$0xff] }
 0x944   : > { %2014 = vmatprep.mubr.f32.mxu0 %v4122_v20  ;;  %3761 = vmatpush1.bf16.msra.mxu0 %v3760_v41  ;;  %v3780_v7 = vpack.c.bf16 %v3135_v5, %v3133_v3  ;;  %v3154_v41 = vld [vmem:[%s6130_s5 + $0x640] sm:$0xff] }
 0xa16   : > { %v1775_v17 = vpop.f32.mrb[10].mxu0 }
 0xa17   : > { %v1776_v31 = vadd.f32 %v1775_v17, %v1702_v28  ;;  %v1777_v32 = vpop.f32.mrb[11].mxu0  ;;  %v3146_v28 = vld [vmem:[%s6130_s5 + $0x600] sm:$0xff]  ;;  %v3148_v17 = vld [vmem:[%s6130_s5 + $0x610] sm:$0xff] }
 0xa18   : > { %v1778_v33 = vadd.f32 %v1777_v32, %v1706_v12  ;;  %v3790_v12 = vpack.c.bf16 %v3149_v27, %v3147_v24  ;;  %v3153_v32 = vld [vmem:[%s6130_s5 + $0x638] sm:$0xff]  ;;  %v3176_v24 = vld [vmem:[%s6130_s5 + $0x6f0] sm:$0xff] }
 0xa19   : > { %vm1780_vm11 = vcmp.ge.f32.partialorder %v1776_v31, 0.0  ;;  %v1782_v25 = vmul.f32 0.4, %v1776_v31 }
 0xa1a   : > { %vm1781_vm12 = vcmp.ge.f32.partialorder %v1778_v33, 0.0  ;;  %v1783_v35 = vmul.f32 0.4, %v1778_v33  ;;  %3791 = vmatprep.subr.bf16.mxu1 %v3790_v12  ;;  %v3184_v12 = vld [vmem:[%s6131_s6 + $0x618] sm:$0xff] }
 0xa1b   : > { %v1784_v36 = vsel %vm1780_vm11, %v1776_v31, %v1782_v25  ;;  %v3151_v31 = vld [vmem:[%s6130_s5 + $0x628] sm:$0xff] }
 0xa1c   : > { %v1786_v37 = vadd.f32 %v1784_v36, %v5232_v34  ;;  %v1785_v29 = vsel %vm1781_vm12, %v1778_v33, %v1783_v35  ;;  %v3120_v34 = vld [vmem:[%s6131_s6 + $0x538] sm:$0xff]  ;;  %v3792_v33 = vpack.c.bf16 %v3148_v17, %v3146_v28  ;;  %v3794_v25 = vpack.c.bf16 %v3153_v32, %v3151_v31  ;;  %v3150_v35 = vld [vmem:[%s6130_s5 + $0x620] sm:$0xff]  ;;  %v3152_v36 = vld [vmem:[%s6130_s5 + $0x630] sm:$0xff] }
 0xa1d   : > { %v5438_v30 = vadd.f32 %v1785_v29, %v5230_v26  ;;  %v3118_v26 = vld [vmem:[%s6131_s6 + $0x528] sm:$0xff]  ;;  %v3157_v29 = vld [vmem:[%s6130_s5 + $0x658] sm:$0xff]  ;;  %v3796_v39 = vpack.c.bf16 %v3152_v36, %v3150_v35 }
 0xa1e   : > { %v5440_v38 = vmul.f32 0.70710677, %v1786_v37  ;;  %v3762_v42 = vpack.c.bf16 %v3120_v34, %v3118_v26  ;;  %v3155_v37 = vld [vmem:[%s6130_s5 + $0x648] sm:$0xff]  ;;  %v3156_v26 = vld [vmem:[%s6130_s5 + $0x650] sm:$0xff] }
 0xa1f   : > { %v3798_v40 = vpack.c.bf16 %v3157_v29, %v3155_v37  ;;  %v3159_v34 = vld [vmem:[%s6130_s5 + $0x668] sm:$0xff]  ;;  %v3800_v43 = vpack.c.bf16 %v3156_v26, %v3154_v41 }
 0xa20   : > { %1890 = vmatmul.mubr.f32.vlgmr.msra.gmra.mrb[10].mxu1 %v5440_v38  ;;  %3763 = vmatprep.subr.bf16.mxu0 %v3762_v42  ;;  %v3161_v42 = vld [vmem:[%s6130_s5 + $0x678] sm:$0xff]  ;;  %v3182_v28 = vld [vmem:[%s6131_s6 + $0x608] sm:$0xff] }
 0xa21   : > { %2130 = vmatprep.mubr.f32.mxu1 %v4122_v20  ;;  %3765 = vmatpush1.bf16.msra.mxu0 %v3764_v45  ;;  %v3802_v44 = vpack.c.bf16 %v3161_v42, %v3159_v34  ;;  %v3158_v45 = vld [vmem:[%s6130_s5 + $0x660] sm:$0xff]  ;;  %v3822_v17 = vpack.c.bf16 %v3184_v12, %v3182_v28  ;;  %v3145_v31 = vld [vmem:[%s6132_s7 + $0xa] sm:$0x3]  ;;  %v3211_v28 = vld [vmem:[%s6131_s6 + $0x6f0] sm:$0xff] }
 0xa22   : > { %3767 = vmatprep.subr.bf16.mxu0 %v3766_v48  ;;  %3793 = vmatpush1.bf16.msra.mxu1 %v3792_v33  ;;  %v3165_v48 = vld [vmem:[%s6130_s5 + $0x698] sm:$0xff]  ;;  %v3804_v49 = vpack.c.bf16 %v3160_v46, %v3158_v45  ;;  %v1943_v32 = vrot.slane %v3145_v31, %v4594_v4  ;;  %v1947_v33 = vrot.slane %v3145_v31, %v4599_v6 }
 0xa23   : > { %3795 = vmatprep.subr.bf16.mxu1 %v3794_v25  ;;  %v3806_v50 = vpack.c.bf16 %v3165_v48, %v3163_v47  ;;  %v3185_v47 = vld [vmem:[%s6131_s6 + $0x620] sm:$0xff]  ;;  %v3187_v48 = vld [vmem:[%s6131_s6 + $0x630] sm:$0xff]  ;;  %v3217_v31 = vld [vmem:[%s6130_s5 + $0x718] sm:$0xff] }
 0xa25   : > { %3769 = vmatpush1.bf16.msra.mxu0 %v3768_v51  ;;  %v3162_v51 = vld [vmem:[%s6130_s5 + $0x680] sm:$0xff] }
 0xa26   : > { %3771 = vmatprep.subr.bf16.mxu0 %v3770_v54  ;;  %3797 = vmatpush1.bf16.msra.mxu1 %v3796_v39  ;;  %v3169_v54 = vld [vmem:[%s6130_s5 + $0x6b8] sm:$0xff]  ;;  %v3808_v55 = vpack.c.bf16 %v3164_v52, %v3162_v51 }
 0xa27   : > { %3799 = vmatprep.subr.bf16.mxu1 %v3798_v40  ;;  %v3810_v56 = vpack.c.bf16 %v3169_v54, %v3167_v53  ;;  %v3192_v51 = vld [vmem:[%s6131_s6 + $0x658] sm:$0xff]  ;;  %v3189_v53 = vld [vmem:[%s6131_s6 + $0x640] sm:$0xff]  ;;  %v3191_v54 = vld [vmem:[%s6131_s6 + $0x650] sm:$0xff] }
 0xa29   : > { %3773 = vmatpush1.bf16.msra.mxu0 %v3772_v57  ;;  %v3166_v57 = vld [vmem:[%s6130_s5 + $0x6a0] sm:$0xff] }
 0xa2a   : > { %3775 = vmatprep.subr.bf16.mxu0 %v3774_v60  ;;  %3801 = vmatpush1.bf16.msra.mxu1 %v3800_v43  ;;  %v3812_v59 = vpack.c.bf16 %v3168_v58, %v3166_v57  ;;  %v3110_v60 = vld [vmem:[%s4559_s2 + $0x50] sm:$0xff]  ;;  %v3181_v43 = vld [vmem:[%s6131_s6 + $0x600] sm:$0xff]  ;;  %v3196_v57 = vld [vmem:[%s6131_s6 + $0x678] sm:$0xff] }
 0xa2b   : > { %3803 = vmatprep.subr.bf16.mxu1 %v3802_v44  ;;  %v3183_v44 = vld [vmem:[%s6131_s6 + $0x610] sm:$0xff] }
 0xa2c   : > { %v3824_v45 = vpack.c.bf16 %v3183_v44, %v3181_v43 }
 0xa2d   : > { %3777 = vmatpush1.bf16.msra.mxu0 %v3776_v63 }
 0xa2e   : > { %3779 = vmatprep.subr.bf16.mxu0 %v3778_v2  ;;  %3805 = vmatpush1.bf16.msra.mxu1 %v3804_v49  ;;  %v3828_v49 = vpack.c.bf16 %v3187_v48, %v3185_v47 }
 0xa2f   : > { %3807 = vmatprep.subr.bf16.mxu1 %v3806_v50  ;;  %v3190_v50 = vld [vmem:[%s6131_s6 + $0x648] sm:$0xff] }
 0xa30   : > { %v3830_v52 = vpack.c.bf16 %v3192_v51, %v3190_v50  ;;  %v3228_v50 = vld [vmem:[%s6130_s5 + $0x770] sm:$0xff]  ;;  %v3231_v51 = vld [vmem:[%s6130_s5 + $0x788] sm:$0xff] }
 0xa31   : > { %3781 = vmatpush1.bf16.msra.mxu0 %v3780_v7 }
 0xa32   : > { %3783 = vmatprep.subr.bf16.mxu0 %v3782_v11  ;;  %3809 = vmatpush1.bf16.msra.mxu1 %v3808_v55  ;;  %v3173_v11 = vld [vmem:[%s6130_s5 + $0x6d8] sm:$0xff]  ;;  %v3832_v55 = vpack.c.bf16 %v3191_v54, %v3189_v53 }
 0xa33   : > { %3811 = vmatprep.subr.bf16.mxu1 %v3810_v56  ;;  %v3814_v13 = vpack.c.bf16 %v3173_v11, %v3171_v10  ;;  %v3194_v56 = vld [vmem:[%s6131_s6 + $0x668] sm:$0xff]  ;;  %v3203_v10 = vld [vmem:[%s6131_s6 + $0x6b0] sm:$0xff] }
 0xa34   : > { %v3834_v58 = vpack.c.bf16 %v3196_v57, %v3194_v56  ;;  %v3232_v56 = vld [vmem:[%s6130_s5 + $0x790] sm:$0xff]  ;;  %v3235_v57 = vld [vmem:[%s6130_s5 + $0x7a8] sm:$0xff] }
 0xa35   : > { %3785 = vmatpush1.bf16.msra.mxu0 %v3784_v19  ;;  %v3816_v19 = vpack.c.bf16 %v3172_v15, %v3170_v14  ;;  %v3208_v14 = vld [vmem:[%s6131_s6 + $0x6d8] sm:$0xff]  ;;  %v3205_v15 = vld [vmem:[%s6131_s6 + $0x6c0] sm:$0xff] }
 0xa36   : > { %3787 = vmatprep.subr.bf16.mxu0 %v3786_v21  ;;  %3813 = vmatpush1.bf16.msra.mxu1 %v3812_v59  ;;  %v3175_v21 = vld [vmem:[%s6130_s5 + $0x6e8] sm:$0xff]  ;;  %v3193_v59 = vld [vmem:[%s6131_s6 + $0x660] sm:$0xff] }
 0xa37   : > { %3815 = vmatprep.subr.bf16.mxu1 %v3814_v13  ;;  %v3818_v16 = vpack.c.bf16 %v3177_v22, %v3175_v21  ;;  %v3206_v13 = vld [vmem:[%s6131_s6 + $0x6c8] sm:$0xff]  ;;  %v3207_v21 = vld [vmem:[%s6131_s6 + $0x6d0] sm:$0xff] }
 0xa38   : > { %v3210_v22 = vld [vmem:[%s6131_s6 + $0x6e8] sm:$0xff] }
 0xa39   : > { %3789 = vmatpush1.bf16.msra.mxu0 %v3788_v23  ;;  %v3174_v23 = vld [vmem:[%s6130_s5 + $0x6e0] sm:$0xff] }
 0xa3a   : > { %3817 = vmatpush1.bf16.msra.mxu1 %v3816_v19  ;;  %v3820_v27 = vpack.c.bf16 %v3176_v24, %v3174_v23  ;;  %3823 = vmatprep.subr.bf16.mxu0 %v3822_v17  ;;  %v3846_v19 = vpack.c.bf16 %v3208_v14, %v3206_v13  ;;  %v3848_v23 = vpack.c.bf16 %v3207_v21, %v3205_v15  ;;  %v3215_v17 = vld [vmem:[%s6130_s5 + $0x708] sm:$0xff] }
 0xa3b   : > { %3819 = vmatprep.subr.bf16.mxu1 %v3818_v16  ;;  %v3212_v16 = vld [vmem:[%s6131_s6 + $0x6f8] sm:$0xff]  ;;  %v3239_v15 = vld [vmem:[%s6130_s5 + $0x7c8] sm:$0xff] }
 0xa3c   : > { %v3850_v24 = vpack.c.bf16 %v3212_v16, %v3210_v22  ;;  %v3238_v22 = vld [vmem:[%s6130_s5 + $0x7c0] sm:$0xff]  ;;  %v3240_v16 = vld [vmem:[%s6130_s5 + $0x7d0] sm:$0xff] }
 0xa3e   : > { %3821 = vmatpush1.bf16.msra.mxu1 %v3820_v27  ;;  %v3209_v27 = vld [vmem:[%s6131_s6 + $0x6e0] sm:$0xff] }
 0xa3f   : > { %v3852_v12 = vpack.c.bf16 %v3211_v28, %v3209_v27  ;;  %v3245_v27 = vld [vmem:[%s6130_s5 + $0x7f8] sm:$0xff] }
 0xaf3   : > { %v1891_v61 = vpop.f32.mrb[10].mxu1 }
 0xaf4   : > { %v1892_v62 = vadd.f32 %v3110_v60, %v1891_v61  ;;  %v1893_v63 = vpop.f32.mrb[11].mxu1  ;;  %v3195_v60 = vld [vmem:[%s6131_s6 + $0x670] sm:$0xff] }
 0xaf5   : > { %v1894_v2 = vadd.f32 %v3111_v1, %v1893_v63  ;;  %v3836_v61 = vpack.c.bf16 %v3195_v60, %v3193_v59  ;;  %v3200_v63 = vld [vmem:[%s6131_s6 + $0x698] sm:$0xff]  ;;  %v3197_v1 = vld [vmem:[%s6131_s6 + $0x680] sm:$0xff] }
 0xaf6   : > { %v3112_v0 = vmul.f32 -1.442695, %v1892_v62  ;;  %v3198_v62 = vld [vmem:[%s6131_s6 + $0x688] sm:$0xff] }
 0xaf8   : > { %4038 = vpow2.f32 %v3112_v0  ;;  %v3838_v0 = vpack.c.bf16 %v3200_v63, %v3198_v62  ;;  %v3236_v62 = vld [vmem:[%s6130_s5 + $0x7b0] sm:$0xff] }
 0xaf9   : > { %4040 = vtanh.f32 %v1894_v2  ;;  %v3199_v2 = vld [vmem:[%s6131_s6 + $0x690] sm:$0xff] }
 0xb02   : > { %v4039_v3 = vpop.eup %4038 }
 0xb03   : > { %v1899_v5 = vadd.f32 1.0, %v4039_v3  ;;  %v4041_v7 = vpop.eup %4040  ;;  %v3840_v3 = vpack.c.bf16 %v3199_v2, %v3197_v1 }
 0xb05   : > { %4042 = vrcp.f32 %v1899_v5  ;;  %v3202_v5 = vld [vmem:[%s6131_s6 + $0x6a8] sm:$0xff] }
 0xb0f   : > { %v4043_v8 = vpop.eup %4042 }
 0xb10   : > { %v1903_v9 = vmul.f32 %v4043_v8, %v4041_v7  ;;  %v3204_v7 = vld [vmem:[%s6131_s6 + $0x6b8] sm:$0xff] }
 0xb11   : > { %v3842_v8 = vpack.c.bf16 %v3204_v7, %v3202_v5  ;;  %v3179_v7 = vld [vmem:[%s4559_s2 + $0x68] sm:$0xff] }
 0xb12   : > { %2015 = vmatmul.mubr.f32.vlgmr.msra.gmra.mrb[12].mxu0 %v1903_v9  ;;  %v3201_v9 = vld [vmem:[%s6131_s6 + $0x6a0] sm:$0xff] }
 0xb13   : > { %2255 = vmatprep.mubr.f32.mxu0 %v4122_v20  ;;  %3825 = vmatpush1.bf16.msra.mxu0 %v3824_v45  ;;  %v3844_v11 = vpack.c.bf16 %v3203_v10, %v3201_v9  ;;  %v3222_v45 = vld [vmem:[%s6130_s5 + $0x740] sm:$0xff] }
 0xbe5   : > { %v2016_v25 = vpop.f32.mrb[12].mxu0 }
 0xbe6   : > { %v2017_v35 = vadd.f32 %v2016_v25, %v1943_v32  ;;  %v2018_v36 = vpop.f32.mrb[13].mxu0  ;;  %v3214_v32 = vld [vmem:[%s6130_s5 + $0x700] sm:$0xff]  ;;  %v3216_v25 = vld [vmem:[%s6130_s5 + $0x710] sm:$0xff] }
 0xbe7   : > { %v2019_v37 = vadd.f32 %v2018_v36, %v1947_v33  ;;  %v3854_v33 = vpack.c.bf16 %v3217_v31, %v3215_v17  ;;  %v3221_v36 = vld [vmem:[%s6130_s5 + $0x738] sm:$0xff]  ;;  %v3244_v17 = vld [vmem:[%s6130_s5 + $0x7f0] sm:$0xff] }
 0xbe8   : > { %vm2021_vm13 = vcmp.ge.f32.partialorder %v2017_v35, 0.0  ;;  %v2023_v29 = vmul.f32 0.4, %v2017_v35 }
 0xbe9   : > { %vm2022_vm14 = vcmp.ge.f32.partialorder %v2019_v37, 0.0  ;;  %v2024_v39 = vmul.f32 0.4, %v2019_v37  ;;  %3855 = vmatprep.subr.bf16.mxu1 %v3854_v33  ;;  %v3252_v33 = vld [vmem:[%s6131_s6 + $0x718] sm:$0xff] }
 0xbea   : > { %v2025_v40 = vsel %vm2021_vm13, %v2017_v35, %v2023_v29  ;;  %v3219_v35 = vld [vmem:[%s6130_s5 + $0x728] sm:$0xff] }
 0xbeb   : > { %v2027_v41 = vadd.f32 %v2025_v40, %v5440_v38  ;;  %v2026_v26 = vsel %vm2022_vm14, %v2019_v37, %v2024_v39  ;;  %v3188_v38 = vld [vmem:[%s6131_s6 + $0x638] sm:$0xff]  ;;  %v3856_v37 = vpack.c.bf16 %v3216_v25, %v3214_v32  ;;  %v3858_v29 = vpack.c.bf16 %v3221_v36, %v3219_v35  ;;  %v3218_v39 = vld [vmem:[%s6130_s5 + $0x720] sm:$0xff]  ;;  %v3220_v40 = vld [vmem:[%s6130_s5 + $0x730] sm:$0xff] }
 0xbec   : > { %v5646_v34 = vadd.f32 %v2026_v26, %v5438_v30  ;;  %v3186_v30 = vld [vmem:[%s6131_s6 + $0x628] sm:$0xff]  ;;  %v3225_v26 = vld [vmem:[%s6130_s5 + $0x758] sm:$0xff]  ;;  %v3860_v43 = vpack.c.bf16 %v3220_v40, %v3218_v39 }
 0xbed   : > { %v5648_v42 = vmul.f32 0.70710677, %v2027_v41  ;;  %v3826_v46 = vpack.c.bf16 %v3188_v38, %v3186_v30  ;;  %v3223_v41 = vld [vmem:[%s6130_s5 + $0x748] sm:$0xff]  ;;  %v3224_v30 = vld [vmem:[%s6130_s5 + $0x750] sm:$0xff] }
 0xbee   : > { %v3862_v44 = vpack.c.bf16 %v3225_v26, %v3223_v41  ;;  %v3227_v38 = vld [vmem:[%s6130_s5 + $0x768] sm:$0xff]  ;;  %v3864_v47 = vpack.c.bf16 %v3224_v30, %v3222_v45 }
 0xbef   : > { %2131 = vmatmul.mubr.f32.vlgmr.msra.gmra.mrb[12].mxu1 %v5648_v42  ;;  %3827 = vmatprep.subr.bf16.mxu0 %v3826_v46  ;;  %v3229_v46 = vld [vmem:[%s6130_s5 + $0x778] sm:$0xff]  ;;  %v3250_v32 = vld [vmem:[%s6131_s6 + $0x708] sm:$0xff] }
 0xbf0   : > { %2371 = vmatprep.mubr.f32.mxu1 %v4122_v20  ;;  %3829 = vmatpush1.bf16.msra.mxu0 %v3828_v49  ;;  %v3866_v48 = vpack.c.bf16 %v3229_v46, %v3227_v38  ;;  %v3226_v49 = vld [vmem:[%s6130_s5 + $0x760] sm:$0xff]  ;;  %v3886_v25 = vpack.c.bf16 %v3252_v33, %v3250_v32  ;;  %v3213_v35 = vld [vmem:[%s6132_s7 + $0xc] sm:$0x3] }
 0xbf1   : > { %3831 = vmatprep.subr.bf16.mxu0 %v3830_v52  ;;  %3857 = vmatpush1.bf16.msra.mxu1 %v3856_v37  ;;  %v3233_v52 = vld [vmem:[%s6130_s5 + $0x798] sm:$0xff]  ;;  %v3868_v53 = vpack.c.bf16 %v3228_v50, %v3226_v49  ;;  %v2184_v36 = vrot.slane %v3213_v35, %v4594_v4  ;;  %v2188_v37 = vrot.slane %v3213_v35, %v4599_v6  ;;  %v3249_v4 = vld [vmem:[%s6131_s6 + $0x700] sm:$0xff]  ;;  %v2504_v35 = vld [vmem:[%s6133_s8 + $0x10] sm:$0xff] }
 0xbf2   : > { %3859 = vmatprep.subr.bf16.mxu1 %v3858_v29  ;;  %v3870_v54 = vpack.c.bf16 %v3233_v52, %v3231_v51  ;;  %v3253_v50 = vld [vmem:[%s6131_s6 + $0x720] sm:$0xff]  ;;  %v3255_v51 = vld [vmem:[%s6131_s6 + $0x730] sm:$0xff] }
 0xbf3   : > { %v3892_v52 = vpack.c.bf16 %v3255_v51, %v3253_v50  ;;  %v2502_v33 = vld [vmem:[%s6133_s8] sm:$0xff] }
 0xbf4   : > { %3833 = vmatpush1.bf16.msra.mxu0 %v3832_v55  ;;  %v3230_v55 = vld [vmem:[%s6130_s5 + $0x780] sm:$0xff] }
 0xbf5   : > { %3835 = vmatprep.subr.bf16.mxu0 %v3834_v58  ;;  %3861 = vmatpush1.bf16.msra.mxu1 %v3860_v43  ;;  %v3237_v58 = vld [vmem:[%s6130_s5 + $0x7b8] sm:$0xff]  ;;  %v3872_v59 = vpack.c.bf16 %v3232_v56, %v3230_v55  ;;  %v3257_v56 = vld [vmem:[%s6131_s6 + $0x740] sm:$0xff] }
 0xbf6   : > { %3863 = vmatprep.subr.bf16.mxu1 %v3862_v44  ;;  %v3874_v60 = vpack.c.bf16 %v3237_v58, %v3235_v57  ;;  %v3259_v57 = vld [vmem:[%s6131_s6 + $0x750] sm:$0xff] }
 0xbf7   : > { %v3896_v58 = vpack.c.bf16 %v3259_v57, %v3257_v56  ;;  %v2512_v56 = vld [vmem:[%s6133_s8 + $0x50] sm:$0xff]  ;;  %v2513_v57 = vld [vmem:[%s6133_s8 + $0x58] sm:$0xff] }
 0xbf8   : > { %3837 = vmatpush1.bf16.msra.mxu0 %v3836_v61  ;;  %v3234_v61 = vld [vmem:[%s6130_s5 + $0x7a0] sm:$0xff] }
 0xbf9   : > { %3839 = vmatprep.subr.bf16.mxu0 %v3838_v0  ;;  %3865 = vmatpush1.bf16.msra.mxu1 %v3864_v47  ;;  %v3876_v63 = vpack.c.bf16 %v3236_v62, %v3234_v61  ;;  %v3178_v0 = vld [vmem:[%s4559_s2 + $0x60] sm:$0xff]  ;;  %v3251_v47 = vld [vmem:[%s6131_s6 + $0x710] sm:$0xff] }
 0xbfa   : > { %3867 = vmatprep.subr.bf16.mxu1 %v3866_v48  ;;  %v3888_v48 = vpack.c.bf16 %v3251_v47, %v3249_v4  ;;  %v3261_v62 = vld [vmem:[%s6131_s6 + $0x760] sm:$0xff]  ;;  %v3246_v4 = vld [vmem:[%s4559_s2 + $0x70] sm:$0xff] }
 0xbfc   : > { %3841 = vmatpush1.bf16.msra.mxu0 %v3840_v3 }
 0xbfd   : > { %3843 = vmatprep.subr.bf16.mxu0 %v3842_v8  ;;  %3869 = vmatpush1.bf16.msra.mxu1 %v3868_v53  ;;  %v3258_v53 = vld [vmem:[%s6131_s6 + $0x748] sm:$0xff] }
 0xbfe   : > { %3871 = vmatprep.subr.bf16.mxu1 %v3870_v54  ;;  %v3260_v54 = vld [vmem:[%s6131_s6 + $0x758] sm:$0xff] }
 0xbff   : > { %v3894_v55 = vpack.c.bf16 %v3260_v54, %v3258_v53 }
 0xc00   : > { %3845 = vmatpush1.bf16.msra.mxu0 %v3844_v11 }
 0xc01   : > { %3847 = vmatprep.subr.bf16.mxu0 %v3846_v19  ;;  %3873 = vmatpush1.bf16.msra.mxu1 %v3872_v59  ;;  %v3241_v19 = vld [vmem:[%s6130_s5 + $0x7d8] sm:$0xff]  ;;  %v3262_v59 = vld [vmem:[%s6131_s6 + $0x768] sm:$0xff] }
 0xc02   : > { %3875 = vmatprep.subr.bf16.mxu1 %v3874_v60  ;;  %v3878_v21 = vpack.c.bf16 %v3241_v19, %v3239_v15  ;;  %v3264_v60 = vld [vmem:[%s6131_s6 + $0x778] sm:$0xff]  ;;  %v3274_v19 = vld [vmem:[%s6131_s6 + $0x7c8] sm:$0xff] }
 0xc03   : > { %v3898_v61 = vpack.c.bf16 %v3264_v60, %v3262_v59  ;;  %v2514_v59 = vld [vmem:[%s6133_s8 + $0x60] sm:$0xff] }
 0xc04   : > { %3849 = vmatpush1.bf16.msra.mxu0 %v3848_v23  ;;  %v3880_v23 = vpack.c.bf16 %v3240_v16, %v3238_v22  ;;  %v3273_v22 = vld [vmem:[%s6131_s6 + $0x7c0] sm:$0xff] }
 0xc05   : > { %3851 = vmatprep.subr.bf16.mxu0 %v3850_v24  ;;  %3877 = vmatpush1.bf16.msra.mxu1 %v3876_v63  ;;  %v3243_v24 = vld [vmem:[%s6130_s5 + $0x7e8] sm:$0xff]  ;;  %v3263_v63 = vld [vmem:[%s6131_s6 + $0x770] sm:$0xff] }
 0xc06   : > { %3879 = vmatprep.subr.bf16.mxu1 %v3878_v21  ;;  %v3882_v28 = vpack.c.bf16 %v3245_v27, %v3243_v24  ;;  %v3276_v21 = vld [vmem:[%s6131_s6 + $0x7d8] sm:$0xff]  ;;  %v3278_v24 = vld [vmem:[%s6131_s6 + $0x7e8] sm:$0xff] }
 0xc07   : > { %v3910_v16 = vpack.c.bf16 %v3276_v21, %v3274_v19  ;;  %v3280_v27 = vld [vmem:[%s6131_s6 + $0x7f8] sm:$0xff]  ;;  %v2607_v19 = vld [vmem:[%s6135_s10 + $0x48] sm:$0xff] }
 0xc08   : > { %3853 = vmatpush1.bf16.msra.mxu0 %v3852_v12  ;;  %v3242_v12 = vld [vmem:[%s6130_s5 + $0x7e0] sm:$0xff] }
 0xc09   : > { %3881 = vmatpush1.bf16.msra.mxu1 %v3880_v23  ;;  %v3884_v31 = vpack.c.bf16 %v3244_v17, %v3242_v12  ;;  %3887 = vmatprep.subr.bf16.mxu0 %v3886_v25  ;;  %v3275_v23 = vld [vmem:[%s6131_s6 + $0x7d0] sm:$0xff]  ;;  %v3914_v12 = vpack.c.bf16 %v3280_v27, %v3278_v24  ;;  %v3277_v17 = vld [vmem:[%s6131_s6 + $0x7e0] sm:$0xff]  ;;  %v2503_v25 = vld [vmem:[%s6133_s8 + $0x8] sm:$0xff] }
 0xc0a   : > { %3883 = vmatprep.subr.bf16.mxu1 %v3882_v28  ;;  %v3912_v28 = vpack.c.bf16 %v3275_v23, %v3273_v22  ;;  %v2608_v22 = vld [vmem:[%s6135_s10 + $0x50] sm:$0xff]  ;;  %v2610_v24 = vld [vmem:[%s6135_s10 + $0x60] sm:$0xff]  ;;  %v2611_v27 = vld [vmem:[%s6135_s10 + $0x68] sm:$0xff] }
 0xc0d   : > { %3885 = vmatpush1.bf16.msra.mxu1 %v3884_v31  ;;  %v3279_v31 = vld [vmem:[%s6131_s6 + $0x7f0] sm:$0xff] }
 0xc0e   : > { %3918 = vmatprep.subr.bf16.mxu1 %v4120_v18  ;;  %v3916_v32 = vpack.c.bf16 %v3279_v31, %v3277_v17 }
 0xcc2   : > { %v2132_v1 = vpop.f32.mrb[12].mxu1 }
 0xcc3   : > { %v2133_v2 = vadd.f32 %v3178_v0, %v2132_v1  ;;  %v2134_v3 = vpop.f32.mrb[13].mxu1  ;;  %v3900_v0 = vpack.c.bf16 %v3263_v63, %v3261_v62  ;;  %v3266_v1 = vld [vmem:[%s6131_s6 + $0x788] sm:$0xff]  ;;  %v2517_v62 = vld [vmem:[%s6133_s8 + $0x78] sm:$0xff] }
 0xcc4   : > { %v2135_v8 = vadd.f32 %v3179_v7, %v2134_v3  ;;  %v3267_v7 = vld [vmem:[%s6131_s6 + $0x790] sm:$0xff] }
 0xcc5   : > { %v3180_v5 = vmul.f32 -1.442695, %v2133_v2  ;;  %v3268_v2 = vld [vmem:[%s6131_s6 + $0x798] sm:$0xff] }
 0xcc6   : > { %v3902_v3 = vpack.c.bf16 %v3268_v2, %v3266_v1  ;;  %v2599_v1 = vld [vmem:[%s6135_s10 + $0x8] sm:$0xff]  ;;  %v2600_v2 = vld [vmem:[%s6135_s10 + $0x10] sm:$0xff] }
 0xcc7   : > { %4044 = vpow2.f32 %v3180_v5  ;;  %v3265_v5 = vld [vmem:[%s6131_s6 + $0x780] sm:$0xff] }
 0xcc8   : > { %4046 = vtanh.f32 %v2135_v8  ;;  %v3904_v8 = vpack.c.bf16 %v3267_v7, %v3265_v5  ;;  %v2601_v5 = vld [vmem:[%s6135_s10 + $0x18] sm:$0xff] }
 0xcc9   : > { %v3946_v7 = vpack.c.bf16 %v2601_v5, %v2600_v2 }
 0xcd1   : > { %v4045_v9 = vpop.eup %4044 }
 0xcd2   : > { %v2140_v10 = vadd.f32 1.0, %v4045_v9  ;;  %v4047_v11 = vpop.eup %4046  ;;  %v3270_v9 = vld [vmem:[%s6131_s6 + $0x7a8] sm:$0xff] }
 0xcd4   : > { %4048 = vrcp.f32 %v2140_v10  ;;  %v3272_v10 = vld [vmem:[%s6131_s6 + $0x7b8] sm:$0xff] }
 0xcde   : > { %v4049_v13 = vpop.eup %4048 }
 0xcdf   : > { %v2144_v14 = vmul.f32 %v4049_v13, %v4047_v11  ;;  %v3906_v11 = vpack.c.bf16 %v3272_v10, %v3270_v9  ;;  %v3269_v13 = vld [vmem:[%s6131_s6 + $0x7a0] sm:$0xff]  ;;  %v2603_v9 = vld [vmem:[%s6135_s10 + $0x28] sm:$0xff] }
 0xce1   : > { %2256 = vmatmul.mubr.f32.vlgmr.msra.gmra.mrb[14].mxu0 %v2144_v14  ;;  %v3271_v14 = vld [vmem:[%s6131_s6 + $0x7b0] sm:$0xff] }
 0xce2   : > { %2491 = vmatprep.mubr.f32.mxu0 %v4122_v20  ;;  %3889 = vmatpush1.bf16.msra.mxu0 %v3888_v48  ;;  %v3908_v15 = vpack.c.bf16 %v3271_v14, %v3269_v13  ;;  %v2605_v13 = vld [vmem:[%s6135_s10 + $0x38] sm:$0xff] }
 0xdb4   : > { %v2257_v29 = vpop.f32.mrb[14].mxu0 }
 0xdb5   : > { %v2258_v39 = vadd.f32 %v2257_v29, %v2184_v36  ;;  %v2259_v40 = vpop.f32.mrb[15].mxu0  ;;  %v3919_v36 = vpack.c.bf16 %v2503_v25, %v2502_v33 }
 0xdb6   : > { %v2260_v41 = vadd.f32 %v2259_v40, %v2188_v37  ;;  %v2505_v37 = vld [vmem:[%s6133_s8 + $0x18] sm:$0xff]  ;;  %v2507_v40 = vld [vmem:[%s6133_s8 + $0x28] sm:$0xff] }
 0xdb7   : > { %vm2262_vm15 = vcmp.ge.f32.partialorder %v2258_v39, 0.0  ;;  %v2264_v26 = vmul.f32 0.4, %v2258_v39  ;;  %v3922_v29 = vpack.c.bf16 %v2505_v37, %v2504_v35 }
 0xdb8   : > { %vm2263_vm2 = vcmp.ge.f32.partialorder %v2260_v41, 0.0  ;;  %v2265_v43 = vmul.f32 0.4, %v2260_v41 }
 0xdb9   : > { %v2266_v44 = vsel %vm2262_vm15, %v2258_v39, %v2264_v26  ;;  %v2506_v39 = vld [vmem:[%s6133_s8 + $0x20] sm:$0xff]  ;;  %v2508_v26 = vld [vmem:[%s6133_s8 + $0x30] sm:$0xff] }
 0xdba   : > { %v2268_v45 = vadd.f32 %v2266_v44, %v5648_v42  ;;  %v2267_v30 = vsel %vm2263_vm2, %v2260_v41, %v2265_v43  ;;  %v3256_v42 = vld [vmem:[%s6131_s6 + $0x738] sm:$0xff]  ;;  %v3925_v41 = vpack.c.bf16 %v2507_v40, %v2506_v39  ;;  %v3282_v39 = vld [vmem:[%s6134_s9] ss:$0 sm:$0xff] }
 0xdbb   : > { %v5855_v38 = vadd.f32 %v2267_v30, %v5646_v34  ;;  %v3254_v34 = vld [vmem:[%s6131_s6 + $0x728] sm:$0xff]  ;;  %v2509_v43 = vld [vmem:[%s6133_s8 + $0x38] sm:$0xff] }
 0xdbc   : > { %v2269_v46 = vmul.f32 0.70710677, %v2268_v45  ;;  %v3890_v49 = vpack.c.bf16 %v3256_v42, %v3254_v34  ;;  %v3928_v44 = vpack.c.bf16 %v2509_v43, %v2508_v26  ;;  %v2510_v45 = vld [vmem:[%s6133_s8 + $0x40] sm:$0xff]  ;;  %v2511_v30 = vld [vmem:[%s6133_s8 + $0x48] sm:$0xff] }
 0xdbe   : > { %2372 = vmatmul.mubr.f32.vlgmr.msra.gmra.mrb[14].mxu1 %v2269_v46  ;;  %3891 = vmatprep.subr.bf16.mxu0 %v3890_v49  ;;  %v3931_v46 = vpack.c.bf16 %v2511_v30, %v2510_v45  ;;  %v3247_v49 = vld [vmem:[%s4559_s2 + $0x78] sm:$0xff]  ;;  %s6080_s2 = scalar_lea.hbm %s6137_s12, %s3285_s19 }
 0xdbf   : > { %3365 = vmatprep.mubr.msk.f32.mxu1 %vm4121_vm0, %v4122_v20  ;;  %3893 = vmatpush1.bf16.msra.mxu0 %v3892_v52 }
 0xdc0   : > { %3895 = vmatprep.subr.bf16.mxu0 %v3894_v55  ;;  %3920 = vmatpush3.bf16.msra.mxu1 %v3919_v36 }
 0xdc1   : > { %3921 = vmatprep.subr.bf16.mxu1 %v4120_v18 }
 0xdc3   : > { %3897 = vmatpush1.bf16.msra.mxu0 %v3896_v58  ;;  %v3934_v58 = vpack.c.bf16 %v2513_v57, %v2512_v56 }
 0xdc4   : > { %3899 = vmatprep.subr.bf16.mxu0 %v3898_v61  ;;  %3923 = vmatpush3.bf16.msra.mxu1 %v3922_v29  ;;  %v2516_v61 = vld [vmem:[%s6133_s8 + $0x70] sm:$0xff] }
 0xdc5   : > { %3924 = vmatprep.subr.bf16.mxu1 %v4120_v18  ;;  %v3940_v63 = vpack.c.bf16 %v2517_v62, %v2516_v61 }
 0xdc7   : > { %3901 = vmatpush1.bf16.msra.mxu0 %v3900_v0  ;;  %v2598_v0 = vld [vmem:[%s6135_s10] sm:$0xff] }
 0xdc8   : > { %3903 = vmatprep.subr.bf16.mxu0 %v3902_v3  ;;  %3926 = vmatpush3.bf16.msra.mxu1 %v3925_v41  ;;  %v3943_v3 = vpack.c.bf16 %v2599_v1, %v2598_v0 }
 0xdc9   : > { %3927 = vmatprep.subr.bf16.mxu1 %v4120_v18 }
 0xdcb   : > { %3905 = vmatpush1.bf16.msra.mxu0 %v3904_v8  ;;  %v2602_v8 = vld [vmem:[%s6135_s10 + $0x20] sm:$0xff] }
 0xdcc   : > { %3907 = vmatprep.subr.bf16.mxu0 %v3906_v11  ;;  %3929 = vmatpush3.bf16.msra.mxu1 %v3928_v44  ;;  %v3949_v10 = vpack.c.bf16 %v2603_v9, %v2602_v8  ;;  %v2604_v11 = vld [vmem:[%s6135_s10 + $0x30] sm:$0xff]  ;;  %v3283_v44 = vld [vmem:[%s6136_s11] ss:$0 sm:$0xff] }
 0xdcd   : > { %3930 = vmatprep.subr.bf16.mxu1 %v4120_v18  ;;  %v3952_v14 = vpack.c.bf16 %v2605_v13, %v2604_v11 }
 0xdcf   : > { %3909 = vmatpush1.bf16.msra.mxu0 %v3908_v15  ;;  %v2606_v15 = vld [vmem:[%s6135_s10 + $0x40] sm:$0xff] }
 0xdd0   : > { %3911 = vmatprep.subr.bf16.mxu0 %v3910_v16  ;;  %3932 = vmatpush3.bf16.msra.mxu1 %v3931_v46  ;;  %v3955_v21 = vpack.c.bf16 %v2607_v19, %v2606_v15  ;;  %v2609_v16 = vld [vmem:[%s6135_s10 + $0x58] sm:$0xff] }
 0xdd1   : > { %3933 = vmatprep.subr.bf16.mxu1 %v4120_v18  ;;  %v3958_v23 = vpack.c.bf16 %v2609_v16, %v2608_v22 }
 0xdd3   : > { %3913 = vmatpush1.bf16.msra.mxu0 %v3912_v28  ;;  %v3961_v28 = vpack.c.bf16 %v2611_v27, %v2610_v24 }
 0xdd4   : > { %3915 = vmatprep.subr.bf16.mxu0 %v3914_v12  ;;  %3935 = vmatpush3.bf16.msra.mxu1 %v3934_v58  ;;  %v3281_v12 = vld [vmem:[%s6132_s7 + $0xe] sm:$0x3] }
 0xdd5   : > { %3936 = vmatprep.subr.bf16.mxu1 %v4120_v18  ;;  %v2425_v17 = vrot.slane %v3281_v12, %v4599_v6  ;;  %v2613_v6 = vld [vmem:[%s6135_s10 + $0x78] sm:$0xff] }
 0xdd7   : > { %3917 = vmatpush1.bf16.msra.mxu0 %v3916_v32 }
 0xdd8   : > { %3942 = vmatprep.subr.bf16.mxu0 %v4120_v18 }
 0xe91   : > { %v2373_v47 = vpop.f32.mrb[14].mxu1 }
 0xe92   : > { %v2374_v48 = vadd.f32 %v3246_v4, %v2373_v47  ;;  %v2375_v34 = vpop.f32.mrb[15].mxu1 }
 0xe93   : > { %v2376_v50 = vadd.f32 %v3247_v49, %v2375_v34 }
 0xe94   : > { %v3248_v42 = vmul.f32 -1.442695, %v2374_v48 }
 0xe96   : > { %4050 = vpow2.f32 %v3248_v42 }
 0xe97   : > { %4052 = vtanh.f32 %v2376_v50 }
 0xea0   : > { %v4051_v51 = vpop.eup %4050 }
 0xea1   : > { %v2381_v52 = vadd.f32 1.0, %v4051_v51  ;;  %v4053_v53 = vpop.eup %4052 }
 0xea3   : > { %4054 = vrcp.f32 %v2381_v52 }
 0xead   : > { %v4055_v54 = vpop.eup %4054 }
 0xeae   : > { %v2385_v55 = vmul.f32 %v4055_v54, %v4053_v53 }
 0xeb0   : > { %2492 = vmatmul.mubr.f32.vlgmr.msra.gmra.mrb[16].mxu0 %v2385_v55 }
 0xeb1   : > { %3400 = vmatprep.mubr.msk.f32.mxu0 %vm4121_vm0, %v4122_v20  ;;  %v2515_v20 = vld [vmem:[%s6133_s8 + $0x68] sm:$0xff]  ;;  %3944 = vmatpush3.bf16.msra.mxu0 %v3943_v3 }
 0xeb2   : > { %v3937_v60 = vpack.c.bf16 %v2515_v20, %v2514_v59  ;;  %3945 = vmatprep.subr.bf16.mxu0 %v4120_v18 }
 0xeb4   : > { %3938 = vmatpush3.bf16.msra.mxu1 %v3937_v60 }
 0xeb5   : > { %3939 = vmatprep.subr.bf16.mxu1 %v4120_v18  ;;  %3947 = vmatpush3.bf16.msra.mxu0 %v3946_v7 }
 0xeb6   : > { %3948 = vmatprep.subr.bf16.mxu0 %v4120_v18 }
 0xeb8   : > { %3941 = vmatpush3.bf16.msra.mxu1 %v3940_v63 }
 0xeb9   : > { %3950 = vmatpush3.bf16.msra.mxu0 %v3949_v10 }
 0xeba   : > { %3951 = vmatprep.subr.bf16.mxu0 %v4120_v18 }
 0xebd   : > { %3953 = vmatpush3.bf16.msra.mxu0 %v3952_v14 }
 0xebe   : > { %3954 = vmatprep.subr.bf16.mxu0 %v4120_v18 }
 0xec1   : > { %3956 = vmatpush3.bf16.msra.mxu0 %v3955_v21 }
 0xec2   : > { %3957 = vmatprep.subr.bf16.mxu0 %v4120_v18 }
 0xec5   : > { %3959 = vmatpush3.bf16.msra.mxu0 %v3958_v23 }
 0xec6   : > { %3960 = vmatprep.subr.bf16.mxu0 %v4120_v18 }
 0xec9   : > { %3962 = vmatpush3.bf16.msra.mxu0 %v3961_v28 }
 0xeca   : > { %3963 = vmatprep.subr.bf16.mxu0 %v4120_v18  ;;  %v2612_v18 = vld [vmem:[%s6135_s10 + $0x70] sm:$0xff] }
 0xecb   : > { %v3964_v29 = vpack.c.bf16 %v2613_v6, %v2612_v18 }
 0xecd   : > { %3965 = vmatpush3.bf16.msra.mxu0 %v3964_v29 }
 0xf83   : > { %v2493_v31 = vpop.f32.mrb[16].mxu0 }
 0xf84   : > { %v2494_v32 = vpop.f32.mrb[17].mxu0 }
 0xf85   : > { %v2495_v33 = vadd.f32 %v2494_v32, %v2425_v17 }
 0xf87   : > { %vm2497_vm0 = vcmp.ge.f32.partialorder %v2495_v33, 0.0  ;;  %v2498_v25 = vmul.f32 0.4, %v2495_v33 }
 0xf89   : > { %v2499_v35 = vsel %vm2497_vm0, %v2495_v33, %v2498_v25 }
 0xf8a   : > { %v2500_v36 = vadd.f32 %v2499_v35, %v5855_v38 }
 0xf8c   : > { %v2501_v37 = vmul.f32 0.35355338, %v2500_v36 }
 0xf8e   : > { %3366 = vmatmul.mubr.f32.vlgmr.msra.gmra.mrb[16].mxu1 %v2501_v37 }
0x1061   : > { %v2591_v40 = vpop.f32.mrb[16].mxu1 }
0x1062   : > { %v2592_v41 = vadd.f32 %v3282_v39, %v2591_v40  ;;  %v3367_v38 = vpop.f32.mrb[17].mxu1 }
0x1064   : > { %vm2595_vm3 = vcmp.ge.f32.partialorder %v2592_v41, 0.0  ;;  %v2596_v26 = vmul.f32 0.4, %v2592_v41 }
0x1066   : > { %v2597_v43 = vsel %vm2595_vm3, %v2592_v41, %v2596_v26 }
0x1067   : > { %3401 = vmatmul.mubr.f32.vlgmr.msra.gmra.mrb[18].mxu0 %v2597_v43 }
0x113a   : > { %v2687_v45 = vpop.f32.mrb[18].mxu0 }
0x113b   : > { %v2688_v30 = vadd.f32 %v3283_v44, %v2687_v45  ;;  %v3402_v46 = vpop.f32.mrb[19].mxu0 }
0x113d   : > { %2691 = vst.msk [vmem:[%s485_s20] sm:$0xff] %vm511_vm1, %v2688_v30 }
0x113e   : > { %4069 = shalt.err (!%p4066_p7)
}
0x113f   : > { %s4070_s23 = scalar_lea.hbm %s6080_s2, 128  ;;  %s4074_s18 = scalar_lea.hbm %s6137_s12, 256 }
0x1140   : > { %p4071_p10 = scmp.ne.s32.totalorder %s6080_s2, %s4070_s23  ;;  %p4075_p13 = scmp.lt.u32.totalorder %s6080_s2, %s6137_s12 }
0x1141   : > { %p4076_p0 = scmp.lt.u32.totalorder %s4074_s18, %s4070_s23  ;;  %p4078_p2 = scmp.lt.u32.totalorder %s4070_s23, %s6080_s2 }
0x1142   : > { %p4072_p11 = pnand %p4071_p10, %p4228_p6 }
0x1143   : > { %p4077_p1 = por %p4076_p0, %p4075_p13 }
0x1144   : > { %p4073_p12 = pneg %p4072_p11 }
0x1145   : > { %p4079_p3 = por %p4078_p2, %p4077_p1 }
0x1147   : > { %p4080_p4 = pnand %p4079_p3, %p4073_p12 }
0x1149   : > { %4083 = shalt.err (!%p4080_p4)
}
0x114a   : > { %3966 = dma.vmem_to_hbm [thread:$0]  (%p4228_p6), %s6082_s26, 128, %s6080_s2, %s2693_s15  }
0x114b PF: > { %s2718_s28 = sand.u32 1, %s4106_s21   ;;  %p3969_p5 = pnand %p2794_p9, %p4232_p8 }
0x114c   : > { %s2719_s29 = scalar_lea.sflag [#allocation4], %s2718_s28 }
0x114d   : > { %4101 = dma.done.wait (!%p3969_p5), %s2719_s29, 128  }
0x114e   : > { %4103 = vsyncadd (!%p3969_p5), %s2719_s29, 4294967168  ;;  %s6150_s24 = sld [smem:[#allocation7_spill]]  ;;  %s6151_s30 = sld [smem:[#allocation6_spill]] }
0x114f   : > { %s6152_s23 = sld [smem:[#allocation8_spill]]  ;;  %s6153_s21 = smov %s4110_s22 }
0x1154   : > { %p22_p7 = scmp.ge.s32.totalorder %s6150_s24, 4   ;;  %s6154_s22 = smov %s6151_s30 }
0x1156   :  { %24 = sbr.rel (!%p22_p7) target bundleno = 6 (0x6), region = 165 }
0x115d   :  { %2724 = vsyncpa [#allocation4], 1 }
0x115e   :  { %2726 = vsyncpa [#allocation4 + $0x1], 1 }

</bundles_post_ra>
